<compile_context>
chip_gen: v7x
topology: tpu7x:2x2x1
jax: 0.10.0
libtpu: 0.0.40
codegen_flags: <defaults>
</compile_context>

<pallas_src>
import functools

import jax
import jax.numpy as jnp
from jax import lax
from jax.experimental import pallas as pl
from jax.experimental.pallas import tpu as pltpu


def _full_block(shape):
    """Full-array BlockSpec for a grid-less pallas_call."""
    n = len(shape)
    return pl.BlockSpec(shape, lambda: (0,) * n)


# ----------------------------------------------------------------------------
# Fused kernel: 2-layer bidirectional LSTM + linear head.
#   gx1_ref : (T, B, 8H)  precomputed layer-1 input gates [fwd 4H || bwd 4H]
#                         (includes b_ih + b_hh), time-major.
#   whh*    : (H, 4H)     recurrent weights (PyTorch (4H,H) transposed).
#   wih2f/b : (H, 8H)     rows of the layer-2 input weight corresponding to the
#                         layer-1 fwd / bwd hidden features.
#   wlinf/b : (H, TP)     rows of the (lane-padded) linear weight for the
#                         layer-2 fwd / bwd hidden features.
#   out_ref : (T, B, TP)  emissions, padded to TP (multiple of 128) lanes.
#   gx2_sc  : (T, B, 8H)  VMEM scratch accumulating layer-2 input gates.
# ----------------------------------------------------------------------------
def _bilstm_ner_kernel(gx1_ref, whh1f_ref, whh1b_ref, wih2f_ref, wih2b_ref,
                       b2_ref, whh2f_ref, whh2b_ref, wlinf_ref, wlinb_ref,
                       blin_ref, out_ref, gx2_sc, *, hidden_dim):
    H = hidden_dim
    T, B, _ = gx1_ref.shape

    # Accumulator init: layer-2 input gates start at the folded layer-2 bias,
    # emissions start at the (padded) linear bias.
    gx2_sc[...] = jnp.broadcast_to(b2_ref[...], gx2_sc.shape)
    out_ref[...] = jnp.broadcast_to(blin_ref[...], out_ref.shape)

    def lstm_update(gates, c_prev):
        # Full-width transcendentals over the (B, 4H) gate tile, slice after.
        sg = jax.nn.sigmoid(gates)
        th = jnp.tanh(gates)
        i_g = sg[:, 0:H]
        f_g = sg[:, H:2 * H]
        g_g = th[:, 2 * H:3 * H]
        o_g = sg[:, 3 * H:4 * H]
        c_new = f_g * c_prev + i_g * g_g
        h_new = o_g * jnp.tanh(c_new)
        return h_new, c_new

    zero = jnp.zeros((B, H), jnp.float32)
    init = (zero, zero, zero, zero)

    # ---------------- Layer 1 (fwd + bwd fused in one loop) -----------------
    def layer1_step(t, carry):
        h_f, c_f, h_b, c_b = carry
        tb = T - 1 - t
        gx_f = gx1_ref[t][:, 0:4 * H]          # fwd input gates at time t
        gx_b = gx1_ref[tb][:, 4 * H:8 * H]     # bwd input gates at time T-1-t
        h_f, c_f = lstm_update(
            gx_f + jnp.dot(h_f, whh1f_ref[...],
                           preferred_element_type=jnp.float32), c_f)
        h_b, c_b = lstm_update(
            gx_b + jnp.dot(h_b, whh1b_ref[...],
                           preferred_element_type=jnp.float32), c_b)
        # On-the-fly layer-2 input projection (replaces concat + big matmul).
        gx2_sc[t] = gx2_sc[t] + jnp.dot(h_f, wih2f_ref[...],
                                        preferred_element_type=jnp.float32)
        gx2_sc[tb] = gx2_sc[tb] + jnp.dot(h_b, wih2b_ref[...],
                                          preferred_element_type=jnp.float32)
        return h_f, c_f, h_b, c_b

    lax.fori_loop(0, T, layer1_step, init, unroll=True)

    # ------------- Layer 2 (fwd + bwd fused) + fused linear head ------------
    def layer2_step(t, carry):
        h_f, c_f, h_b, c_b = carry
        tb = T - 1 - t
        gx_f = gx2_sc[t][:, 0:4 * H]
        gx_b = gx2_sc[tb][:, 4 * H:8 * H]
        h_f, c_f = lstm_update(
            gx_f + jnp.dot(h_f, whh2f_ref[...],
                           preferred_element_type=jnp.float32), c_f)
        h_b, c_b = lstm_update(
            gx_b + jnp.dot(h_b, whh2b_ref[...],
                           preferred_element_type=jnp.float32), c_b)
        # Fused final linear: accumulate each direction's contribution into the
        # lane-dense padded emissions buffer.
        out_ref[t] = out_ref[t] + jnp.dot(h_f, wlinf_ref[...],
                                          preferred_element_type=jnp.float32)
        out_ref[tb] = out_ref[tb] + jnp.dot(h_b, wlinb_ref[...],
                                            preferred_element_type=jnp.float32)
        return h_f, c_f, h_b, c_b

    lax.fori_loop(0, T, layer2_step, init, unroll=True)


# ----------------------------------------------------------------------------
# Parameter construction (mirrors nn.Embedding / nn.LSTM / nn.Linear shapes)
# ----------------------------------------------------------------------------
def init_params(key, num_tags, hidden_dim, vocab_size, embedding_dim):
    params = {}
    k_emb, key = jax.random.split(key)
    params["embedding"] = jax.random.normal(
        k_emb, (vocab_size, embedding_dim), jnp.float32)

    bound = 1.0 / jnp.sqrt(hidden_dim)
    lstm = []
    for layer in range(2):
        in_size = embedding_dim if layer == 0 else 2 * hidden_dim
        directions = []
        for _d in range(2):  # forward, backward
            key, k1, k2, k3, k4 = jax.random.split(key, 5)
            directions.append(dict(
                w_ih=jax.random.uniform(k1, (4 * hidden_dim, in_size),
                                        jnp.float32, -bound, bound),
                w_hh=jax.random.uniform(k2, (4 * hidden_dim, hidden_dim),
                                        jnp.float32, -bound, bound),
                b_ih=jax.random.uniform(k3, (4 * hidden_dim,),
                                        jnp.float32, -bound, bound),
                b_hh=jax.random.uniform(k4, (4 * hidden_dim,),
                                        jnp.float32, -bound, bound),
            ))
        lstm.append(directions)
    params["lstm"] = lstm

    key, kw, kb = jax.random.split(key, 3)
    lin_bound = 1.0 / jnp.sqrt(2 * hidden_dim)
    params["linear_w"] = jax.random.uniform(
        kw, (num_tags, 2 * hidden_dim), jnp.float32, -lin_bound, lin_bound)
    params["linear_b"] = jax.random.uniform(
        kb, (num_tags,), jnp.float32, -lin_bound, lin_bound)
    return params


# ----------------------------------------------------------------------------
# Full forward pass (matches CarNERModel.forward: returns emissions)
# ----------------------------------------------------------------------------
def car_ner_forward(params, input_ids):
    """input_ids: (B, T) int32 -> emissions (B, T, num_tags) float32."""
    B, T = input_ids.shape
    emb_table = params["embedding"]
    E = emb_table.shape[1]
    l1f, l1b = params["lstm"][0]
    l2f, l2b = params["lstm"][1]
    H = l1f["w_hh"].shape[1]
    num_tags = params["linear_w"].shape[0]
    TP = ((num_tags + 127) // 128) * 128          # lane-dense padded tag width

    # --- XLA prologue: embedding gather + hoisted layer-1 input projection ---
    embedded = jnp.take(emb_table, input_ids, axis=0)                  # (B,T,E)
    x_tbe = jnp.transpose(embedded, (1, 0, 2)).astype(jnp.float32)     # (T,B,E)
    x2d = x_tbe.reshape(T * B, E)

    wih1_cat = jnp.concatenate([l1f["w_ih"].T, l1b["w_ih"].T], axis=1)  # (E,8H)
    b1_cat = jnp.concatenate([l1f["b_ih"] + l1f["b_hh"],
                              l1b["b_ih"] + l1b["b_hh"]])[None, :]      # (1,8H)
    gx1 = (x2d @ wih1_cat + b1_cat).reshape(T, B, 8 * H).astype(jnp.float32)

    whh1f = jnp.asarray(l1f["w_hh"].T, jnp.float32)                     # (H,4H)
    whh1b = jnp.asarray(l1b["w_hh"].T, jnp.float32)

    wih2_cat = jnp.concatenate([l2f["w_ih"].T, l2b["w_ih"].T], axis=1)  # (2H,8H)
    wih2f = jnp.asarray(wih2_cat[:H, :], jnp.float32)   # layer-1 fwd-h rows
    wih2b = jnp.asarray(wih2_cat[H:, :], jnp.float32)   # layer-1 bwd-h rows
    b2_cat = jnp.concatenate([l2f["b_ih"] + l2f["b_hh"],
                              l2b["b_ih"] + l2b["b_hh"]])[None, :].astype(
                                  jnp.float32)                           # (1,8H)

    whh2f = jnp.asarray(l2f["w_hh"].T, jnp.float32)
    whh2b = jnp.asarray(l2b["w_hh"].T, jnp.float32)

    wlin_pad = jnp.zeros((2 * H, TP), jnp.float32).at[:, :num_tags].set(
        params["linear_w"].T)
    wlinf = wlin_pad[:H, :]                                             # (H,TP)
    wlinb = wlin_pad[H:, :]
    blin_pad = jnp.zeros((1, TP), jnp.float32).at[0, :num_tags].set(
        params["linear_b"])

    kernel = functools.partial(_bilstm_ner_kernel, hidden_dim=H)

    out = pl.pallas_call(
        kernel,
        out_shape=jax.ShapeDtypeStruct((T, B, TP), jnp.float32),
        in_specs=[
            _full_block((T, B, 8 * H)),    # gx1
            _full_block((H, 4 * H)),       # whh1 fwd
            _full_block((H, 4 * H)),       # whh1 bwd
            _full_block((H, 8 * H)),       # wih2 (fwd-h rows)
            _full_block((H, 8 * H)),       # wih2 (bwd-h rows)
            _full_block((1, 8 * H)),       # layer-2 bias
            _full_block((H, 4 * H)),       # whh2 fwd
            _full_block((H, 4 * H)),       # whh2 bwd
            _full_block((H, TP)),          # linear (fwd-h rows, padded)
            _full_block((H, TP)),          # linear (bwd-h rows, padded)
            _full_block((1, TP)),          # linear bias (padded)
        ],
        out_specs=_full_block((T, B, TP)),
        scratch_shapes=[pltpu.VMEM((T, B, 8 * H), jnp.float32)],
    )(gx1, whh1f, whh1b, wih2f, wih2b, b2_cat, whh2f, whh2b, wlinf, wlinb,
      blin_pad)

    emissions = jnp.transpose(out[:, :, :num_tags], (1, 0, 2))   # (B,T,num_tags)
    return emissions
    # TODO(synk): CRF layer is instantiated in __init__ but not used in
    # forward(); omitted here as well.


# ----------------------------------------------------------------------------
# Pure-JAX reference (lax.scan) used as a correctness cross-check.
# ----------------------------------------------------------------------------
def _ref_lstm_dir(x_tbi, p, hidden_dim):
    B = x_tbi.shape[1]

    def step(carry, x_t):
        h, c = carry
        gates = x_t @ p["w_ih"].T + h @ p["w_hh"].T + p["b_ih"] + p["b_hh"]
        H = hidden_dim
        i = jax.nn.sigmoid(gates[:, 0:H])
        f = jax.nn.sigmoid(gates[:, H:2 * H])
        g = jnp.tanh(gates[:, 2 * H:3 * H])
        o = jax.nn.sigmoid(gates[:, 3 * H:4 * H])
        c = f * c + i * g
        h = o * jnp.tanh(c)
        return (h, c), h

    init = (jnp.zeros((B, hidden_dim)), jnp.zeros((B, hidden_dim)))
    _, hs = jax.lax.scan(step, init, x_tbi)
    return hs


def car_ner_forward_ref(params, input_ids, hidden_dim):
    B, T = input_ids.shape
    x = jnp.transpose(jnp.take(params["embedding"], input_ids, axis=0), (1, 0, 2))
    for layer_params in params["lstm"]:
        fwd_p, bwd_p = layer_params
        h_fwd = _ref_lstm_dir(x, fwd_p, hidden_dim)
        h_bwd = _ref_lstm_dir(x[::-1], bwd_p, hidden_dim)[::-1]
        x = jnp.concatenate([h_fwd, h_bwd], axis=-1)
    out = jnp.transpose(x, (1, 0, 2))
    return out @ params["linear_w"].T + params["linear_b"]


if __name__ == "__main__":
    # Small shapes consistent with the module.
    batch, seq_len = 2, 8
    vocab_size, embedding_dim, hidden_dim, num_tags = 50, 16, 32, 5

    key = jax.random.PRNGKey(0)
    k_params, k_ids = jax.random.split(key)
    params = init_params(k_params, num_tags, hidden_dim, vocab_size, embedding_dim)
    input_ids = jax.random.randint(k_ids, (batch, seq_len), 0, vocab_size,
                                   dtype=jnp.int32)

    emissions = jax.block_until_ready(car_ner_forward(params, input_ids))
    assert emissions.shape == (batch, seq_len, num_tags)

    ref = jax.block_until_ready(car_ner_forward_ref(params, input_ids, hidden_dim))
    if not jnp.allclose(emissions, ref, atol=1e-2, rtol=1e-2):
        max_err = jnp.max(jnp.abs(emissions - ref))
        raise AssertionError(
            f"Pallas kernel output mismatch vs JAX reference (max_err={max_err})")

    print("KERNEL_OK")
</pallas_src>

<mosaic_0001>
module attributes {stable_mosaic.version = 11 : i64} {
  func.func @_bilstm_ner_kernel(%arg0: memref<8x2x256xf32, #tpu.memory_space<vmem>>, %arg1: memref<32x128xf32, #tpu.memory_space<vmem>>, %arg2: memref<32x128xf32, #tpu.memory_space<vmem>>, %arg3: memref<32x256xf32, #tpu.memory_space<vmem>>, %arg4: memref<32x256xf32, #tpu.memory_space<vmem>>, %arg5: memref<1x256xf32, #tpu.memory_space<vmem>>, %arg6: memref<32x128xf32, #tpu.memory_space<vmem>>, %arg7: memref<32x128xf32, #tpu.memory_space<vmem>>, %arg8: memref<32x128xf32, #tpu.memory_space<vmem>>, %arg9: memref<32x128xf32, #tpu.memory_space<vmem>>, %arg10: memref<1x128xf32, #tpu.memory_space<vmem>>, %arg11: memref<8x2x128xf32, #tpu.memory_space<vmem>>, %arg12: memref<8x2x256xf32, #tpu.memory_space<vmem>>) attributes {dimension_semantics = [], scalar_prefetch = 0 : i64, scratch_operands = 1 : i64, tpu.core_type = #tpu.core_type<tc>} {
    %c0 = arith.constant 0 : index
    %c0_0 = arith.constant 0 : index
    %0 = vector.load %arg5[%c0, %c0_0] : memref<1x256xf32, #tpu.memory_space<vmem>>, vector<1x256xf32>
    %1 = vector.shape_cast %0 : vector<1x256xf32> to vector<1x1x256xf32>
    %2 = vector.broadcast %1 : vector<1x1x256xf32> to vector<8x2x256xf32>
    %c0_1 = arith.constant 0 : index
    %c0_2 = arith.constant 0 : index
    %c0_3 = arith.constant 0 : index
    %3 = vector.load %arg12[%c0_1, %c0_2, %c0_3] : memref<8x2x256xf32, #tpu.memory_space<vmem>>, vector<8x2x256xf32>
    tpu.vector_store %arg12[%c0_1, %c0_2, %c0_3], %2 {strides = array<i32>} : memref<8x2x256xf32, #tpu.memory_space<vmem>>, vector<8x2x256xf32>,
    %c0_4 = arith.constant 0 : index
    %c0_5 = arith.constant 0 : index
    %4 = vector.load %arg10[%c0_4, %c0_5] : memref<1x128xf32, #tpu.memory_space<vmem>>, vector<1x128xf32>
    %5 = vector.shape_cast %4 : vector<1x128xf32> to vector<1x1x128xf32>
    %6 = vector.broadcast %5 : vector<1x1x128xf32> to vector<8x2x128xf32>
    %c0_6 = arith.constant 0 : index
    %c0_7 = arith.constant 0 : index
    %c0_8 = arith.constant 0 : index
    %7 = vector.load %arg11[%c0_6, %c0_7, %c0_8] : memref<8x2x128xf32, #tpu.memory_space<vmem>>, vector<8x2x128xf32>
    tpu.vector_store %arg11[%c0_6, %c0_7, %c0_8], %6 {strides = array<i32>} : memref<8x2x128xf32, #tpu.memory_space<vmem>>, vector<8x2x128xf32>,
    %cst = arith.constant 0.000000e+00 : f32
    %8 = vector.broadcast %cst : f32 to vector<2x32xf32>
    %c0_i32 = arith.constant 0 : i32
    %c7_i32 = arith.constant 7 : i32
    %9 = arith.subi %c7_i32, %c0_i32 : i32
    %10 = arith.index_cast %c0_i32 : i32 to index
    %c0_9 = arith.constant 0 : index
    %c0_10 = arith.constant 0 : index
    %11 = vector.load %arg0[%10, %c0_9, %c0_10] : memref<8x2x256xf32, #tpu.memory_space<vmem>>, vector<1x2x256xf32>
    %12 = vector.shape_cast %11 : vector<1x2x256xf32> to vector<2x256xf32>
    %13 = vector.extract_strided_slice %12 {offsets = [0, 0], sizes = [2, 128], strides = [1, 1]} : vector<2x256xf32> to vector<2x128xf32>
    %14 = arith.index_cast %9 : i32 to index
    %c0_11 = arith.constant 0 : index
    %c0_12 = arith.constant 0 : index
    %15 = vector.load %arg0[%14, %c0_11, %c0_12] : memref<8x2x256xf32, #tpu.memory_space<vmem>>, vector<1x2x256xf32>
    %16 = vector.shape_cast %15 : vector<1x2x256xf32> to vector<2x256xf32>
    %17 = vector.extract_strided_slice %16 {offsets = [0, 128], sizes = [2, 128], strides = [1, 1]} : vector<2x256xf32> to vector<2x128xf32>
    %c0_13 = arith.constant 0 : index
    %c0_14 = arith.constant 0 : index
    %18 = vector.load %arg1[%c0_13, %c0_14] : memref<32x128xf32, #tpu.memory_space<vmem>>, vector<32x128xf32>
    %cst_15 = arith.constant dense<0.000000e+00> : vector<2x128xf32>
    %19 = tpu.matmul %8, %18, %cst_15 {dimension_numbers = #tpu.dot_dimension_numbers<[1], [0], [0], [1], [0, 0, 1, 1], [], []>} : vector<2x32xf32>, vector<32x128xf32>, vector<2x128xf32> -> vector<2x128xf32>
    %20 = arith.addf %13, %19 : vector<2x128xf32>
    %21 = arith.negf %20 : vector<2x128xf32>
    %22 = math.exp %21 : vector<2x128xf32>
    %cst_16 = arith.constant 1.000000e+00 : f32
    %23 = vector.broadcast %cst_16 : f32 to vector<2x128xf32>
    %24 = arith.addf %23, %22 : vector<2x128xf32>
    %25 = arith.divf %23, %24 : vector<2x128xf32>
    %26 = math.tanh %20 : vector<2x128xf32>
    %27 = vector.extract_strided_slice %25 {offsets = [0, 0], sizes = [2, 32], strides = [1, 1]} : vector<2x128xf32> to vector<2x32xf32>
    %28 = vector.extract_strided_slice %25 {offsets = [0, 32], sizes = [2, 32], strides = [1, 1]} : vector<2x128xf32> to vector<2x32xf32>
    %29 = vector.extract_strided_slice %26 {offsets = [0, 64], sizes = [2, 32], strides = [1, 1]} : vector<2x128xf32> to vector<2x32xf32>
    %30 = vector.extract_strided_slice %25 {offsets = [0, 96], sizes = [2, 32], strides = [1, 1]} : vector<2x128xf32> to vector<2x32xf32>
    %31 = arith.mulf %28, %8 : vector<2x32xf32>
    %32 = arith.mulf %27, %29 : vector<2x32xf32>
    %33 = arith.addf %31, %32 : vector<2x32xf32>
    %34 = math.tanh %33 : vector<2x32xf32>
    %35 = arith.mulf %30, %34 : vector<2x32xf32>
    %c0_17 = arith.constant 0 : index
    %c0_18 = arith.constant 0 : index
    %36 = vector.load %arg2[%c0_17, %c0_18] : memref<32x128xf32, #tpu.memory_space<vmem>>, vector<32x128xf32>
    %cst_19 = arith.constant dense<0.000000e+00> : vector<2x128xf32>
    %37 = tpu.matmul %8, %36, %cst_19 {dimension_numbers = #tpu.dot_dimension_numbers<[1], [0], [0], [1], [0, 0, 1, 1], [], []>} : vector<2x32xf32>, vector<32x128xf32>, vector<2x128xf32> -> vector<2x128xf32>
    %38 = arith.addf %17, %37 : vector<2x128xf32>
    %39 = arith.negf %38 : vector<2x128xf32>
    %40 = math.exp %39 : vector<2x128xf32>
    %cst_20 = arith.constant 1.000000e+00 : f32
    %41 = vector.broadcast %cst_20 : f32 to vector<2x128xf32>
    %42 = arith.addf %41, %40 : vector<2x128xf32>
    %43 = arith.divf %41, %42 : vector<2x128xf32>
    %44 = math.tanh %38 : vector<2x128xf32>
    %45 = vector.extract_strided_slice %43 {offsets = [0, 0], sizes = [2, 32], strides = [1, 1]} : vector<2x128xf32> to vector<2x32xf32>
    %46 = vector.extract_strided_slice %43 {offsets = [0, 32], sizes = [2, 32], strides = [1, 1]} : vector<2x128xf32> to vector<2x32xf32>
    %47 = vector.extract_strided_slice %44 {offsets = [0, 64], sizes = [2, 32], strides = [1, 1]} : vector<2x128xf32> to vector<2x32xf32>
    %48 = vector.extract_strided_slice %43 {offsets = [0, 96], sizes = [2, 32], strides = [1, 1]} : vector<2x128xf32> to vector<2x32xf32>
    %49 = arith.mulf %46, %8 : vector<2x32xf32>
    %50 = arith.mulf %45, %47 : vector<2x32xf32>
    %51 = arith.addf %49, %50 : vector<2x32xf32>
    %52 = math.tanh %51 : vector<2x32xf32>
    %53 = arith.mulf %48, %52 : vector<2x32xf32>
    %54 = arith.index_cast %c0_i32 : i32 to index
    %c0_21 = arith.constant 0 : index
    %c0_22 = arith.constant 0 : index
    %55 = vector.load %arg12[%54, %c0_21, %c0_22] : memref<8x2x256xf32, #tpu.memory_space<vmem>>, vector<1x2x256xf32>
    %56 = vector.shape_cast %55 : vector<1x2x256xf32> to vector<2x256xf32>
    %c0_23 = arith.constant 0 : index
    %c0_24 = arith.constant 0 : index
    %57 = vector.load %arg3[%c0_23, %c0_24] : memref<32x256xf32, #tpu.memory_space<vmem>>, vector<32x256xf32>
    %cst_25 = arith.constant dense<0.000000e+00> : vector<2x256xf32>
    %58 = tpu.matmul %35, %57, %cst_25 {dimension_numbers = #tpu.dot_dimension_numbers<[1], [0], [0], [1], [0, 0, 1, 1], [], []>} : vector<2x32xf32>, vector<32x256xf32>, vector<2x256xf32> -> vector<2x256xf32>
    %59 = arith.addf %56, %58 : vector<2x256xf32>
    %60 = arith.index_cast %c0_i32 : i32 to index
    %c0_26 = arith.constant 0 : index
    %c0_27 = arith.constant 0 : index
    %61 = vector.load %arg12[%60, %c0_26, %c0_27] : memref<8x2x256xf32, #tpu.memory_space<vmem>>, vector<1x2x256xf32>
    %62 = vector.shape_cast %61 : vector<1x2x256xf32> to vector<2x256xf32>
    %63 = vector.shape_cast %59 : vector<2x256xf32> to vector<1x2x256xf32>
    tpu.vector_store %arg12[%60, %c0_26, %c0_27], %63 {strides = array<i32>} : memref<8x2x256xf32, #tpu.memory_space<vmem>>, vector<1x2x256xf32>,
    %64 = arith.index_cast %9 : i32 to index
    %c0_28 = arith.constant 0 : index
    %c0_29 = arith.constant 0 : index
    %65 = vector.load %arg12[%64, %c0_28, %c0_29] : memref<8x2x256xf32, #tpu.memory_space<vmem>>, vector<1x2x256xf32>
    %66 = vector.shape_cast %65 : vector<1x2x256xf32> to vector<2x256xf32>
    %c0_30 = arith.constant 0 : index
    %c0_31 = arith.constant 0 : index
    %67 = vector.load %arg4[%c0_30, %c0_31] : memref<32x256xf32, #tpu.memory_space<vmem>>, vector<32x256xf32>
    %cst_32 = arith.constant dense<0.000000e+00> : vector<2x256xf32>
    %68 = tpu.matmul %53, %67, %cst_32 {dimension_numbers = #tpu.dot_dimension_numbers<[1], [0], [0], [1], [0, 0, 1, 1], [], []>} : vector<2x32xf32>, vector<32x256xf32>, vector<2x256xf32> -> vector<2x256xf32>
    %69 = arith.addf %66, %68 : vector<2x256xf32>
    %70 = arith.index_cast %9 : i32 to index
    %c0_33 = arith.constant 0 : index
    %c0_34 = arith.constant 0 : index
    %71 = vector.load %arg12[%70, %c0_33, %c0_34] : memref<8x2x256xf32, #tpu.memory_space<vmem>>, vector<1x2x256xf32>
    %72 = vector.shape_cast %71 : vector<1x2x256xf32> to vector<2x256xf32>
    %73 = vector.shape_cast %69 : vector<2x256xf32> to vector<1x2x256xf32>
    tpu.vector_store %arg12[%70, %c0_33, %c0_34], %73 {strides = array<i32>} : memref<8x2x256xf32, #tpu.memory_space<vmem>>, vector<1x2x256xf32>,
    %c1_i32 = arith.constant 1 : i32
    %c7_i32_35 = arith.constant 7 : i32
    %74 = arith.subi %c7_i32_35, %c1_i32 : i32
    %75 = arith.index_cast %c1_i32 : i32 to index
    %c0_36 = arith.constant 0 : index
    %c0_37 = arith.constant 0 : index
    %76 = vector.load %arg0[%75, %c0_36, %c0_37] : memref<8x2x256xf32, #tpu.memory_space<vmem>>, vector<1x2x256xf32>
    %77 = vector.shape_cast %76 : vector<1x2x256xf32> to vector<2x256xf32>
    %78 = vector.extract_strided_slice %77 {offsets = [0, 0], sizes = [2, 128], strides = [1, 1]} : vector<2x256xf32> to vector<2x128xf32>
    %79 = arith.index_cast %74 : i32 to index
    %c0_38 = arith.constant 0 : index
    %c0_39 = arith.constant 0 : index
    %80 = vector.load %arg0[%79, %c0_38, %c0_39] : memref<8x2x256xf32, #tpu.memory_space<vmem>>, vector<1x2x256xf32>
    %81 = vector.shape_cast %80 : vector<1x2x256xf32> to vector<2x256xf32>
    %82 = vector.extract_strided_slice %81 {offsets = [0, 128], sizes = [2, 128], strides = [1, 1]} : vector<2x256xf32> to vector<2x128xf32>
    %c0_40 = arith.constant 0 : index
    %c0_41 = arith.constant 0 : index
    %83 = vector.load %arg1[%c0_40, %c0_41] : memref<32x128xf32, #tpu.memory_space<vmem>>, vector<32x128xf32>
    %cst_42 = arith.constant dense<0.000000e+00> : vector<2x128xf32>
    %84 = tpu.matmul %35, %83, %cst_42 {dimension_numbers = #tpu.dot_dimension_numbers<[1], [0], [0], [1], [0, 0, 1, 1], [], []>} : vector<2x32xf32>, vector<32x128xf32>, vector<2x128xf32> -> vector<2x128xf32>
    %85 = arith.addf %78, %84 : vector<2x128xf32>
    %86 = arith.negf %85 : vector<2x128xf32>
    %87 = math.exp %86 : vector<2x128xf32>
    %cst_43 = arith.constant 1.000000e+00 : f32
    %88 = vector.broadcast %cst_43 : f32 to vector<2x128xf32>
    %89 = arith.addf %88, %87 : vector<2x128xf32>
    %90 = arith.divf %88, %89 : vector<2x128xf32>
    %91 = math.tanh %85 : vector<2x128xf32>
    %92 = vector.extract_strided_slice %90 {offsets = [0, 0], sizes = [2, 32], strides = [1, 1]} : vector<2x128xf32> to vector<2x32xf32>
    %93 = vector.extract_strided_slice %90 {offsets = [0, 32], sizes = [2, 32], strides = [1, 1]} : vector<2x128xf32> to vector<2x32xf32>
    %94 = vector.extract_strided_slice %91 {offsets = [0, 64], sizes = [2, 32], strides = [1, 1]} : vector<2x128xf32> to vector<2x32xf32>
    %95 = vector.extract_strided_slice %90 {offsets = [0, 96], sizes = [2, 32], strides = [1, 1]} : vector<2x128xf32> to vector<2x32xf32>
    %96 = arith.mulf %93, %33 : vector<2x32xf32>
    %97 = arith.mulf %92, %94 : vector<2x32xf32>
    %98 = arith.addf %96, %97 : vector<2x32xf32>
    %99 = math.tanh %98 : vector<2x32xf32>
    %100 = arith.mulf %95, %99 : vector<2x32xf32>
    %c0_44 = arith.constant 0 : index
    %c0_45 = arith.constant 0 : index
    %101 = vector.load %arg2[%c0_44, %c0_45] : memref<32x128xf32, #tpu.memory_space<vmem>>, vector<32x128xf32>
    %cst_46 = arith.constant dense<0.000000e+00> : vector<2x128xf32>
    %102 = tpu.matmul %53, %101, %cst_46 {dimension_numbers = #tpu.dot_dimension_numbers<[1], [0], [0], [1], [0, 0, 1, 1], [], []>} : vector<2x32xf32>, vector<32x128xf32>, vector<2x128xf32> -> vector<2x128xf32>
    %103 = arith.addf %82, %102 : vector<2x128xf32>
    %104 = arith.negf %103 : vector<2x128xf32>
    %105 = math.exp %104 : vector<2x128xf32>
    %cst_47 = arith.constant 1.000000e+00 : f32
    %106 = vector.broadcast %cst_47 : f32 to vector<2x128xf32>
    %107 = arith.addf %106, %105 : vector<2x128xf32>
    %108 = arith.divf %106, %107 : vector<2x128xf32>
    %109 = math.tanh %103 : vector<2x128xf32>
    %110 = vector.extract_strided_slice %108 {offsets = [0, 0], sizes = [2, 32], strides = [1, 1]} : vector<2x128xf32> to vector<2x32xf32>
    %111 = vector.extract_strided_slice %108 {offsets = [0, 32], sizes = [2, 32], strides = [1, 1]} : vector<2x128xf32> to vector<2x32xf32>
    %112 = vector.extract_strided_slice %109 {offsets = [0, 64], sizes = [2, 32], strides = [1, 1]} : vector<2x128xf32> to vector<2x32xf32>
    %113 = vector.extract_strided_slice %108 {offsets = [0, 96], sizes = [2, 32], strides = [1, 1]} : vector<2x128xf32> to vector<2x32xf32>
    %114 = arith.mulf %111, %51 : vector<2x32xf32>
    %115 = arith.mulf %110, %112 : vector<2x32xf32>
    %116 = arith.addf %114, %115 : vector<2x32xf32>
    %117 = math.tanh %116 : vector<2x32xf32>
    %118 = arith.mulf %113, %117 : vector<2x32xf32>
    %119 = arith.index_cast %c1_i32 : i32 to index
    %c0_48 = arith.constant 0 : index
    %c0_49 = arith.constant 0 : index
    %120 = vector.load %arg12[%119, %c0_48, %c0_49] : memref<8x2x256xf32, #tpu.memory_space<vmem>>, vector<1x2x256xf32>
    %121 = vector.shape_cast %120 : vector<1x2x256xf32> to vector<2x256xf32>
    %c0_50 = arith.constant 0 : index
    %c0_51 = arith.constant 0 : index
    %122 = vector.load %arg3[%c0_50, %c0_51] : memref<32x256xf32, #tpu.memory_space<vmem>>, vector<32x256xf32>
    %cst_52 = arith.constant dense<0.000000e+00> : vector<2x256xf32>
    %123 = tpu.matmul %100, %122, %cst_52 {dimension_numbers = #tpu.dot_dimension_numbers<[1], [0], [0], [1], [0, 0, 1, 1], [], []>} : vector<2x32xf32>, vector<32x256xf32>, vector<2x256xf32> -> vector<2x256xf32>
    %124 = arith.addf %121, %123 : vector<2x256xf32>
    %125 = arith.index_cast %c1_i32 : i32 to index
    %c0_53 = arith.constant 0 : index
    %c0_54 = arith.constant 0 : index
    %126 = vector.load %arg12[%125, %c0_53, %c0_54] : memref<8x2x256xf32, #tpu.memory_space<vmem>>, vector<1x2x256xf32>
    %127 = vector.shape_cast %126 : vector<1x2x256xf32> to vector<2x256xf32>
    %128 = vector.shape_cast %124 : vector<2x256xf32> to vector<1x2x256xf32>
    tpu.vector_store %arg12[%125, %c0_53, %c0_54], %128 {strides = array<i32>} : memref<8x2x256xf32, #tpu.memory_space<vmem>>, vector<1x2x256xf32>,
    %129 = arith.index_cast %74 : i32 to index
    %c0_55 = arith.constant 0 : index
    %c0_56 = arith.constant 0 : index
    %130 = vector.load %arg12[%129, %c0_55, %c0_56] : memref<8x2x256xf32, #tpu.memory_space<vmem>>, vector<1x2x256xf32>
    %131 = vector.shape_cast %130 : vector<1x2x256xf32> to vector<2x256xf32>
    %c0_57 = arith.constant 0 : index
    %c0_58 = arith.constant 0 : index
    %132 = vector.load %arg4[%c0_57, %c0_58] : memref<32x256xf32, #tpu.memory_space<vmem>>, vector<32x256xf32>
    %cst_59 = arith.constant dense<0.000000e+00> : vector<2x256xf32>
    %133 = tpu.matmul %118, %132, %cst_59 {dimension_numbers = #tpu.dot_dimension_numbers<[1], [0], [0], [1], [0, 0, 1, 1], [], []>} : vector<2x32xf32>, vector<32x256xf32>, vector<2x256xf32> -> vector<2x256xf32>
    %134 = arith.addf %131, %133 : vector<2x256xf32>
    %135 = arith.index_cast %74 : i32 to index
    %c0_60 = arith.constant 0 : index
    %c0_61 = arith.constant 0 : index
    %136 = vector.load %arg12[%135, %c0_60, %c0_61] : memref<8x2x256xf32, #tpu.memory_space<vmem>>, vector<1x2x256xf32>
    %137 = vector.shape_cast %136 : vector<1x2x256xf32> to vector<2x256xf32>
    %138 = vector.shape_cast %134 : vector<2x256xf32> to vector<1x2x256xf32>
    tpu.vector_store %arg12[%135, %c0_60, %c0_61], %138 {strides = array<i32>} : memref<8x2x256xf32, #tpu.memory_space<vmem>>, vector<1x2x256xf32>,
    %c2_i32 = arith.constant 2 : i32
    %c7_i32_62 = arith.constant 7 : i32
    %139 = arith.subi %c7_i32_62, %c2_i32 : i32
    %140 = arith.index_cast %c2_i32 : i32 to index
    %c0_63 = arith.constant 0 : index
    %c0_64 = arith.constant 0 : index
    %141 = vector.load %arg0[%140, %c0_63, %c0_64] : memref<8x2x256xf32, #tpu.memory_space<vmem>>, vector<1x2x256xf32>
    %142 = vector.shape_cast %141 : vector<1x2x256xf32> to vector<2x256xf32>
    %143 = vector.extract_strided_slice %142 {offsets = [0, 0], sizes = [2, 128], strides = [1, 1]} : vector<2x256xf32> to vector<2x128xf32>
    %144 = arith.index_cast %139 : i32 to index
    %c0_65 = arith.constant 0 : index
    %c0_66 = arith.constant 0 : index
    %145 = vector.load %arg0[%144, %c0_65, %c0_66] : memref<8x2x256xf32, #tpu.memory_space<vmem>>, vector<1x2x256xf32>
    %146 = vector.shape_cast %145 : vector<1x2x256xf32> to vector<2x256xf32>
    %147 = vector.extract_strided_slice %146 {offsets = [0, 128], sizes = [2, 128], strides = [1, 1]} : vector<2x256xf32> to vector<2x128xf32>
    %c0_67 = arith.constant 0 : index
    %c0_68 = arith.constant 0 : index
    %148 = vector.load %arg1[%c0_67, %c0_68] : memref<32x128xf32, #tpu.memory_space<vmem>>, vector<32x128xf32>
    %cst_69 = arith.constant dense<0.000000e+00> : vector<2x128xf32>
    %149 = tpu.matmul %100, %148, %cst_69 {dimension_numbers = #tpu.dot_dimension_numbers<[1], [0], [0], [1], [0, 0, 1, 1], [], []>} : vector<2x32xf32>, vector<32x128xf32>, vector<2x128xf32> -> vector<2x128xf32>
    %150 = arith.addf %143, %149 : vector<2x128xf32>
    %151 = arith.negf %150 : vector<2x128xf32>
    %152 = math.exp %151 : vector<2x128xf32>
    %cst_70 = arith.constant 1.000000e+00 : f32
    %153 = vector.broadcast %cst_70 : f32 to vector<2x128xf32>
    %154 = arith.addf %153, %152 : vector<2x128xf32>
    %155 = arith.divf %153, %154 : vector<2x128xf32>
    %156 = math.tanh %150 : vector<2x128xf32>
    %157 = vector.extract_strided_slice %155 {offsets = [0, 0], sizes = [2, 32], strides = [1, 1]} : vector<2x128xf32> to vector<2x32xf32>
    %158 = vector.extract_strided_slice %155 {offsets = [0, 32], sizes = [2, 32], strides = [1, 1]} : vector<2x128xf32> to vector<2x32xf32>
    %159 = vector.extract_strided_slice %156 {offsets = [0, 64], sizes = [2, 32], strides = [1, 1]} : vector<2x128xf32> to vector<2x32xf32>
    %160 = vector.extract_strided_slice %155 {offsets = [0, 96], sizes = [2, 32], strides = [1, 1]} : vector<2x128xf32> to vector<2x32xf32>
    %161 = arith.mulf %158, %98 : vector<2x32xf32>
    %162 = arith.mulf %157, %159 : vector<2x32xf32>
    %163 = arith.addf %161, %162 : vector<2x32xf32>
    %164 = math.tanh %163 : vector<2x32xf32>
    %165 = arith.mulf %160, %164 : vector<2x32xf32>
    %c0_71 = arith.constant 0 : index
    %c0_72 = arith.constant 0 : index
    %166 = vector.load %arg2[%c0_71, %c0_72] : memref<32x128xf32, #tpu.memory_space<vmem>>, vector<32x128xf32>
    %cst_73 = arith.constant dense<0.000000e+00> : vector<2x128xf32>
    %167 = tpu.matmul %118, %166, %cst_73 {dimension_numbers = #tpu.dot_dimension_numbers<[1], [0], [0], [1], [0, 0, 1, 1], [], []>} : vector<2x32xf32>, vector<32x128xf32>, vector<2x128xf32> -> vector<2x128xf32>
    %168 = arith.addf %147, %167 : vector<2x128xf32>
    %169 = arith.negf %168 : vector<2x128xf32>
    %170 = math.exp %169 : vector<2x128xf32>
    %cst_74 = arith.constant 1.000000e+00 : f32
    %171 = vector.broadcast %cst_74 : f32 to vector<2x128xf32>
    %172 = arith.addf %171, %170 : vector<2x128xf32>
    %173 = arith.divf %171, %172 : vector<2x128xf32>
    %174 = math.tanh %168 : vector<2x128xf32>
    %175 = vector.extract_strided_slice %173 {offsets = [0, 0], sizes = [2, 32], strides = [1, 1]} : vector<2x128xf32> to vector<2x32xf32>
    %176 = vector.extract_strided_slice %173 {offsets = [0, 32], sizes = [2, 32], strides = [1, 1]} : vector<2x128xf32> to vector<2x32xf32>
    %177 = vector.extract_strided_slice %174 {offsets = [0, 64], sizes = [2, 32], strides = [1, 1]} : vector<2x128xf32> to vector<2x32xf32>
    %178 = vector.extract_strided_slice %173 {offsets = [0, 96], sizes = [2, 32], strides = [1, 1]} : vector<2x128xf32> to vector<2x32xf32>
    %179 = arith.mulf %176, %116 : vector<2x32xf32>
    %180 = arith.mulf %175, %177 : vector<2x32xf32>
    %181 = arith.addf %179, %180 : vector<2x32xf32>
    %182 = math.tanh %181 : vector<2x32xf32>
    %183 = arith.mulf %178, %182 : vector<2x32xf32>
    %184 = arith.index_cast %c2_i32 : i32 to index
    %c0_75 = arith.constant 0 : index
    %c0_76 = arith.constant 0 : index
    %185 = vector.load %arg12[%184, %c0_75, %c0_76] : memref<8x2x256xf32, #tpu.memory_space<vmem>>, vector<1x2x256xf32>
    %186 = vector.shape_cast %185 : vector<1x2x256xf32> to vector<2x256xf32>
    %c0_77 = arith.constant 0 : index
    %c0_78 = arith.constant 0 : index
    %187 = vector.load %arg3[%c0_77, %c0_78] : memref<32x256xf32, #tpu.memory_space<vmem>>, vector<32x256xf32>
    %cst_79 = arith.constant dense<0.000000e+00> : vector<2x256xf32>
    %188 = tpu.matmul %165, %187, %cst_79 {dimension_numbers = #tpu.dot_dimension_numbers<[1], [0], [0], [1], [0, 0, 1, 1], [], []>} : vector<2x32xf32>, vector<32x256xf32>, vector<2x256xf32> -> vector<2x256xf32>
    %189 = arith.addf %186, %188 : vector<2x256xf32>
    %190 = arith.index_cast %c2_i32 : i32 to index
    %c0_80 = arith.constant 0 : index
    %c0_81 = arith.constant 0 : index
    %191 = vector.load %arg12[%190, %c0_80, %c0_81] : memref<8x2x256xf32, #tpu.memory_space<vmem>>, vector<1x2x256xf32>
    %192 = vector.shape_cast %191 : vector<1x2x256xf32> to vector<2x256xf32>
    %193 = vector.shape_cast %189 : vector<2x256xf32> to vector<1x2x256xf32>
    tpu.vector_store %arg12[%190, %c0_80, %c0_81], %193 {strides = array<i32>} : memref<8x2x256xf32, #tpu.memory_space<vmem>>, vector<1x2x256xf32>,
    %194 = arith.index_cast %139 : i32 to index
    %c0_82 = arith.constant 0 : index
    %c0_83 = arith.constant 0 : index
    %195 = vector.load %arg12[%194, %c0_82, %c0_83] : memref<8x2x256xf32, #tpu.memory_space<vmem>>, vector<1x2x256xf32>
    %196 = vector.shape_cast %195 : vector<1x2x256xf32> to vector<2x256xf32>
    %c0_84 = arith.constant 0 : index
    %c0_85 = arith.constant 0 : index
    %197 = vector.load %arg4[%c0_84, %c0_85] : memref<32x256xf32, #tpu.memory_space<vmem>>, vector<32x256xf32>
    %cst_86 = arith.constant dense<0.000000e+00> : vector<2x256xf32>
    %198 = tpu.matmul %183, %197, %cst_86 {dimension_numbers = #tpu.dot_dimension_numbers<[1], [0], [0], [1], [0, 0, 1, 1], [], []>} : vector<2x32xf32>, vector<32x256xf32>, vector<2x256xf32> -> vector<2x256xf32>
    %199 = arith.addf %196, %198 : vector<2x256xf32>
    %200 = arith.index_cast %139 : i32 to index
    %c0_87 = arith.constant 0 : index
    %c0_88 = arith.constant 0 : index
    %201 = vector.load %arg12[%200, %c0_87, %c0_88] : memref<8x2x256xf32, #tpu.memory_space<vmem>>, vector<1x2x256xf32>
    %202 = vector.shape_cast %201 : vector<1x2x256xf32> to vector<2x256xf32>
    %203 = vector.shape_cast %199 : vector<2x256xf32> to vector<1x2x256xf32>
    tpu.vector_store %arg12[%200, %c0_87, %c0_88], %203 {strides = array<i32>} : memref<8x2x256xf32, #tpu.memory_space<vmem>>, vector<1x2x256xf32>,
    %c3_i32 = arith.constant 3 : i32
    %c7_i32_89 = arith.constant 7 : i32
    %204 = arith.subi %c7_i32_89, %c3_i32 : i32
    %205 = arith.index_cast %c3_i32 : i32 to index
    %c0_90 = arith.constant 0 : index
    %c0_91 = arith.constant 0 : index
    %206 = vector.load %arg0[%205, %c0_90, %c0_91] : memref<8x2x256xf32, #tpu.memory_space<vmem>>, vector<1x2x256xf32>
    %207 = vector.shape_cast %206 : vector<1x2x256xf32> to vector<2x256xf32>
    %208 = vector.extract_strided_slice %207 {offsets = [0, 0], sizes = [2, 128], strides = [1, 1]} : vector<2x256xf32> to vector<2x128xf32>
    %209 = arith.index_cast %204 : i32 to index
    %c0_92 = arith.constant 0 : index
    %c0_93 = arith.constant 0 : index
    %210 = vector.load %arg0[%209, %c0_92, %c0_93] : memref<8x2x256xf32, #tpu.memory_space<vmem>>, vector<1x2x256xf32>
    %211 = vector.shape_cast %210 : vector<1x2x256xf32> to vector<2x256xf32>
    %212 = vector.extract_strided_slice %211 {offsets = [0, 128], sizes = [2, 128], strides = [1, 1]} : vector<2x256xf32> to vector<2x128xf32>
    %c0_94 = arith.constant 0 : index
    %c0_95 = arith.constant 0 : index
    %213 = vector.load %arg1[%c0_94, %c0_95] : memref<32x128xf32, #tpu.memory_space<vmem>>, vector<32x128xf32>
    %cst_96 = arith.constant dense<0.000000e+00> : vector<2x128xf32>
    %214 = tpu.matmul %165, %213, %cst_96 {dimension_numbers = #tpu.dot_dimension_numbers<[1], [0], [0], [1], [0, 0, 1, 1], [], []>} : vector<2x32xf32>, vector<32x128xf32>, vector<2x128xf32> -> vector<2x128xf32>
    %215 = arith.addf %208, %214 : vector<2x128xf32>
    %216 = arith.negf %215 : vector<2x128xf32>
    %217 = math.exp %216 : vector<2x128xf32>
    %cst_97 = arith.constant 1.000000e+00 : f32
    %218 = vector.broadcast %cst_97 : f32 to vector<2x128xf32>
    %219 = arith.addf %218, %217 : vector<2x128xf32>
    %220 = arith.divf %218, %219 : vector<2x128xf32>
    %221 = math.tanh %215 : vector<2x128xf32>
    %222 = vector.extract_strided_slice %220 {offsets = [0, 0], sizes = [2, 32], strides = [1, 1]} : vector<2x128xf32> to vector<2x32xf32>
    %223 = vector.extract_strided_slice %220 {offsets = [0, 32], sizes = [2, 32], strides = [1, 1]} : vector<2x128xf32> to vector<2x32xf32>
    %224 = vector.extract_strided_slice %221 {offsets = [0, 64], sizes = [2, 32], strides = [1, 1]} : vector<2x128xf32> to vector<2x32xf32>
    %225 = vector.extract_strided_slice %220 {offsets = [0, 96], sizes = [2, 32], strides = [1, 1]} : vector<2x128xf32> to vector<2x32xf32>
    %226 = arith.mulf %223, %163 : vector<2x32xf32>
    %227 = arith.mulf %222, %224 : vector<2x32xf32>
    %228 = arith.addf %226, %227 : vector<2x32xf32>
    %229 = math.tanh %228 : vector<2x32xf32>
    %230 = arith.mulf %225, %229 : vector<2x32xf32>
    %c0_98 = arith.constant 0 : index
    %c0_99 = arith.constant 0 : index
    %231 = vector.load %arg2[%c0_98, %c0_99] : memref<32x128xf32, #tpu.memory_space<vmem>>, vector<32x128xf32>
    %cst_100 = arith.constant dense<0.000000e+00> : vector<2x128xf32>
    %232 = tpu.matmul %183, %231, %cst_100 {dimension_numbers = #tpu.dot_dimension_numbers<[1], [0], [0], [1], [0, 0, 1, 1], [], []>} : vector<2x32xf32>, vector<32x128xf32>, vector<2x128xf32> -> vector<2x128xf32>
    %233 = arith.addf %212, %232 : vector<2x128xf32>
    %234 = arith.negf %233 : vector<2x128xf32>
    %235 = math.exp %234 : vector<2x128xf32>
    %cst_101 = arith.constant 1.000000e+00 : f32
    %236 = vector.broadcast %cst_101 : f32 to vector<2x128xf32>
    %237 = arith.addf %236, %235 : vector<2x128xf32>
    %238 = arith.divf %236, %237 : vector<2x128xf32>
    %239 = math.tanh %233 : vector<2x128xf32>
    %240 = vector.extract_strided_slice %238 {offsets = [0, 0], sizes = [2, 32], strides = [1, 1]} : vector<2x128xf32> to vector<2x32xf32>
    %241 = vector.extract_strided_slice %238 {offsets = [0, 32], sizes = [2, 32], strides = [1, 1]} : vector<2x128xf32> to vector<2x32xf32>
    %242 = vector.extract_strided_slice %239 {offsets = [0, 64], sizes = [2, 32], strides = [1, 1]} : vector<2x128xf32> to vector<2x32xf32>
    %243 = vector.extract_strided_slice %238 {offsets = [0, 96], sizes = [2, 32], strides = [1, 1]} : vector<2x128xf32> to vector<2x32xf32>
    %244 = arith.mulf %241, %181 : vector<2x32xf32>
    %245 = arith.mulf %240, %242 : vector<2x32xf32>
    %246 = arith.addf %244, %245 : vector<2x32xf32>
    %247 = math.tanh %246 : vector<2x32xf32>
    %248 = arith.mulf %243, %247 : vector<2x32xf32>
    %249 = arith.index_cast %c3_i32 : i32 to index
    %c0_102 = arith.constant 0 : index
    %c0_103 = arith.constant 0 : index
    %250 = vector.load %arg12[%249, %c0_102, %c0_103] : memref<8x2x256xf32, #tpu.memory_space<vmem>>, vector<1x2x256xf32>
    %251 = vector.shape_cast %250 : vector<1x2x256xf32> to vector<2x256xf32>
    %c0_104 = arith.constant 0 : index
    %c0_105 = arith.constant 0 : index
    %252 = vector.load %arg3[%c0_104, %c0_105] : memref<32x256xf32, #tpu.memory_space<vmem>>, vector<32x256xf32>
    %cst_106 = arith.constant dense<0.000000e+00> : vector<2x256xf32>
    %253 = tpu.matmul %230, %252, %cst_106 {dimension_numbers = #tpu.dot_dimension_numbers<[1], [0], [0], [1], [0, 0, 1, 1], [], []>} : vector<2x32xf32>, vector<32x256xf32>, vector<2x256xf32> -> vector<2x256xf32>
    %254 = arith.addf %251, %253 : vector<2x256xf32>
    %255 = arith.index_cast %c3_i32 : i32 to index
    %c0_107 = arith.constant 0 : index
    %c0_108 = arith.constant 0 : index
    %256 = vector.load %arg12[%255, %c0_107, %c0_108] : memref<8x2x256xf32, #tpu.memory_space<vmem>>, vector<1x2x256xf32>
    %257 = vector.shape_cast %256 : vector<1x2x256xf32> to vector<2x256xf32>
    %258 = vector.shape_cast %254 : vector<2x256xf32> to vector<1x2x256xf32>
    tpu.vector_store %arg12[%255, %c0_107, %c0_108], %258 {strides = array<i32>} : memref<8x2x256xf32, #tpu.memory_space<vmem>>, vector<1x2x256xf32>,
    %259 = arith.index_cast %204 : i32 to index
    %c0_109 = arith.constant 0 : index
    %c0_110 = arith.constant 0 : index
    %260 = vector.load %arg12[%259, %c0_109, %c0_110] : memref<8x2x256xf32, #tpu.memory_space<vmem>>, vector<1x2x256xf32>
    %261 = vector.shape_cast %260 : vector<1x2x256xf32> to vector<2x256xf32>
    %c0_111 = arith.constant 0 : index
    %c0_112 = arith.constant 0 : index
    %262 = vector.load %arg4[%c0_111, %c0_112] : memref<32x256xf32, #tpu.memory_space<vmem>>, vector<32x256xf32>
    %cst_113 = arith.constant dense<0.000000e+00> : vector<2x256xf32>
    %263 = tpu.matmul %248, %262, %cst_113 {dimension_numbers = #tpu.dot_dimension_numbers<[1], [0], [0], [1], [0, 0, 1, 1], [], []>} : vector<2x32xf32>, vector<32x256xf32>, vector<2x256xf32> -> vector<2x256xf32>
    %264 = arith.addf %261, %263 : vector<2x256xf32>
    %265 = arith.index_cast %204 : i32 to index
    %c0_114 = arith.constant 0 : index
    %c0_115 = arith.constant 0 : index
    %266 = vector.load %arg12[%265, %c0_114, %c0_115] : memref<8x2x256xf32, #tpu.memory_space<vmem>>, vector<1x2x256xf32>
    %267 = vector.shape_cast %266 : vector<1x2x256xf32> to vector<2x256xf32>
    %268 = vector.shape_cast %264 : vector<2x256xf32> to vector<1x2x256xf32>
    tpu.vector_store %arg12[%265, %c0_114, %c0_115], %268 {strides = array<i32>} : memref<8x2x256xf32, #tpu.memory_space<vmem>>, vector<1x2x256xf32>,
    %c4_i32 = arith.constant 4 : i32
    %c7_i32_116 = arith.constant 7 : i32
    %269 = arith.subi %c7_i32_116, %c4_i32 : i32
    %270 = arith.index_cast %c4_i32 : i32 to index
    %c0_117 = arith.constant 0 : index
    %c0_118 = arith.constant 0 : index
    %271 = vector.load %arg0[%270, %c0_117, %c0_118] : memref<8x2x256xf32, #tpu.memory_space<vmem>>, vector<1x2x256xf32>
    %272 = vector.shape_cast %271 : vector<1x2x256xf32> to vector<2x256xf32>
    %273 = vector.extract_strided_slice %272 {offsets = [0, 0], sizes = [2, 128], strides = [1, 1]} : vector<2x256xf32> to vector<2x128xf32>
    %274 = arith.index_cast %269 : i32 to index
    %c0_119 = arith.constant 0 : index
    %c0_120 = arith.constant 0 : index
    %275 = vector.load %arg0[%274, %c0_119, %c0_120] : memref<8x2x256xf32, #tpu.memory_space<vmem>>, vector<1x2x256xf32>
    %276 = vector.shape_cast %275 : vector<1x2x256xf32> to vector<2x256xf32>
    %277 = vector.extract_strided_slice %276 {offsets = [0, 128], sizes = [2, 128], strides = [1, 1]} : vector<2x256xf32> to vector<2x128xf32>
    %c0_121 = arith.constant 0 : index
    %c0_122 = arith.constant 0 : index
    %278 = vector.load %arg1[%c0_121, %c0_122] : memref<32x128xf32, #tpu.memory_space<vmem>>, vector<32x128xf32>
    %cst_123 = arith.constant dense<0.000000e+00> : vector<2x128xf32>
    %279 = tpu.matmul %230, %278, %cst_123 {dimension_numbers = #tpu.dot_dimension_numbers<[1], [0], [0], [1], [0, 0, 1, 1], [], []>} : vector<2x32xf32>, vector<32x128xf32>, vector<2x128xf32> -> vector<2x128xf32>
    %280 = arith.addf %273, %279 : vector<2x128xf32>
    %281 = arith.negf %280 : vector<2x128xf32>
    %282 = math.exp %281 : vector<2x128xf32>
    %cst_124 = arith.constant 1.000000e+00 : f32
    %283 = vector.broadcast %cst_124 : f32 to vector<2x128xf32>
    %284 = arith.addf %283, %282 : vector<2x128xf32>
    %285 = arith.divf %283, %284 : vector<2x128xf32>
    %286 = math.tanh %280 : vector<2x128xf32>
    %287 = vector.extract_strided_slice %285 {offsets = [0, 0], sizes = [2, 32], strides = [1, 1]} : vector<2x128xf32> to vector<2x32xf32>
    %288 = vector.extract_strided_slice %285 {offsets = [0, 32], sizes = [2, 32], strides = [1, 1]} : vector<2x128xf32> to vector<2x32xf32>
    %289 = vector.extract_strided_slice %286 {offsets = [0, 64], sizes = [2, 32], strides = [1, 1]} : vector<2x128xf32> to vector<2x32xf32>
    %290 = vector.extract_strided_slice %285 {offsets = [0, 96], sizes = [2, 32], strides = [1, 1]} : vector<2x128xf32> to vector<2x32xf32>
    %291 = arith.mulf %288, %228 : vector<2x32xf32>
    %292 = arith.mulf %287, %289 : vector<2x32xf32>
    %293 = arith.addf %291, %292 : vector<2x32xf32>
    %294 = math.tanh %293 : vector<2x32xf32>
    %295 = arith.mulf %290, %294 : vector<2x32xf32>
    %c0_125 = arith.constant 0 : index
    %c0_126 = arith.constant 0 : index
    %296 = vector.load %arg2[%c0_125, %c0_126] : memref<32x128xf32, #tpu.memory_space<vmem>>, vector<32x128xf32>
    %cst_127 = arith.constant dense<0.000000e+00> : vector<2x128xf32>
    %297 = tpu.matmul %248, %296, %cst_127 {dimension_numbers = #tpu.dot_dimension_numbers<[1], [0], [0], [1], [0, 0, 1, 1], [], []>} : vector<2x32xf32>, vector<32x128xf32>, vector<2x128xf32> -> vector<2x128xf32>
    %298 = arith.addf %277, %297 : vector<2x128xf32>
    %299 = arith.negf %298 : vector<2x128xf32>
    %300 = math.exp %299 : vector<2x128xf32>
    %cst_128 = arith.constant 1.000000e+00 : f32
    %301 = vector.broadcast %cst_128 : f32 to vector<2x128xf32>
    %302 = arith.addf %301, %300 : vector<2x128xf32>
    %303 = arith.divf %301, %302 : vector<2x128xf32>
    %304 = math.tanh %298 : vector<2x128xf32>
    %305 = vector.extract_strided_slice %303 {offsets = [0, 0], sizes = [2, 32], strides = [1, 1]} : vector<2x128xf32> to vector<2x32xf32>
    %306 = vector.extract_strided_slice %303 {offsets = [0, 32], sizes = [2, 32], strides = [1, 1]} : vector<2x128xf32> to vector<2x32xf32>
    %307 = vector.extract_strided_slice %304 {offsets = [0, 64], sizes = [2, 32], strides = [1, 1]} : vector<2x128xf32> to vector<2x32xf32>
    %308 = vector.extract_strided_slice %303 {offsets = [0, 96], sizes = [2, 32], strides = [1, 1]} : vector<2x128xf32> to vector<2x32xf32>
    %309 = arith.mulf %306, %246 : vector<2x32xf32>
    %310 = arith.mulf %305, %307 : vector<2x32xf32>
    %311 = arith.addf %309, %310 : vector<2x32xf32>
    %312 = math.tanh %311 : vector<2x32xf32>
    %313 = arith.mulf %308, %312 : vector<2x32xf32>
    %314 = arith.index_cast %c4_i32 : i32 to index
    %c0_129 = arith.constant 0 : index
    %c0_130 = arith.constant 0 : index
    %315 = vector.load %arg12[%314, %c0_129, %c0_130] : memref<8x2x256xf32, #tpu.memory_space<vmem>>, vector<1x2x256xf32>
    %316 = vector.shape_cast %315 : vector<1x2x256xf32> to vector<2x256xf32>
    %c0_131 = arith.constant 0 : index
    %c0_132 = arith.constant 0 : index
    %317 = vector.load %arg3[%c0_131, %c0_132] : memref<32x256xf32, #tpu.memory_space<vmem>>, vector<32x256xf32>
    %cst_133 = arith.constant dense<0.000000e+00> : vector<2x256xf32>
    %318 = tpu.matmul %295, %317, %cst_133 {dimension_numbers = #tpu.dot_dimension_numbers<[1], [0], [0], [1], [0, 0, 1, 1], [], []>} : vector<2x32xf32>, vector<32x256xf32>, vector<2x256xf32> -> vector<2x256xf32>
    %319 = arith.addf %316, %318 : vector<2x256xf32>
    %320 = arith.index_cast %c4_i32 : i32 to index
    %c0_134 = arith.constant 0 : index
    %c0_135 = arith.constant 0 : index
    %321 = vector.load %arg12[%320, %c0_134, %c0_135] : memref<8x2x256xf32, #tpu.memory_space<vmem>>, vector<1x2x256xf32>
    %322 = vector.shape_cast %321 : vector<1x2x256xf32> to vector<2x256xf32>
    %323 = vector.shape_cast %319 : vector<2x256xf32> to vector<1x2x256xf32>
    tpu.vector_store %arg12[%320, %c0_134, %c0_135], %323 {strides = array<i32>} : memref<8x2x256xf32, #tpu.memory_space<vmem>>, vector<1x2x256xf32>,
    %324 = arith.index_cast %269 : i32 to index
    %c0_136 = arith.constant 0 : index
    %c0_137 = arith.constant 0 : index
    %325 = vector.load %arg12[%324, %c0_136, %c0_137] : memref<8x2x256xf32, #tpu.memory_space<vmem>>, vector<1x2x256xf32>
    %326 = vector.shape_cast %325 : vector<1x2x256xf32> to vector<2x256xf32>
    %c0_138 = arith.constant 0 : index
    %c0_139 = arith.constant 0 : index
    %327 = vector.load %arg4[%c0_138, %c0_139] : memref<32x256xf32, #tpu.memory_space<vmem>>, vector<32x256xf32>
    %cst_140 = arith.constant dense<0.000000e+00> : vector<2x256xf32>
    %328 = tpu.matmul %313, %327, %cst_140 {dimension_numbers = #tpu.dot_dimension_numbers<[1], [0], [0], [1], [0, 0, 1, 1], [], []>} : vector<2x32xf32>, vector<32x256xf32>, vector<2x256xf32> -> vector<2x256xf32>
    %329 = arith.addf %326, %328 : vector<2x256xf32>
    %330 = arith.index_cast %269 : i32 to index
    %c0_141 = arith.constant 0 : index
    %c0_142 = arith.constant 0 : index
    %331 = vector.load %arg12[%330, %c0_141, %c0_142] : memref<8x2x256xf32, #tpu.memory_space<vmem>>, vector<1x2x256xf32>
    %332 = vector.shape_cast %331 : vector<1x2x256xf32> to vector<2x256xf32>
    %333 = vector.shape_cast %329 : vector<2x256xf32> to vector<1x2x256xf32>
    tpu.vector_store %arg12[%330, %c0_141, %c0_142], %333 {strides = array<i32>} : memref<8x2x256xf32, #tpu.memory_space<vmem>>, vector<1x2x256xf32>,
    %c5_i32 = arith.constant 5 : i32
    %c7_i32_143 = arith.constant 7 : i32
    %334 = arith.subi %c7_i32_143, %c5_i32 : i32
    %335 = arith.index_cast %c5_i32 : i32 to index
    %c0_144 = arith.constant 0 : index
    %c0_145 = arith.constant 0 : index
    %336 = vector.load %arg0[%335, %c0_144, %c0_145] : memref<8x2x256xf32, #tpu.memory_space<vmem>>, vector<1x2x256xf32>
    %337 = vector.shape_cast %336 : vector<1x2x256xf32> to vector<2x256xf32>
    %338 = vector.extract_strided_slice %337 {offsets = [0, 0], sizes = [2, 128], strides = [1, 1]} : vector<2x256xf32> to vector<2x128xf32>
    %339 = arith.index_cast %334 : i32 to index
    %c0_146 = arith.constant 0 : index
    %c0_147 = arith.constant 0 : index
    %340 = vector.load %arg0[%339, %c0_146, %c0_147] : memref<8x2x256xf32, #tpu.memory_space<vmem>>, vector<1x2x256xf32>
    %341 = vector.shape_cast %340 : vector<1x2x256xf32> to vector<2x256xf32>
    %342 = vector.extract_strided_slice %341 {offsets = [0, 128], sizes = [2, 128], strides = [1, 1]} : vector<2x256xf32> to vector<2x128xf32>
    %c0_148 = arith.constant 0 : index
    %c0_149 = arith.constant 0 : index
    %343 = vector.load %arg1[%c0_148, %c0_149] : memref<32x128xf32, #tpu.memory_space<vmem>>, vector<32x128xf32>
    %cst_150 = arith.constant dense<0.000000e+00> : vector<2x128xf32>
    %344 = tpu.matmul %295, %343, %cst_150 {dimension_numbers = #tpu.dot_dimension_numbers<[1], [0], [0], [1], [0, 0, 1, 1], [], []>} : vector<2x32xf32>, vector<32x128xf32>, vector<2x128xf32> -> vector<2x128xf32>
    %345 = arith.addf %338, %344 : vector<2x128xf32>
    %346 = arith.negf %345 : vector<2x128xf32>
    %347 = math.exp %346 : vector<2x128xf32>
    %cst_151 = arith.constant 1.000000e+00 : f32
    %348 = vector.broadcast %cst_151 : f32 to vector<2x128xf32>
    %349 = arith.addf %348, %347 : vector<2x128xf32>
    %350 = arith.divf %348, %349 : vector<2x128xf32>
    %351 = math.tanh %345 : vector<2x128xf32>
    %352 = vector.extract_strided_slice %350 {offsets = [0, 0], sizes = [2, 32], strides = [1, 1]} : vector<2x128xf32> to vector<2x32xf32>
    %353 = vector.extract_strided_slice %350 {offsets = [0, 32], sizes = [2, 32], strides = [1, 1]} : vector<2x128xf32> to vector<2x32xf32>
    %354 = vector.extract_strided_slice %351 {offsets = [0, 64], sizes = [2, 32], strides = [1, 1]} : vector<2x128xf32> to vector<2x32xf32>
    %355 = vector.extract_strided_slice %350 {offsets = [0, 96], sizes = [2, 32], strides = [1, 1]} : vector<2x128xf32> to vector<2x32xf32>
    %356 = arith.mulf %353, %293 : vector<2x32xf32>
    %357 = arith.mulf %352, %354 : vector<2x32xf32>
    %358 = arith.addf %356, %357 : vector<2x32xf32>
    %359 = math.tanh %358 : vector<2x32xf32>
    %360 = arith.mulf %355, %359 : vector<2x32xf32>
    %c0_152 = arith.constant 0 : index
    %c0_153 = arith.constant 0 : index
    %361 = vector.load %arg2[%c0_152, %c0_153] : memref<32x128xf32, #tpu.memory_space<vmem>>, vector<32x128xf32>
    %cst_154 = arith.constant dense<0.000000e+00> : vector<2x128xf32>
    %362 = tpu.matmul %313, %361, %cst_154 {dimension_numbers = #tpu.dot_dimension_numbers<[1], [0], [0], [1], [0, 0, 1, 1], [], []>} : vector<2x32xf32>, vector<32x128xf32>, vector<2x128xf32> -> vector<2x128xf32>
    %363 = arith.addf %342, %362 : vector<2x128xf32>
    %364 = arith.negf %363 : vector<2x128xf32>
    %365 = math.exp %364 : vector<2x128xf32>
    %cst_155 = arith.constant 1.000000e+00 : f32
    %366 = vector.broadcast %cst_155 : f32 to vector<2x128xf32>
    %367 = arith.addf %366, %365 : vector<2x128xf32>
    %368 = arith.divf %366, %367 : vector<2x128xf32>
    %369 = math.tanh %363 : vector<2x128xf32>
    %370 = vector.extract_strided_slice %368 {offsets = [0, 0], sizes = [2, 32], strides = [1, 1]} : vector<2x128xf32> to vector<2x32xf32>
    %371 = vector.extract_strided_slice %368 {offsets = [0, 32], sizes = [2, 32], strides = [1, 1]} : vector<2x128xf32> to vector<2x32xf32>
    %372 = vector.extract_strided_slice %369 {offsets = [0, 64], sizes = [2, 32], strides = [1, 1]} : vector<2x128xf32> to vector<2x32xf32>
    %373 = vector.extract_strided_slice %368 {offsets = [0, 96], sizes = [2, 32], strides = [1, 1]} : vector<2x128xf32> to vector<2x32xf32>
    %374 = arith.mulf %371, %311 : vector<2x32xf32>
    %375 = arith.mulf %370, %372 : vector<2x32xf32>
    %376 = arith.addf %374, %375 : vector<2x32xf32>
    %377 = math.tanh %376 : vector<2x32xf32>
    %378 = arith.mulf %373, %377 : vector<2x32xf32>
    %379 = arith.index_cast %c5_i32 : i32 to index
    %c0_156 = arith.constant 0 : index
    %c0_157 = arith.constant 0 : index
    %380 = vector.load %arg12[%379, %c0_156, %c0_157] : memref<8x2x256xf32, #tpu.memory_space<vmem>>, vector<1x2x256xf32>
    %381 = vector.shape_cast %380 : vector<1x2x256xf32> to vector<2x256xf32>
    %c0_158 = arith.constant 0 : index
    %c0_159 = arith.constant 0 : index
    %382 = vector.load %arg3[%c0_158, %c0_159] : memref<32x256xf32, #tpu.memory_space<vmem>>, vector<32x256xf32>
    %cst_160 = arith.constant dense<0.000000e+00> : vector<2x256xf32>
    %383 = tpu.matmul %360, %382, %cst_160 {dimension_numbers = #tpu.dot_dimension_numbers<[1], [0], [0], [1], [0, 0, 1, 1], [], []>} : vector<2x32xf32>, vector<32x256xf32>, vector<2x256xf32> -> vector<2x256xf32>
    %384 = arith.addf %381, %383 : vector<2x256xf32>
    %385 = arith.index_cast %c5_i32 : i32 to index
    %c0_161 = arith.constant 0 : index
    %c0_162 = arith.constant 0 : index
    %386 = vector.load %arg12[%385, %c0_161, %c0_162] : memref<8x2x256xf32, #tpu.memory_space<vmem>>, vector<1x2x256xf32>
    %387 = vector.shape_cast %386 : vector<1x2x256xf32> to vector<2x256xf32>
    %388 = vector.shape_cast %384 : vector<2x256xf32> to vector<1x2x256xf32>
    tpu.vector_store %arg12[%385, %c0_161, %c0_162], %388 {strides = array<i32>} : memref<8x2x256xf32, #tpu.memory_space<vmem>>, vector<1x2x256xf32>,
    %389 = arith.index_cast %334 : i32 to index
    %c0_163 = arith.constant 0 : index
    %c0_164 = arith.constant 0 : index
    %390 = vector.load %arg12[%389, %c0_163, %c0_164] : memref<8x2x256xf32, #tpu.memory_space<vmem>>, vector<1x2x256xf32>
    %391 = vector.shape_cast %390 : vector<1x2x256xf32> to vector<2x256xf32>
    %c0_165 = arith.constant 0 : index
    %c0_166 = arith.constant 0 : index
    %392 = vector.load %arg4[%c0_165, %c0_166] : memref<32x256xf32, #tpu.memory_space<vmem>>, vector<32x256xf32>
    %cst_167 = arith.constant dense<0.000000e+00> : vector<2x256xf32>
    %393 = tpu.matmul %378, %392, %cst_167 {dimension_numbers = #tpu.dot_dimension_numbers<[1], [0], [0], [1], [0, 0, 1, 1], [], []>} : vector<2x32xf32>, vector<32x256xf32>, vector<2x256xf32> -> vector<2x256xf32>
    %394 = arith.addf %391, %393 : vector<2x256xf32>
    %395 = arith.index_cast %334 : i32 to index
    %c0_168 = arith.constant 0 : index
    %c0_169 = arith.constant 0 : index
    %396 = vector.load %arg12[%395, %c0_168, %c0_169] : memref<8x2x256xf32, #tpu.memory_space<vmem>>, vector<1x2x256xf32>
    %397 = vector.shape_cast %396 : vector<1x2x256xf32> to vector<2x256xf32>
    %398 = vector.shape_cast %394 : vector<2x256xf32> to vector<1x2x256xf32>
    tpu.vector_store %arg12[%395, %c0_168, %c0_169], %398 {strides = array<i32>} : memref<8x2x256xf32, #tpu.memory_space<vmem>>, vector<1x2x256xf32>,
    %c6_i32 = arith.constant 6 : i32
    %c7_i32_170 = arith.constant 7 : i32
    %399 = arith.subi %c7_i32_170, %c6_i32 : i32
    %400 = arith.index_cast %c6_i32 : i32 to index
    %c0_171 = arith.constant 0 : index
    %c0_172 = arith.constant 0 : index
    %401 = vector.load %arg0[%400, %c0_171, %c0_172] : memref<8x2x256xf32, #tpu.memory_space<vmem>>, vector<1x2x256xf32>
    %402 = vector.shape_cast %401 : vector<1x2x256xf32> to vector<2x256xf32>
    %403 = vector.extract_strided_slice %402 {offsets = [0, 0], sizes = [2, 128], strides = [1, 1]} : vector<2x256xf32> to vector<2x128xf32>
    %404 = arith.index_cast %399 : i32 to index
    %c0_173 = arith.constant 0 : index
    %c0_174 = arith.constant 0 : index
    %405 = vector.load %arg0[%404, %c0_173, %c0_174] : memref<8x2x256xf32, #tpu.memory_space<vmem>>, vector<1x2x256xf32>
    %406 = vector.shape_cast %405 : vector<1x2x256xf32> to vector<2x256xf32>
    %407 = vector.extract_strided_slice %406 {offsets = [0, 128], sizes = [2, 128], strides = [1, 1]} : vector<2x256xf32> to vector<2x128xf32>
    %c0_175 = arith.constant 0 : index
    %c0_176 = arith.constant 0 : index
    %408 = vector.load %arg1[%c0_175, %c0_176] : memref<32x128xf32, #tpu.memory_space<vmem>>, vector<32x128xf32>
    %cst_177 = arith.constant dense<0.000000e+00> : vector<2x128xf32>
    %409 = tpu.matmul %360, %408, %cst_177 {dimension_numbers = #tpu.dot_dimension_numbers<[1], [0], [0], [1], [0, 0, 1, 1], [], []>} : vector<2x32xf32>, vector<32x128xf32>, vector<2x128xf32> -> vector<2x128xf32>
    %410 = arith.addf %403, %409 : vector<2x128xf32>
    %411 = arith.negf %410 : vector<2x128xf32>
    %412 = math.exp %411 : vector<2x128xf32>
    %cst_178 = arith.constant 1.000000e+00 : f32
    %413 = vector.broadcast %cst_178 : f32 to vector<2x128xf32>
    %414 = arith.addf %413, %412 : vector<2x128xf32>
    %415 = arith.divf %413, %414 : vector<2x128xf32>
    %416 = math.tanh %410 : vector<2x128xf32>
    %417 = vector.extract_strided_slice %415 {offsets = [0, 0], sizes = [2, 32], strides = [1, 1]} : vector<2x128xf32> to vector<2x32xf32>
    %418 = vector.extract_strided_slice %415 {offsets = [0, 32], sizes = [2, 32], strides = [1, 1]} : vector<2x128xf32> to vector<2x32xf32>
    %419 = vector.extract_strided_slice %416 {offsets = [0, 64], sizes = [2, 32], strides = [1, 1]} : vector<2x128xf32> to vector<2x32xf32>
    %420 = vector.extract_strided_slice %415 {offsets = [0, 96], sizes = [2, 32], strides = [1, 1]} : vector<2x128xf32> to vector<2x32xf32>
    %421 = arith.mulf %418, %358 : vector<2x32xf32>
    %422 = arith.mulf %417, %419 : vector<2x32xf32>
    %423 = arith.addf %421, %422 : vector<2x32xf32>
    %424 = math.tanh %423 : vector<2x32xf32>
    %425 = arith.mulf %420, %424 : vector<2x32xf32>
    %c0_179 = arith.constant 0 : index
    %c0_180 = arith.constant 0 : index
    %426 = vector.load %arg2[%c0_179, %c0_180] : memref<32x128xf32, #tpu.memory_space<vmem>>, vector<32x128xf32>
    %cst_181 = arith.constant dense<0.000000e+00> : vector<2x128xf32>
    %427 = tpu.matmul %378, %426, %cst_181 {dimension_numbers = #tpu.dot_dimension_numbers<[1], [0], [0], [1], [0, 0, 1, 1], [], []>} : vector<2x32xf32>, vector<32x128xf32>, vector<2x128xf32> -> vector<2x128xf32>
    %428 = arith.addf %407, %427 : vector<2x128xf32>
    %429 = arith.negf %428 : vector<2x128xf32>
    %430 = math.exp %429 : vector<2x128xf32>
    %cst_182 = arith.constant 1.000000e+00 : f32
    %431 = vector.broadcast %cst_182 : f32 to vector<2x128xf32>
    %432 = arith.addf %431, %430 : vector<2x128xf32>
    %433 = arith.divf %431, %432 : vector<2x128xf32>
    %434 = math.tanh %428 : vector<2x128xf32>
    %435 = vector.extract_strided_slice %433 {offsets = [0, 0], sizes = [2, 32], strides = [1, 1]} : vector<2x128xf32> to vector<2x32xf32>
    %436 = vector.extract_strided_slice %433 {offsets = [0, 32], sizes = [2, 32], strides = [1, 1]} : vector<2x128xf32> to vector<2x32xf32>
    %437 = vector.extract_strided_slice %434 {offsets = [0, 64], sizes = [2, 32], strides = [1, 1]} : vector<2x128xf32> to vector<2x32xf32>
    %438 = vector.extract_strided_slice %433 {offsets = [0, 96], sizes = [2, 32], strides = [1, 1]} : vector<2x128xf32> to vector<2x32xf32>
    %439 = arith.mulf %436, %376 : vector<2x32xf32>
    %440 = arith.mulf %435, %437 : vector<2x32xf32>
    %441 = arith.addf %439, %440 : vector<2x32xf32>
    %442 = math.tanh %441 : vector<2x32xf32>
    %443 = arith.mulf %438, %442 : vector<2x32xf32>
    %444 = arith.index_cast %c6_i32 : i32 to index
    %c0_183 = arith.constant 0 : index
    %c0_184 = arith.constant 0 : index
    %445 = vector.load %arg12[%444, %c0_183, %c0_184] : memref<8x2x256xf32, #tpu.memory_space<vmem>>, vector<1x2x256xf32>
    %446 = vector.shape_cast %445 : vector<1x2x256xf32> to vector<2x256xf32>
    %c0_185 = arith.constant 0 : index
    %c0_186 = arith.constant 0 : index
    %447 = vector.load %arg3[%c0_185, %c0_186] : memref<32x256xf32, #tpu.memory_space<vmem>>, vector<32x256xf32>
    %cst_187 = arith.constant dense<0.000000e+00> : vector<2x256xf32>
    %448 = tpu.matmul %425, %447, %cst_187 {dimension_numbers = #tpu.dot_dimension_numbers<[1], [0], [0], [1], [0, 0, 1, 1], [], []>} : vector<2x32xf32>, vector<32x256xf32>, vector<2x256xf32> -> vector<2x256xf32>
    %449 = arith.addf %446, %448 : vector<2x256xf32>
    %450 = arith.index_cast %c6_i32 : i32 to index
    %c0_188 = arith.constant 0 : index
    %c0_189 = arith.constant 0 : index
    %451 = vector.load %arg12[%450, %c0_188, %c0_189] : memref<8x2x256xf32, #tpu.memory_space<vmem>>, vector<1x2x256xf32>
    %452 = vector.shape_cast %451 : vector<1x2x256xf32> to vector<2x256xf32>
    %453 = vector.shape_cast %449 : vector<2x256xf32> to vector<1x2x256xf32>
    tpu.vector_store %arg12[%450, %c0_188, %c0_189], %453 {strides = array<i32>} : memref<8x2x256xf32, #tpu.memory_space<vmem>>, vector<1x2x256xf32>,
    %454 = arith.index_cast %399 : i32 to index
    %c0_190 = arith.constant 0 : index
    %c0_191 = arith.constant 0 : index
    %455 = vector.load %arg12[%454, %c0_190, %c0_191] : memref<8x2x256xf32, #tpu.memory_space<vmem>>, vector<1x2x256xf32>
    %456 = vector.shape_cast %455 : vector<1x2x256xf32> to vector<2x256xf32>
    %c0_192 = arith.constant 0 : index
    %c0_193 = arith.constant 0 : index
    %457 = vector.load %arg4[%c0_192, %c0_193] : memref<32x256xf32, #tpu.memory_space<vmem>>, vector<32x256xf32>
    %cst_194 = arith.constant dense<0.000000e+00> : vector<2x256xf32>
    %458 = tpu.matmul %443, %457, %cst_194 {dimension_numbers = #tpu.dot_dimension_numbers<[1], [0], [0], [1], [0, 0, 1, 1], [], []>} : vector<2x32xf32>, vector<32x256xf32>, vector<2x256xf32> -> vector<2x256xf32>
    %459 = arith.addf %456, %458 : vector<2x256xf32>
    %460 = arith.index_cast %399 : i32 to index
    %c0_195 = arith.constant 0 : index
    %c0_196 = arith.constant 0 : index
    %461 = vector.load %arg12[%460, %c0_195, %c0_196] : memref<8x2x256xf32, #tpu.memory_space<vmem>>, vector<1x2x256xf32>
    %462 = vector.shape_cast %461 : vector<1x2x256xf32> to vector<2x256xf32>
    %463 = vector.shape_cast %459 : vector<2x256xf32> to vector<1x2x256xf32>
    tpu.vector_store %arg12[%460, %c0_195, %c0_196], %463 {strides = array<i32>} : memref<8x2x256xf32, #tpu.memory_space<vmem>>, vector<1x2x256xf32>,
    %c7_i32_197 = arith.constant 7 : i32
    %c7_i32_198 = arith.constant 7 : i32
    %464 = arith.subi %c7_i32_198, %c7_i32_197 : i32
    %465 = arith.index_cast %c7_i32_197 : i32 to index
    %c0_199 = arith.constant 0 : index
    %c0_200 = arith.constant 0 : index
    %466 = vector.load %arg0[%465, %c0_199, %c0_200] : memref<8x2x256xf32, #tpu.memory_space<vmem>>, vector<1x2x256xf32>
    %467 = vector.shape_cast %466 : vector<1x2x256xf32> to vector<2x256xf32>
    %468 = vector.extract_strided_slice %467 {offsets = [0, 0], sizes = [2, 128], strides = [1, 1]} : vector<2x256xf32> to vector<2x128xf32>
    %469 = arith.index_cast %464 : i32 to index
    %c0_201 = arith.constant 0 : index
    %c0_202 = arith.constant 0 : index
    %470 = vector.load %arg0[%469, %c0_201, %c0_202] : memref<8x2x256xf32, #tpu.memory_space<vmem>>, vector<1x2x256xf32>
    %471 = vector.shape_cast %470 : vector<1x2x256xf32> to vector<2x256xf32>
    %472 = vector.extract_strided_slice %471 {offsets = [0, 128], sizes = [2, 128], strides = [1, 1]} : vector<2x256xf32> to vector<2x128xf32>
    %c0_203 = arith.constant 0 : index
    %c0_204 = arith.constant 0 : index
    %473 = vector.load %arg1[%c0_203, %c0_204] : memref<32x128xf32, #tpu.memory_space<vmem>>, vector<32x128xf32>
    %cst_205 = arith.constant dense<0.000000e+00> : vector<2x128xf32>
    %474 = tpu.matmul %425, %473, %cst_205 {dimension_numbers = #tpu.dot_dimension_numbers<[1], [0], [0], [1], [0, 0, 1, 1], [], []>} : vector<2x32xf32>, vector<32x128xf32>, vector<2x128xf32> -> vector<2x128xf32>
    %475 = arith.addf %468, %474 : vector<2x128xf32>
    %476 = arith.negf %475 : vector<2x128xf32>
    %477 = math.exp %476 : vector<2x128xf32>
    %cst_206 = arith.constant 1.000000e+00 : f32
    %478 = vector.broadcast %cst_206 : f32 to vector<2x128xf32>
    %479 = arith.addf %478, %477 : vector<2x128xf32>
    %480 = arith.divf %478, %479 : vector<2x128xf32>
    %481 = math.tanh %475 : vector<2x128xf32>
    %482 = vector.extract_strided_slice %480 {offsets = [0, 0], sizes = [2, 32], strides = [1, 1]} : vector<2x128xf32> to vector<2x32xf32>
    %483 = vector.extract_strided_slice %480 {offsets = [0, 32], sizes = [2, 32], strides = [1, 1]} : vector<2x128xf32> to vector<2x32xf32>
    %484 = vector.extract_strided_slice %481 {offsets = [0, 64], sizes = [2, 32], strides = [1, 1]} : vector<2x128xf32> to vector<2x32xf32>
    %485 = vector.extract_strided_slice %480 {offsets = [0, 96], sizes = [2, 32], strides = [1, 1]} : vector<2x128xf32> to vector<2x32xf32>
    %486 = arith.mulf %483, %423 : vector<2x32xf32>
    %487 = arith.mulf %482, %484 : vector<2x32xf32>
    %488 = arith.addf %486, %487 : vector<2x32xf32>
    %489 = math.tanh %488 : vector<2x32xf32>
    %490 = arith.mulf %485, %489 : vector<2x32xf32>
    %c0_207 = arith.constant 0 : index
    %c0_208 = arith.constant 0 : index
    %491 = vector.load %arg2[%c0_207, %c0_208] : memref<32x128xf32, #tpu.memory_space<vmem>>, vector<32x128xf32>
    %cst_209 = arith.constant dense<0.000000e+00> : vector<2x128xf32>
    %492 = tpu.matmul %443, %491, %cst_209 {dimension_numbers = #tpu.dot_dimension_numbers<[1], [0], [0], [1], [0, 0, 1, 1], [], []>} : vector<2x32xf32>, vector<32x128xf32>, vector<2x128xf32> -> vector<2x128xf32>
    %493 = arith.addf %472, %492 : vector<2x128xf32>
    %494 = arith.negf %493 : vector<2x128xf32>
    %495 = math.exp %494 : vector<2x128xf32>
    %cst_210 = arith.constant 1.000000e+00 : f32
    %496 = vector.broadcast %cst_210 : f32 to vector<2x128xf32>
    %497 = arith.addf %496, %495 : vector<2x128xf32>
    %498 = arith.divf %496, %497 : vector<2x128xf32>
    %499 = math.tanh %493 : vector<2x128xf32>
    %500 = vector.extract_strided_slice %498 {offsets = [0, 0], sizes = [2, 32], strides = [1, 1]} : vector<2x128xf32> to vector<2x32xf32>
    %501 = vector.extract_strided_slice %498 {offsets = [0, 32], sizes = [2, 32], strides = [1, 1]} : vector<2x128xf32> to vector<2x32xf32>
    %502 = vector.extract_strided_slice %499 {offsets = [0, 64], sizes = [2, 32], strides = [1, 1]} : vector<2x128xf32> to vector<2x32xf32>
    %503 = vector.extract_strided_slice %498 {offsets = [0, 96], sizes = [2, 32], strides = [1, 1]} : vector<2x128xf32> to vector<2x32xf32>
    %504 = arith.mulf %501, %441 : vector<2x32xf32>
    %505 = arith.mulf %500, %502 : vector<2x32xf32>
    %506 = arith.addf %504, %505 : vector<2x32xf32>
    %507 = math.tanh %506 : vector<2x32xf32>
    %508 = arith.mulf %503, %507 : vector<2x32xf32>
    %509 = arith.index_cast %c7_i32_197 : i32 to index
    %c0_211 = arith.constant 0 : index
    %c0_212 = arith.constant 0 : index
    %510 = vector.load %arg12[%509, %c0_211, %c0_212] : memref<8x2x256xf32, #tpu.memory_space<vmem>>, vector<1x2x256xf32>
    %511 = vector.shape_cast %510 : vector<1x2x256xf32> to vector<2x256xf32>
    %c0_213 = arith.constant 0 : index
    %c0_214 = arith.constant 0 : index
    %512 = vector.load %arg3[%c0_213, %c0_214] : memref<32x256xf32, #tpu.memory_space<vmem>>, vector<32x256xf32>
    %cst_215 = arith.constant dense<0.000000e+00> : vector<2x256xf32>
    %513 = tpu.matmul %490, %512, %cst_215 {dimension_numbers = #tpu.dot_dimension_numbers<[1], [0], [0], [1], [0, 0, 1, 1], [], []>} : vector<2x32xf32>, vector<32x256xf32>, vector<2x256xf32> -> vector<2x256xf32>
    %514 = arith.addf %511, %513 : vector<2x256xf32>
    %515 = arith.index_cast %c7_i32_197 : i32 to index
    %c0_216 = arith.constant 0 : index
    %c0_217 = arith.constant 0 : index
    %516 = vector.load %arg12[%515, %c0_216, %c0_217] : memref<8x2x256xf32, #tpu.memory_space<vmem>>, vector<1x2x256xf32>
    %517 = vector.shape_cast %516 : vector<1x2x256xf32> to vector<2x256xf32>
    %518 = vector.shape_cast %514 : vector<2x256xf32> to vector<1x2x256xf32>
    tpu.vector_store %arg12[%515, %c0_216, %c0_217], %518 {strides = array<i32>} : memref<8x2x256xf32, #tpu.memory_space<vmem>>, vector<1x2x256xf32>,
    %519 = arith.index_cast %464 : i32 to index
    %c0_218 = arith.constant 0 : index
    %c0_219 = arith.constant 0 : index
    %520 = vector.load %arg12[%519, %c0_218, %c0_219] : memref<8x2x256xf32, #tpu.memory_space<vmem>>, vector<1x2x256xf32>
    %521 = vector.shape_cast %520 : vector<1x2x256xf32> to vector<2x256xf32>
    %c0_220 = arith.constant 0 : index
    %c0_221 = arith.constant 0 : index
    %522 = vector.load %arg4[%c0_220, %c0_221] : memref<32x256xf32, #tpu.memory_space<vmem>>, vector<32x256xf32>
    %cst_222 = arith.constant dense<0.000000e+00> : vector<2x256xf32>
    %523 = tpu.matmul %508, %522, %cst_222 {dimension_numbers = #tpu.dot_dimension_numbers<[1], [0], [0], [1], [0, 0, 1, 1], [], []>} : vector<2x32xf32>, vector<32x256xf32>, vector<2x256xf32> -> vector<2x256xf32>
    %524 = arith.addf %521, %523 : vector<2x256xf32>
    %525 = arith.index_cast %464 : i32 to index
    %c0_223 = arith.constant 0 : index
    %c0_224 = arith.constant 0 : index
    %526 = vector.load %arg12[%525, %c0_223, %c0_224] : memref<8x2x256xf32, #tpu.memory_space<vmem>>, vector<1x2x256xf32>
    %527 = vector.shape_cast %526 : vector<1x2x256xf32> to vector<2x256xf32>
    %528 = vector.shape_cast %524 : vector<2x256xf32> to vector<1x2x256xf32>
    tpu.vector_store %arg12[%525, %c0_223, %c0_224], %528 {strides = array<i32>} : memref<8x2x256xf32, #tpu.memory_space<vmem>>, vector<1x2x256xf32>,
    %c8_i32 = arith.constant 8 : i32
    %c0_i32_225 = arith.constant 0 : i32
    %c7_i32_226 = arith.constant 7 : i32
    %529 = arith.subi %c7_i32_226, %c0_i32_225 : i32
    %530 = arith.index_cast %c0_i32_225 : i32 to index
    %c0_227 = arith.constant 0 : index
    %c0_228 = arith.constant 0 : index
    %531 = vector.load %arg12[%530, %c0_227, %c0_228] : memref<8x2x256xf32, #tpu.memory_space<vmem>>, vector<1x2x256xf32>
    %532 = vector.shape_cast %531 : vector<1x2x256xf32> to vector<2x256xf32>
    %533 = vector.extract_strided_slice %532 {offsets = [0, 0], sizes = [2, 128], strides = [1, 1]} : vector<2x256xf32> to vector<2x128xf32>
    %534 = arith.index_cast %529 : i32 to index
    %c0_229 = arith.constant 0 : index
    %c0_230 = arith.constant 0 : index
    %535 = vector.load %arg12[%534, %c0_229, %c0_230] : memref<8x2x256xf32, #tpu.memory_space<vmem>>, vector<1x2x256xf32>
    %536 = vector.shape_cast %535 : vector<1x2x256xf32> to vector<2x256xf32>
    %537 = vector.extract_strided_slice %536 {offsets = [0, 128], sizes = [2, 128], strides = [1, 1]} : vector<2x256xf32> to vector<2x128xf32>
    %c0_231 = arith.constant 0 : index
    %c0_232 = arith.constant 0 : index
    %538 = vector.load %arg6[%c0_231, %c0_232] : memref<32x128xf32, #tpu.memory_space<vmem>>, vector<32x128xf32>
    %cst_233 = arith.constant dense<0.000000e+00> : vector<2x128xf32>
    %539 = tpu.matmul %8, %538, %cst_233 {dimension_numbers = #tpu.dot_dimension_numbers<[1], [0], [0], [1], [0, 0, 1, 1], [], []>} : vector<2x32xf32>, vector<32x128xf32>, vector<2x128xf32> -> vector<2x128xf32>
    %540 = arith.addf %533, %539 : vector<2x128xf32>
    %541 = arith.negf %540 : vector<2x128xf32>
    %542 = math.exp %541 : vector<2x128xf32>
    %cst_234 = arith.constant 1.000000e+00 : f32
    %543 = vector.broadcast %cst_234 : f32 to vector<2x128xf32>
    %544 = arith.addf %543, %542 : vector<2x128xf32>
    %545 = arith.divf %543, %544 : vector<2x128xf32>
    %546 = math.tanh %540 : vector<2x128xf32>
    %547 = vector.extract_strided_slice %545 {offsets = [0, 0], sizes = [2, 32], strides = [1, 1]} : vector<2x128xf32> to vector<2x32xf32>
    %548 = vector.extract_strided_slice %545 {offsets = [0, 32], sizes = [2, 32], strides = [1, 1]} : vector<2x128xf32> to vector<2x32xf32>
    %549 = vector.extract_strided_slice %546 {offsets = [0, 64], sizes = [2, 32], strides = [1, 1]} : vector<2x128xf32> to vector<2x32xf32>
    %550 = vector.extract_strided_slice %545 {offsets = [0, 96], sizes = [2, 32], strides = [1, 1]} : vector<2x128xf32> to vector<2x32xf32>
    %551 = arith.mulf %548, %8 : vector<2x32xf32>
    %552 = arith.mulf %547, %549 : vector<2x32xf32>
    %553 = arith.addf %551, %552 : vector<2x32xf32>
    %554 = math.tanh %553 : vector<2x32xf32>
    %555 = arith.mulf %550, %554 : vector<2x32xf32>
    %c0_235 = arith.constant 0 : index
    %c0_236 = arith.constant 0 : index
    %556 = vector.load %arg7[%c0_235, %c0_236] : memref<32x128xf32, #tpu.memory_space<vmem>>, vector<32x128xf32>
    %cst_237 = arith.constant dense<0.000000e+00> : vector<2x128xf32>
    %557 = tpu.matmul %8, %556, %cst_237 {dimension_numbers = #tpu.dot_dimension_numbers<[1], [0], [0], [1], [0, 0, 1, 1], [], []>} : vector<2x32xf32>, vector<32x128xf32>, vector<2x128xf32> -> vector<2x128xf32>
    %558 = arith.addf %537, %557 : vector<2x128xf32>
    %559 = arith.negf %558 : vector<2x128xf32>
    %560 = math.exp %559 : vector<2x128xf32>
    %cst_238 = arith.constant 1.000000e+00 : f32
    %561 = vector.broadcast %cst_238 : f32 to vector<2x128xf32>
    %562 = arith.addf %561, %560 : vector<2x128xf32>
    %563 = arith.divf %561, %562 : vector<2x128xf32>
    %564 = math.tanh %558 : vector<2x128xf32>
    %565 = vector.extract_strided_slice %563 {offsets = [0, 0], sizes = [2, 32], strides = [1, 1]} : vector<2x128xf32> to vector<2x32xf32>
    %566 = vector.extract_strided_slice %563 {offsets = [0, 32], sizes = [2, 32], strides = [1, 1]} : vector<2x128xf32> to vector<2x32xf32>
    %567 = vector.extract_strided_slice %564 {offsets = [0, 64], sizes = [2, 32], strides = [1, 1]} : vector<2x128xf32> to vector<2x32xf32>
    %568 = vector.extract_strided_slice %563 {offsets = [0, 96], sizes = [2, 32], strides = [1, 1]} : vector<2x128xf32> to vector<2x32xf32>
    %569 = arith.mulf %566, %8 : vector<2x32xf32>
    %570 = arith.mulf %565, %567 : vector<2x32xf32>
    %571 = arith.addf %569, %570 : vector<2x32xf32>
    %572 = math.tanh %571 : vector<2x32xf32>
    %573 = arith.mulf %568, %572 : vector<2x32xf32>
    %574 = arith.index_cast %c0_i32_225 : i32 to index
    %c0_239 = arith.constant 0 : index
    %c0_240 = arith.constant 0 : index
    %575 = vector.load %arg11[%574, %c0_239, %c0_240] : memref<8x2x128xf32, #tpu.memory_space<vmem>>, vector<1x2x128xf32>
    %576 = vector.shape_cast %575 : vector<1x2x128xf32> to vector<2x128xf32>
    %c0_241 = arith.constant 0 : index
    %c0_242 = arith.constant 0 : index
    %577 = vector.load %arg8[%c0_241, %c0_242] : memref<32x128xf32, #tpu.memory_space<vmem>>, vector<32x128xf32>
    %cst_243 = arith.constant dense<0.000000e+00> : vector<2x128xf32>
    %578 = tpu.matmul %555, %577, %cst_243 {dimension_numbers = #tpu.dot_dimension_numbers<[1], [0], [0], [1], [0, 0, 1, 1], [], []>} : vector<2x32xf32>, vector<32x128xf32>, vector<2x128xf32> -> vector<2x128xf32>
    %579 = arith.addf %576, %578 : vector<2x128xf32>
    %580 = arith.index_cast %c0_i32_225 : i32 to index
    %c0_244 = arith.constant 0 : index
    %c0_245 = arith.constant 0 : index
    %581 = vector.load %arg11[%580, %c0_244, %c0_245] : memref<8x2x128xf32, #tpu.memory_space<vmem>>, vector<1x2x128xf32>
    %582 = vector.shape_cast %581 : vector<1x2x128xf32> to vector<2x128xf32>
    %583 = vector.shape_cast %579 : vector<2x128xf32> to vector<1x2x128xf32>
    tpu.vector_store %arg11[%580, %c0_244, %c0_245], %583 {strides = array<i32>} : memref<8x2x128xf32, #tpu.memory_space<vmem>>, vector<1x2x128xf32>,
    %584 = arith.index_cast %529 : i32 to index
    %c0_246 = arith.constant 0 : index
    %c0_247 = arith.constant 0 : index
    %585 = vector.load %arg11[%584, %c0_246, %c0_247] : memref<8x2x128xf32, #tpu.memory_space<vmem>>, vector<1x2x128xf32>
    %586 = vector.shape_cast %585 : vector<1x2x128xf32> to vector<2x128xf32>
    %c0_248 = arith.constant 0 : index
    %c0_249 = arith.constant 0 : index
    %587 = vector.load %arg9[%c0_248, %c0_249] : memref<32x128xf32, #tpu.memory_space<vmem>>, vector<32x128xf32>
    %cst_250 = arith.constant dense<0.000000e+00> : vector<2x128xf32>
    %588 = tpu.matmul %573, %587, %cst_250 {dimension_numbers = #tpu.dot_dimension_numbers<[1], [0], [0], [1], [0, 0, 1, 1], [], []>} : vector<2x32xf32>, vector<32x128xf32>, vector<2x128xf32> -> vector<2x128xf32>
    %589 = arith.addf %586, %588 : vector<2x128xf32>
    %590 = arith.index_cast %529 : i32 to index
    %c0_251 = arith.constant 0 : index
    %c0_252 = arith.constant 0 : index
    %591 = vector.load %arg11[%590, %c0_251, %c0_252] : memref<8x2x128xf32, #tpu.memory_space<vmem>>, vector<1x2x128xf32>
    %592 = vector.shape_cast %591 : vector<1x2x128xf32> to vector<2x128xf32>
    %593 = vector.shape_cast %589 : vector<2x128xf32> to vector<1x2x128xf32>
    tpu.vector_store %arg11[%590, %c0_251, %c0_252], %593 {strides = array<i32>} : memref<8x2x128xf32, #tpu.memory_space<vmem>>, vector<1x2x128xf32>,
    %c1_i32_253 = arith.constant 1 : i32
    %c7_i32_254 = arith.constant 7 : i32
    %594 = arith.subi %c7_i32_254, %c1_i32_253 : i32
    %595 = arith.index_cast %c1_i32_253 : i32 to index
    %c0_255 = arith.constant 0 : index
    %c0_256 = arith.constant 0 : index
    %596 = vector.load %arg12[%595, %c0_255, %c0_256] : memref<8x2x256xf32, #tpu.memory_space<vmem>>, vector<1x2x256xf32>
    %597 = vector.shape_cast %596 : vector<1x2x256xf32> to vector<2x256xf32>
    %598 = vector.extract_strided_slice %597 {offsets = [0, 0], sizes = [2, 128], strides = [1, 1]} : vector<2x256xf32> to vector<2x128xf32>
    %599 = arith.index_cast %594 : i32 to index
    %c0_257 = arith.constant 0 : index
    %c0_258 = arith.constant 0 : index
    %600 = vector.load %arg12[%599, %c0_257, %c0_258] : memref<8x2x256xf32, #tpu.memory_space<vmem>>, vector<1x2x256xf32>
    %601 = vector.shape_cast %600 : vector<1x2x256xf32> to vector<2x256xf32>
    %602 = vector.extract_strided_slice %601 {offsets = [0, 128], sizes = [2, 128], strides = [1, 1]} : vector<2x256xf32> to vector<2x128xf32>
    %c0_259 = arith.constant 0 : index
    %c0_260 = arith.constant 0 : index
    %603 = vector.load %arg6[%c0_259, %c0_260] : memref<32x128xf32, #tpu.memory_space<vmem>>, vector<32x128xf32>
    %cst_261 = arith.constant dense<0.000000e+00> : vector<2x128xf32>
    %604 = tpu.matmul %555, %603, %cst_261 {dimension_numbers = #tpu.dot_dimension_numbers<[1], [0], [0], [1], [0, 0, 1, 1], [], []>} : vector<2x32xf32>, vector<32x128xf32>, vector<2x128xf32> -> vector<2x128xf32>
    %605 = arith.addf %598, %604 : vector<2x128xf32>
    %606 = arith.negf %605 : vector<2x128xf32>
    %607 = math.exp %606 : vector<2x128xf32>
    %cst_262 = arith.constant 1.000000e+00 : f32
    %608 = vector.broadcast %cst_262 : f32 to vector<2x128xf32>
    %609 = arith.addf %608, %607 : vector<2x128xf32>
    %610 = arith.divf %608, %609 : vector<2x128xf32>
    %611 = math.tanh %605 : vector<2x128xf32>
    %612 = vector.extract_strided_slice %610 {offsets = [0, 0], sizes = [2, 32], strides = [1, 1]} : vector<2x128xf32> to vector<2x32xf32>
    %613 = vector.extract_strided_slice %610 {offsets = [0, 32], sizes = [2, 32], strides = [1, 1]} : vector<2x128xf32> to vector<2x32xf32>
    %614 = vector.extract_strided_slice %611 {offsets = [0, 64], sizes = [2, 32], strides = [1, 1]} : vector<2x128xf32> to vector<2x32xf32>
    %615 = vector.extract_strided_slice %610 {offsets = [0, 96], sizes = [2, 32], strides = [1, 1]} : vector<2x128xf32> to vector<2x32xf32>
    %616 = arith.mulf %613, %553 : vector<2x32xf32>
    %617 = arith.mulf %612, %614 : vector<2x32xf32>
    %618 = arith.addf %616, %617 : vector<2x32xf32>
    %619 = math.tanh %618 : vector<2x32xf32>
    %620 = arith.mulf %615, %619 : vector<2x32xf32>
    %c0_263 = arith.constant 0 : index
    %c0_264 = arith.constant 0 : index
    %621 = vector.load %arg7[%c0_263, %c0_264] : memref<32x128xf32, #tpu.memory_space<vmem>>, vector<32x128xf32>
    %cst_265 = arith.constant dense<0.000000e+00> : vector<2x128xf32>
    %622 = tpu.matmul %573, %621, %cst_265 {dimension_numbers = #tpu.dot_dimension_numbers<[1], [0], [0], [1], [0, 0, 1, 1], [], []>} : vector<2x32xf32>, vector<32x128xf32>, vector<2x128xf32> -> vector<2x128xf32>
    %623 = arith.addf %602, %622 : vector<2x128xf32>
    %624 = arith.negf %623 : vector<2x128xf32>
    %625 = math.exp %624 : vector<2x128xf32>
    %cst_266 = arith.constant 1.000000e+00 : f32
    %626 = vector.broadcast %cst_266 : f32 to vector<2x128xf32>
    %627 = arith.addf %626, %625 : vector<2x128xf32>
    %628 = arith.divf %626, %627 : vector<2x128xf32>
    %629 = math.tanh %623 : vector<2x128xf32>
    %630 = vector.extract_strided_slice %628 {offsets = [0, 0], sizes = [2, 32], strides = [1, 1]} : vector<2x128xf32> to vector<2x32xf32>
    %631 = vector.extract_strided_slice %628 {offsets = [0, 32], sizes = [2, 32], strides = [1, 1]} : vector<2x128xf32> to vector<2x32xf32>
    %632 = vector.extract_strided_slice %629 {offsets = [0, 64], sizes = [2, 32], strides = [1, 1]} : vector<2x128xf32> to vector<2x32xf32>
    %633 = vector.extract_strided_slice %628 {offsets = [0, 96], sizes = [2, 32], strides = [1, 1]} : vector<2x128xf32> to vector<2x32xf32>
    %634 = arith.mulf %631, %571 : vector<2x32xf32>
    %635 = arith.mulf %630, %632 : vector<2x32xf32>
    %636 = arith.addf %634, %635 : vector<2x32xf32>
    %637 = math.tanh %636 : vector<2x32xf32>
    %638 = arith.mulf %633, %637 : vector<2x32xf32>
    %639 = arith.index_cast %c1_i32_253 : i32 to index
    %c0_267 = arith.constant 0 : index
    %c0_268 = arith.constant 0 : index
    %640 = vector.load %arg11[%639, %c0_267, %c0_268] : memref<8x2x128xf32, #tpu.memory_space<vmem>>, vector<1x2x128xf32>
    %641 = vector.shape_cast %640 : vector<1x2x128xf32> to vector<2x128xf32>
    %c0_269 = arith.constant 0 : index
    %c0_270 = arith.constant 0 : index
    %642 = vector.load %arg8[%c0_269, %c0_270] : memref<32x128xf32, #tpu.memory_space<vmem>>, vector<32x128xf32>
    %cst_271 = arith.constant dense<0.000000e+00> : vector<2x128xf32>
    %643 = tpu.matmul %620, %642, %cst_271 {dimension_numbers = #tpu.dot_dimension_numbers<[1], [0], [0], [1], [0, 0, 1, 1], [], []>} : vector<2x32xf32>, vector<32x128xf32>, vector<2x128xf32> -> vector<2x128xf32>
    %644 = arith.addf %641, %643 : vector<2x128xf32>
    %645 = arith.index_cast %c1_i32_253 : i32 to index
    %c0_272 = arith.constant 0 : index
    %c0_273 = arith.constant 0 : index
    %646 = vector.load %arg11[%645, %c0_272, %c0_273] : memref<8x2x128xf32, #tpu.memory_space<vmem>>, vector<1x2x128xf32>
    %647 = vector.shape_cast %646 : vector<1x2x128xf32> to vector<2x128xf32>
    %648 = vector.shape_cast %644 : vector<2x128xf32> to vector<1x2x128xf32>
    tpu.vector_store %arg11[%645, %c0_272, %c0_273], %648 {strides = array<i32>} : memref<8x2x128xf32, #tpu.memory_space<vmem>>, vector<1x2x128xf32>,
    %649 = arith.index_cast %594 : i32 to index
    %c0_274 = arith.constant 0 : index
    %c0_275 = arith.constant 0 : index
    %650 = vector.load %arg11[%649, %c0_274, %c0_275] : memref<8x2x128xf32, #tpu.memory_space<vmem>>, vector<1x2x128xf32>
    %651 = vector.shape_cast %650 : vector<1x2x128xf32> to vector<2x128xf32>
    %c0_276 = arith.constant 0 : index
    %c0_277 = arith.constant 0 : index
    %652 = vector.load %arg9[%c0_276, %c0_277] : memref<32x128xf32, #tpu.memory_space<vmem>>, vector<32x128xf32>
    %cst_278 = arith.constant dense<0.000000e+00> : vector<2x128xf32>
    %653 = tpu.matmul %638, %652, %cst_278 {dimension_numbers = #tpu.dot_dimension_numbers<[1], [0], [0], [1], [0, 0, 1, 1], [], []>} : vector<2x32xf32>, vector<32x128xf32>, vector<2x128xf32> -> vector<2x128xf32>
    %654 = arith.addf %651, %653 : vector<2x128xf32>
    %655 = arith.index_cast %594 : i32 to index
    %c0_279 = arith.constant 0 : index
    %c0_280 = arith.constant 0 : index
    %656 = vector.load %arg11[%655, %c0_279, %c0_280] : memref<8x2x128xf32, #tpu.memory_space<vmem>>, vector<1x2x128xf32>
    %657 = vector.shape_cast %656 : vector<1x2x128xf32> to vector<2x128xf32>
    %658 = vector.shape_cast %654 : vector<2x128xf32> to vector<1x2x128xf32>
    tpu.vector_store %arg11[%655, %c0_279, %c0_280], %658 {strides = array<i32>} : memref<8x2x128xf32, #tpu.memory_space<vmem>>, vector<1x2x128xf32>,
    %c2_i32_281 = arith.constant 2 : i32
    %c7_i32_282 = arith.constant 7 : i32
    %659 = arith.subi %c7_i32_282, %c2_i32_281 : i32
    %660 = arith.index_cast %c2_i32_281 : i32 to index
    %c0_283 = arith.constant 0 : index
    %c0_284 = arith.constant 0 : index
    %661 = vector.load %arg12[%660, %c0_283, %c0_284] : memref<8x2x256xf32, #tpu.memory_space<vmem>>, vector<1x2x256xf32>
    %662 = vector.shape_cast %661 : vector<1x2x256xf32> to vector<2x256xf32>
    %663 = vector.extract_strided_slice %662 {offsets = [0, 0], sizes = [2, 128], strides = [1, 1]} : vector<2x256xf32> to vector<2x128xf32>
    %664 = arith.index_cast %659 : i32 to index
    %c0_285 = arith.constant 0 : index
    %c0_286 = arith.constant 0 : index
    %665 = vector.load %arg12[%664, %c0_285, %c0_286] : memref<8x2x256xf32, #tpu.memory_space<vmem>>, vector<1x2x256xf32>
    %666 = vector.shape_cast %665 : vector<1x2x256xf32> to vector<2x256xf32>
    %667 = vector.extract_strided_slice %666 {offsets = [0, 128], sizes = [2, 128], strides = [1, 1]} : vector<2x256xf32> to vector<2x128xf32>
    %c0_287 = arith.constant 0 : index
    %c0_288 = arith.constant 0 : index
    %668 = vector.load %arg6[%c0_287, %c0_288] : memref<32x128xf32, #tpu.memory_space<vmem>>, vector<32x128xf32>
    %cst_289 = arith.constant dense<0.000000e+00> : vector<2x128xf32>
    %669 = tpu.matmul %620, %668, %cst_289 {dimension_numbers = #tpu.dot_dimension_numbers<[1], [0], [0], [1], [0, 0, 1, 1], [], []>} : vector<2x32xf32>, vector<32x128xf32>, vector<2x128xf32> -> vector<2x128xf32>
    %670 = arith.addf %663, %669 : vector<2x128xf32>
    %671 = arith.negf %670 : vector<2x128xf32>
    %672 = math.exp %671 : vector<2x128xf32>
    %cst_290 = arith.constant 1.000000e+00 : f32
    %673 = vector.broadcast %cst_290 : f32 to vector<2x128xf32>
    %674 = arith.addf %673, %672 : vector<2x128xf32>
    %675 = arith.divf %673, %674 : vector<2x128xf32>
    %676 = math.tanh %670 : vector<2x128xf32>
    %677 = vector.extract_strided_slice %675 {offsets = [0, 0], sizes = [2, 32], strides = [1, 1]} : vector<2x128xf32> to vector<2x32xf32>
    %678 = vector.extract_strided_slice %675 {offsets = [0, 32], sizes = [2, 32], strides = [1, 1]} : vector<2x128xf32> to vector<2x32xf32>
    %679 = vector.extract_strided_slice %676 {offsets = [0, 64], sizes = [2, 32], strides = [1, 1]} : vector<2x128xf32> to vector<2x32xf32>
    %680 = vector.extract_strided_slice %675 {offsets = [0, 96], sizes = [2, 32], strides = [1, 1]} : vector<2x128xf32> to vector<2x32xf32>
    %681 = arith.mulf %678, %618 : vector<2x32xf32>
    %682 = arith.mulf %677, %679 : vector<2x32xf32>
    %683 = arith.addf %681, %682 : vector<2x32xf32>
    %684 = math.tanh %683 : vector<2x32xf32>
    %685 = arith.mulf %680, %684 : vector<2x32xf32>
    %c0_291 = arith.constant 0 : index
    %c0_292 = arith.constant 0 : index
    %686 = vector.load %arg7[%c0_291, %c0_292] : memref<32x128xf32, #tpu.memory_space<vmem>>, vector<32x128xf32>
    %cst_293 = arith.constant dense<0.000000e+00> : vector<2x128xf32>
    %687 = tpu.matmul %638, %686, %cst_293 {dimension_numbers = #tpu.dot_dimension_numbers<[1], [0], [0], [1], [0, 0, 1, 1], [], []>} : vector<2x32xf32>, vector<32x128xf32>, vector<2x128xf32> -> vector<2x128xf32>
    %688 = arith.addf %667, %687 : vector<2x128xf32>
    %689 = arith.negf %688 : vector<2x128xf32>
    %690 = math.exp %689 : vector<2x128xf32>
    %cst_294 = arith.constant 1.000000e+00 : f32
    %691 = vector.broadcast %cst_294 : f32 to vector<2x128xf32>
    %692 = arith.addf %691, %690 : vector<2x128xf32>
    %693 = arith.divf %691, %692 : vector<2x128xf32>
    %694 = math.tanh %688 : vector<2x128xf32>
    %695 = vector.extract_strided_slice %693 {offsets = [0, 0], sizes = [2, 32], strides = [1, 1]} : vector<2x128xf32> to vector<2x32xf32>
    %696 = vector.extract_strided_slice %693 {offsets = [0, 32], sizes = [2, 32], strides = [1, 1]} : vector<2x128xf32> to vector<2x32xf32>
    %697 = vector.extract_strided_slice %694 {offsets = [0, 64], sizes = [2, 32], strides = [1, 1]} : vector<2x128xf32> to vector<2x32xf32>
    %698 = vector.extract_strided_slice %693 {offsets = [0, 96], sizes = [2, 32], strides = [1, 1]} : vector<2x128xf32> to vector<2x32xf32>
    %699 = arith.mulf %696, %636 : vector<2x32xf32>
    %700 = arith.mulf %695, %697 : vector<2x32xf32>
    %701 = arith.addf %699, %700 : vector<2x32xf32>
    %702 = math.tanh %701 : vector<2x32xf32>
    %703 = arith.mulf %698, %702 : vector<2x32xf32>
    %704 = arith.index_cast %c2_i32_281 : i32 to index
    %c0_295 = arith.constant 0 : index
    %c0_296 = arith.constant 0 : index
    %705 = vector.load %arg11[%704, %c0_295, %c0_296] : memref<8x2x128xf32, #tpu.memory_space<vmem>>, vector<1x2x128xf32>
    %706 = vector.shape_cast %705 : vector<1x2x128xf32> to vector<2x128xf32>
    %c0_297 = arith.constant 0 : index
    %c0_298 = arith.constant 0 : index
    %707 = vector.load %arg8[%c0_297, %c0_298] : memref<32x128xf32, #tpu.memory_space<vmem>>, vector<32x128xf32>
    %cst_299 = arith.constant dense<0.000000e+00> : vector<2x128xf32>
    %708 = tpu.matmul %685, %707, %cst_299 {dimension_numbers = #tpu.dot_dimension_numbers<[1], [0], [0], [1], [0, 0, 1, 1], [], []>} : vector<2x32xf32>, vector<32x128xf32>, vector<2x128xf32> -> vector<2x128xf32>
    %709 = arith.addf %706, %708 : vector<2x128xf32>
    %710 = arith.index_cast %c2_i32_281 : i32 to index
    %c0_300 = arith.constant 0 : index
    %c0_301 = arith.constant 0 : index
    %711 = vector.load %arg11[%710, %c0_300, %c0_301] : memref<8x2x128xf32, #tpu.memory_space<vmem>>, vector<1x2x128xf32>
    %712 = vector.shape_cast %711 : vector<1x2x128xf32> to vector<2x128xf32>
    %713 = vector.shape_cast %709 : vector<2x128xf32> to vector<1x2x128xf32>
    tpu.vector_store %arg11[%710, %c0_300, %c0_301], %713 {strides = array<i32>} : memref<8x2x128xf32, #tpu.memory_space<vmem>>, vector<1x2x128xf32>,
    %714 = arith.index_cast %659 : i32 to index
    %c0_302 = arith.constant 0 : index
    %c0_303 = arith.constant 0 : index
    %715 = vector.load %arg11[%714, %c0_302, %c0_303] : memref<8x2x128xf32, #tpu.memory_space<vmem>>, vector<1x2x128xf32>
    %716 = vector.shape_cast %715 : vector<1x2x128xf32> to vector<2x128xf32>
    %c0_304 = arith.constant 0 : index
    %c0_305 = arith.constant 0 : index
    %717 = vector.load %arg9[%c0_304, %c0_305] : memref<32x128xf32, #tpu.memory_space<vmem>>, vector<32x128xf32>
    %cst_306 = arith.constant dense<0.000000e+00> : vector<2x128xf32>
    %718 = tpu.matmul %703, %717, %cst_306 {dimension_numbers = #tpu.dot_dimension_numbers<[1], [0], [0], [1], [0, 0, 1, 1], [], []>} : vector<2x32xf32>, vector<32x128xf32>, vector<2x128xf32> -> vector<2x128xf32>
    %719 = arith.addf %716, %718 : vector<2x128xf32>
    %720 = arith.index_cast %659 : i32 to index
    %c0_307 = arith.constant 0 : index
    %c0_308 = arith.constant 0 : index
    %721 = vector.load %arg11[%720, %c0_307, %c0_308] : memref<8x2x128xf32, #tpu.memory_space<vmem>>, vector<1x2x128xf32>
    %722 = vector.shape_cast %721 : vector<1x2x128xf32> to vector<2x128xf32>
    %723 = vector.shape_cast %719 : vector<2x128xf32> to vector<1x2x128xf32>
    tpu.vector_store %arg11[%720, %c0_307, %c0_308], %723 {strides = array<i32>} : memref<8x2x128xf32, #tpu.memory_space<vmem>>, vector<1x2x128xf32>,
    %c3_i32_309 = arith.constant 3 : i32
    %c7_i32_310 = arith.constant 7 : i32
    %724 = arith.subi %c7_i32_310, %c3_i32_309 : i32
    %725 = arith.index_cast %c3_i32_309 : i32 to index
    %c0_311 = arith.constant 0 : index
    %c0_312 = arith.constant 0 : index
    %726 = vector.load %arg12[%725, %c0_311, %c0_312] : memref<8x2x256xf32, #tpu.memory_space<vmem>>, vector<1x2x256xf32>
    %727 = vector.shape_cast %726 : vector<1x2x256xf32> to vector<2x256xf32>
    %728 = vector.extract_strided_slice %727 {offsets = [0, 0], sizes = [2, 128], strides = [1, 1]} : vector<2x256xf32> to vector<2x128xf32>
    %729 = arith.index_cast %724 : i32 to index
    %c0_313 = arith.constant 0 : index
    %c0_314 = arith.constant 0 : index
    %730 = vector.load %arg12[%729, %c0_313, %c0_314] : memref<8x2x256xf32, #tpu.memory_space<vmem>>, vector<1x2x256xf32>
    %731 = vector.shape_cast %730 : vector<1x2x256xf32> to vector<2x256xf32>
    %732 = vector.extract_strided_slice %731 {offsets = [0, 128], sizes = [2, 128], strides = [1, 1]} : vector<2x256xf32> to vector<2x128xf32>
    %c0_315 = arith.constant 0 : index
    %c0_316 = arith.constant 0 : index
    %733 = vector.load %arg6[%c0_315, %c0_316] : memref<32x128xf32, #tpu.memory_space<vmem>>, vector<32x128xf32>
    %cst_317 = arith.constant dense<0.000000e+00> : vector<2x128xf32>
    %734 = tpu.matmul %685, %733, %cst_317 {dimension_numbers = #tpu.dot_dimension_numbers<[1], [0], [0], [1], [0, 0, 1, 1], [], []>} : vector<2x32xf32>, vector<32x128xf32>, vector<2x128xf32> -> vector<2x128xf32>
    %735 = arith.addf %728, %734 : vector<2x128xf32>
    %736 = arith.negf %735 : vector<2x128xf32>
    %737 = math.exp %736 : vector<2x128xf32>
    %cst_318 = arith.constant 1.000000e+00 : f32
    %738 = vector.broadcast %cst_318 : f32 to vector<2x128xf32>
    %739 = arith.addf %738, %737 : vector<2x128xf32>
    %740 = arith.divf %738, %739 : vector<2x128xf32>
    %741 = math.tanh %735 : vector<2x128xf32>
    %742 = vector.extract_strided_slice %740 {offsets = [0, 0], sizes = [2, 32], strides = [1, 1]} : vector<2x128xf32> to vector<2x32xf32>
    %743 = vector.extract_strided_slice %740 {offsets = [0, 32], sizes = [2, 32], strides = [1, 1]} : vector<2x128xf32> to vector<2x32xf32>
    %744 = vector.extract_strided_slice %741 {offsets = [0, 64], sizes = [2, 32], strides = [1, 1]} : vector<2x128xf32> to vector<2x32xf32>
    %745 = vector.extract_strided_slice %740 {offsets = [0, 96], sizes = [2, 32], strides = [1, 1]} : vector<2x128xf32> to vector<2x32xf32>
    %746 = arith.mulf %743, %683 : vector<2x32xf32>
    %747 = arith.mulf %742, %744 : vector<2x32xf32>
    %748 = arith.addf %746, %747 : vector<2x32xf32>
    %749 = math.tanh %748 : vector<2x32xf32>
    %750 = arith.mulf %745, %749 : vector<2x32xf32>
    %c0_319 = arith.constant 0 : index
    %c0_320 = arith.constant 0 : index
    %751 = vector.load %arg7[%c0_319, %c0_320] : memref<32x128xf32, #tpu.memory_space<vmem>>, vector<32x128xf32>
    %cst_321 = arith.constant dense<0.000000e+00> : vector<2x128xf32>
    %752 = tpu.matmul %703, %751, %cst_321 {dimension_numbers = #tpu.dot_dimension_numbers<[1], [0], [0], [1], [0, 0, 1, 1], [], []>} : vector<2x32xf32>, vector<32x128xf32>, vector<2x128xf32> -> vector<2x128xf32>
    %753 = arith.addf %732, %752 : vector<2x128xf32>
    %754 = arith.negf %753 : vector<2x128xf32>
    %755 = math.exp %754 : vector<2x128xf32>
    %cst_322 = arith.constant 1.000000e+00 : f32
    %756 = vector.broadcast %cst_322 : f32 to vector<2x128xf32>
    %757 = arith.addf %756, %755 : vector<2x128xf32>
    %758 = arith.divf %756, %757 : vector<2x128xf32>
    %759 = math.tanh %753 : vector<2x128xf32>
    %760 = vector.extract_strided_slice %758 {offsets = [0, 0], sizes = [2, 32], strides = [1, 1]} : vector<2x128xf32> to vector<2x32xf32>
    %761 = vector.extract_strided_slice %758 {offsets = [0, 32], sizes = [2, 32], strides = [1, 1]} : vector<2x128xf32> to vector<2x32xf32>
    %762 = vector.extract_strided_slice %759 {offsets = [0, 64], sizes = [2, 32], strides = [1, 1]} : vector<2x128xf32> to vector<2x32xf32>
    %763 = vector.extract_strided_slice %758 {offsets = [0, 96], sizes = [2, 32], strides = [1, 1]} : vector<2x128xf32> to vector<2x32xf32>
    %764 = arith.mulf %761, %701 : vector<2x32xf32>
    %765 = arith.mulf %760, %762 : vector<2x32xf32>
    %766 = arith.addf %764, %765 : vector<2x32xf32>
    %767 = math.tanh %766 : vector<2x32xf32>
    %768 = arith.mulf %763, %767 : vector<2x32xf32>
    %769 = arith.index_cast %c3_i32_309 : i32 to index
    %c0_323 = arith.constant 0 : index
    %c0_324 = arith.constant 0 : index
    %770 = vector.load %arg11[%769, %c0_323, %c0_324] : memref<8x2x128xf32, #tpu.memory_space<vmem>>, vector<1x2x128xf32>
    %771 = vector.shape_cast %770 : vector<1x2x128xf32> to vector<2x128xf32>
    %c0_325 = arith.constant 0 : index
    %c0_326 = arith.constant 0 : index
    %772 = vector.load %arg8[%c0_325, %c0_326] : memref<32x128xf32, #tpu.memory_space<vmem>>, vector<32x128xf32>
    %cst_327 = arith.constant dense<0.000000e+00> : vector<2x128xf32>
    %773 = tpu.matmul %750, %772, %cst_327 {dimension_numbers = #tpu.dot_dimension_numbers<[1], [0], [0], [1], [0, 0, 1, 1], [], []>} : vector<2x32xf32>, vector<32x128xf32>, vector<2x128xf32> -> vector<2x128xf32>
    %774 = arith.addf %771, %773 : vector<2x128xf32>
    %775 = arith.index_cast %c3_i32_309 : i32 to index
    %c0_328 = arith.constant 0 : index
    %c0_329 = arith.constant 0 : index
    %776 = vector.load %arg11[%775, %c0_328, %c0_329] : memref<8x2x128xf32, #tpu.memory_space<vmem>>, vector<1x2x128xf32>
    %777 = vector.shape_cast %776 : vector<1x2x128xf32> to vector<2x128xf32>
    %778 = vector.shape_cast %774 : vector<2x128xf32> to vector<1x2x128xf32>
    tpu.vector_store %arg11[%775, %c0_328, %c0_329], %778 {strides = array<i32>} : memref<8x2x128xf32, #tpu.memory_space<vmem>>, vector<1x2x128xf32>,
    %779 = arith.index_cast %724 : i32 to index
    %c0_330 = arith.constant 0 : index
    %c0_331 = arith.constant 0 : index
    %780 = vector.load %arg11[%779, %c0_330, %c0_331] : memref<8x2x128xf32, #tpu.memory_space<vmem>>, vector<1x2x128xf32>
    %781 = vector.shape_cast %780 : vector<1x2x128xf32> to vector<2x128xf32>
    %c0_332 = arith.constant 0 : index
    %c0_333 = arith.constant 0 : index
    %782 = vector.load %arg9[%c0_332, %c0_333] : memref<32x128xf32, #tpu.memory_space<vmem>>, vector<32x128xf32>
    %cst_334 = arith.constant dense<0.000000e+00> : vector<2x128xf32>
    %783 = tpu.matmul %768, %782, %cst_334 {dimension_numbers = #tpu.dot_dimension_numbers<[1], [0], [0], [1], [0, 0, 1, 1], [], []>} : vector<2x32xf32>, vector<32x128xf32>, vector<2x128xf32> -> vector<2x128xf32>
    %784 = arith.addf %781, %783 : vector<2x128xf32>
    %785 = arith.index_cast %724 : i32 to index
    %c0_335 = arith.constant 0 : index
    %c0_336 = arith.constant 0 : index
    %786 = vector.load %arg11[%785, %c0_335, %c0_336] : memref<8x2x128xf32, #tpu.memory_space<vmem>>, vector<1x2x128xf32>
    %787 = vector.shape_cast %786 : vector<1x2x128xf32> to vector<2x128xf32>
    %788 = vector.shape_cast %784 : vector<2x128xf32> to vector<1x2x128xf32>
    tpu.vector_store %arg11[%785, %c0_335, %c0_336], %788 {strides = array<i32>} : memref<8x2x128xf32, #tpu.memory_space<vmem>>, vector<1x2x128xf32>,
    %c4_i32_337 = arith.constant 4 : i32
    %c7_i32_338 = arith.constant 7 : i32
    %789 = arith.subi %c7_i32_338, %c4_i32_337 : i32
    %790 = arith.index_cast %c4_i32_337 : i32 to index
    %c0_339 = arith.constant 0 : index
    %c0_340 = arith.constant 0 : index
    %791 = vector.load %arg12[%790, %c0_339, %c0_340] : memref<8x2x256xf32, #tpu.memory_space<vmem>>, vector<1x2x256xf32>
    %792 = vector.shape_cast %791 : vector<1x2x256xf32> to vector<2x256xf32>
    %793 = vector.extract_strided_slice %792 {offsets = [0, 0], sizes = [2, 128], strides = [1, 1]} : vector<2x256xf32> to vector<2x128xf32>
    %794 = arith.index_cast %789 : i32 to index
    %c0_341 = arith.constant 0 : index
    %c0_342 = arith.constant 0 : index
    %795 = vector.load %arg12[%794, %c0_341, %c0_342] : memref<8x2x256xf32, #tpu.memory_space<vmem>>, vector<1x2x256xf32>
    %796 = vector.shape_cast %795 : vector<1x2x256xf32> to vector<2x256xf32>
    %797 = vector.extract_strided_slice %796 {offsets = [0, 128], sizes = [2, 128], strides = [1, 1]} : vector<2x256xf32> to vector<2x128xf32>
    %c0_343 = arith.constant 0 : index
    %c0_344 = arith.constant 0 : index
    %798 = vector.load %arg6[%c0_343, %c0_344] : memref<32x128xf32, #tpu.memory_space<vmem>>, vector<32x128xf32>
    %cst_345 = arith.constant dense<0.000000e+00> : vector<2x128xf32>
    %799 = tpu.matmul %750, %798, %cst_345 {dimension_numbers = #tpu.dot_dimension_numbers<[1], [0], [0], [1], [0, 0, 1, 1], [], []>} : vector<2x32xf32>, vector<32x128xf32>, vector<2x128xf32> -> vector<2x128xf32>
    %800 = arith.addf %793, %799 : vector<2x128xf32>
    %801 = arith.negf %800 : vector<2x128xf32>
    %802 = math.exp %801 : vector<2x128xf32>
    %cst_346 = arith.constant 1.000000e+00 : f32
    %803 = vector.broadcast %cst_346 : f32 to vector<2x128xf32>
    %804 = arith.addf %803, %802 : vector<2x128xf32>
    %805 = arith.divf %803, %804 : vector<2x128xf32>
    %806 = math.tanh %800 : vector<2x128xf32>
    %807 = vector.extract_strided_slice %805 {offsets = [0, 0], sizes = [2, 32], strides = [1, 1]} : vector<2x128xf32> to vector<2x32xf32>
    %808 = vector.extract_strided_slice %805 {offsets = [0, 32], sizes = [2, 32], strides = [1, 1]} : vector<2x128xf32> to vector<2x32xf32>
    %809 = vector.extract_strided_slice %806 {offsets = [0, 64], sizes = [2, 32], strides = [1, 1]} : vector<2x128xf32> to vector<2x32xf32>
    %810 = vector.extract_strided_slice %805 {offsets = [0, 96], sizes = [2, 32], strides = [1, 1]} : vector<2x128xf32> to vector<2x32xf32>
    %811 = arith.mulf %808, %748 : vector<2x32xf32>
    %812 = arith.mulf %807, %809 : vector<2x32xf32>
    %813 = arith.addf %811, %812 : vector<2x32xf32>
    %814 = math.tanh %813 : vector<2x32xf32>
    %815 = arith.mulf %810, %814 : vector<2x32xf32>
    %c0_347 = arith.constant 0 : index
    %c0_348 = arith.constant 0 : index
    %816 = vector.load %arg7[%c0_347, %c0_348] : memref<32x128xf32, #tpu.memory_space<vmem>>, vector<32x128xf32>
    %cst_349 = arith.constant dense<0.000000e+00> : vector<2x128xf32>
    %817 = tpu.matmul %768, %816, %cst_349 {dimension_numbers = #tpu.dot_dimension_numbers<[1], [0], [0], [1], [0, 0, 1, 1], [], []>} : vector<2x32xf32>, vector<32x128xf32>, vector<2x128xf32> -> vector<2x128xf32>
    %818 = arith.addf %797, %817 : vector<2x128xf32>
    %819 = arith.negf %818 : vector<2x128xf32>
    %820 = math.exp %819 : vector<2x128xf32>
    %cst_350 = arith.constant 1.000000e+00 : f32
    %821 = vector.broadcast %cst_350 : f32 to vector<2x128xf32>
    %822 = arith.addf %821, %820 : vector<2x128xf32>
    %823 = arith.divf %821, %822 : vector<2x128xf32>
    %824 = math.tanh %818 : vector<2x128xf32>
    %825 = vector.extract_strided_slice %823 {offsets = [0, 0], sizes = [2, 32], strides = [1, 1]} : vector<2x128xf32> to vector<2x32xf32>
    %826 = vector.extract_strided_slice %823 {offsets = [0, 32], sizes = [2, 32], strides = [1, 1]} : vector<2x128xf32> to vector<2x32xf32>
    %827 = vector.extract_strided_slice %824 {offsets = [0, 64], sizes = [2, 32], strides = [1, 1]} : vector<2x128xf32> to vector<2x32xf32>
    %828 = vector.extract_strided_slice %823 {offsets = [0, 96], sizes = [2, 32], strides = [1, 1]} : vector<2x128xf32> to vector<2x32xf32>
    %829 = arith.mulf %826, %766 : vector<2x32xf32>
    %830 = arith.mulf %825, %827 : vector<2x32xf32>
    %831 = arith.addf %829, %830 : vector<2x32xf32>
    %832 = math.tanh %831 : vector<2x32xf32>
    %833 = arith.mulf %828, %832 : vector<2x32xf32>
    %834 = arith.index_cast %c4_i32_337 : i32 to index
    %c0_351 = arith.constant 0 : index
    %c0_352 = arith.constant 0 : index
    %835 = vector.load %arg11[%834, %c0_351, %c0_352] : memref<8x2x128xf32, #tpu.memory_space<vmem>>, vector<1x2x128xf32>
    %836 = vector.shape_cast %835 : vector<1x2x128xf32> to vector<2x128xf32>
    %c0_353 = arith.constant 0 : index
    %c0_354 = arith.constant 0 : index
    %837 = vector.load %arg8[%c0_353, %c0_354] : memref<32x128xf32, #tpu.memory_space<vmem>>, vector<32x128xf32>
    %cst_355 = arith.constant dense<0.000000e+00> : vector<2x128xf32>
    %838 = tpu.matmul %815, %837, %cst_355 {dimension_numbers = #tpu.dot_dimension_numbers<[1], [0], [0], [1], [0, 0, 1, 1], [], []>} : vector<2x32xf32>, vector<32x128xf32>, vector<2x128xf32> -> vector<2x128xf32>
    %839 = arith.addf %836, %838 : vector<2x128xf32>
    %840 = arith.index_cast %c4_i32_337 : i32 to index
    %c0_356 = arith.constant 0 : index
    %c0_357 = arith.constant 0 : index
    %841 = vector.load %arg11[%840, %c0_356, %c0_357] : memref<8x2x128xf32, #tpu.memory_space<vmem>>, vector<1x2x128xf32>
    %842 = vector.shape_cast %841 : vector<1x2x128xf32> to vector<2x128xf32>
    %843 = vector.shape_cast %839 : vector<2x128xf32> to vector<1x2x128xf32>
    tpu.vector_store %arg11[%840, %c0_356, %c0_357], %843 {strides = array<i32>} : memref<8x2x128xf32, #tpu.memory_space<vmem>>, vector<1x2x128xf32>,
    %844 = arith.index_cast %789 : i32 to index
    %c0_358 = arith.constant 0 : index
    %c0_359 = arith.constant 0 : index
    %845 = vector.load %arg11[%844, %c0_358, %c0_359] : memref<8x2x128xf32, #tpu.memory_space<vmem>>, vector<1x2x128xf32>
    %846 = vector.shape_cast %845 : vector<1x2x128xf32> to vector<2x128xf32>
    %c0_360 = arith.constant 0 : index
    %c0_361 = arith.constant 0 : index
    %847 = vector.load %arg9[%c0_360, %c0_361] : memref<32x128xf32, #tpu.memory_space<vmem>>, vector<32x128xf32>
    %cst_362 = arith.constant dense<0.000000e+00> : vector<2x128xf32>
    %848 = tpu.matmul %833, %847, %cst_362 {dimension_numbers = #tpu.dot_dimension_numbers<[1], [0], [0], [1], [0, 0, 1, 1], [], []>} : vector<2x32xf32>, vector<32x128xf32>, vector<2x128xf32> -> vector<2x128xf32>
    %849 = arith.addf %846, %848 : vector<2x128xf32>
    %850 = arith.index_cast %789 : i32 to index
    %c0_363 = arith.constant 0 : index
    %c0_364 = arith.constant 0 : index
    %851 = vector.load %arg11[%850, %c0_363, %c0_364] : memref<8x2x128xf32, #tpu.memory_space<vmem>>, vector<1x2x128xf32>
    %852 = vector.shape_cast %851 : vector<1x2x128xf32> to vector<2x128xf32>
    %853 = vector.shape_cast %849 : vector<2x128xf32> to vector<1x2x128xf32>
    tpu.vector_store %arg11[%850, %c0_363, %c0_364], %853 {strides = array<i32>} : memref<8x2x128xf32, #tpu.memory_space<vmem>>, vector<1x2x128xf32>,
    %c5_i32_365 = arith.constant 5 : i32
    %c7_i32_366 = arith.constant 7 : i32
    %854 = arith.subi %c7_i32_366, %c5_i32_365 : i32
    %855 = arith.index_cast %c5_i32_365 : i32 to index
    %c0_367 = arith.constant 0 : index
    %c0_368 = arith.constant 0 : index
    %856 = vector.load %arg12[%855, %c0_367, %c0_368] : memref<8x2x256xf32, #tpu.memory_space<vmem>>, vector<1x2x256xf32>
    %857 = vector.shape_cast %856 : vector<1x2x256xf32> to vector<2x256xf32>
    %858 = vector.extract_strided_slice %857 {offsets = [0, 0], sizes = [2, 128], strides = [1, 1]} : vector<2x256xf32> to vector<2x128xf32>
    %859 = arith.index_cast %854 : i32 to index
    %c0_369 = arith.constant 0 : index
    %c0_370 = arith.constant 0 : index
    %860 = vector.load %arg12[%859, %c0_369, %c0_370] : memref<8x2x256xf32, #tpu.memory_space<vmem>>, vector<1x2x256xf32>
    %861 = vector.shape_cast %860 : vector<1x2x256xf32> to vector<2x256xf32>
    %862 = vector.extract_strided_slice %861 {offsets = [0, 128], sizes = [2, 128], strides = [1, 1]} : vector<2x256xf32> to vector<2x128xf32>
    %c0_371 = arith.constant 0 : index
    %c0_372 = arith.constant 0 : index
    %863 = vector.load %arg6[%c0_371, %c0_372] : memref<32x128xf32, #tpu.memory_space<vmem>>, vector<32x128xf32>
    %cst_373 = arith.constant dense<0.000000e+00> : vector<2x128xf32>
    %864 = tpu.matmul %815, %863, %cst_373 {dimension_numbers = #tpu.dot_dimension_numbers<[1], [0], [0], [1], [0, 0, 1, 1], [], []>} : vector<2x32xf32>, vector<32x128xf32>, vector<2x128xf32> -> vector<2x128xf32>
    %865 = arith.addf %858, %864 : vector<2x128xf32>
    %866 = arith.negf %865 : vector<2x128xf32>
    %867 = math.exp %866 : vector<2x128xf32>
    %cst_374 = arith.constant 1.000000e+00 : f32
    %868 = vector.broadcast %cst_374 : f32 to vector<2x128xf32>
    %869 = arith.addf %868, %867 : vector<2x128xf32>
    %870 = arith.divf %868, %869 : vector<2x128xf32>
    %871 = math.tanh %865 : vector<2x128xf32>
    %872 = vector.extract_strided_slice %870 {offsets = [0, 0], sizes = [2, 32], strides = [1, 1]} : vector<2x128xf32> to vector<2x32xf32>
    %873 = vector.extract_strided_slice %870 {offsets = [0, 32], sizes = [2, 32], strides = [1, 1]} : vector<2x128xf32> to vector<2x32xf32>
    %874 = vector.extract_strided_slice %871 {offsets = [0, 64], sizes = [2, 32], strides = [1, 1]} : vector<2x128xf32> to vector<2x32xf32>
    %875 = vector.extract_strided_slice %870 {offsets = [0, 96], sizes = [2, 32], strides = [1, 1]} : vector<2x128xf32> to vector<2x32xf32>
    %876 = arith.mulf %873, %813 : vector<2x32xf32>
    %877 = arith.mulf %872, %874 : vector<2x32xf32>
    %878 = arith.addf %876, %877 : vector<2x32xf32>
    %879 = math.tanh %878 : vector<2x32xf32>
    %880 = arith.mulf %875, %879 : vector<2x32xf32>
    %c0_375 = arith.constant 0 : index
    %c0_376 = arith.constant 0 : index
    %881 = vector.load %arg7[%c0_375, %c0_376] : memref<32x128xf32, #tpu.memory_space<vmem>>, vector<32x128xf32>
    %cst_377 = arith.constant dense<0.000000e+00> : vector<2x128xf32>
    %882 = tpu.matmul %833, %881, %cst_377 {dimension_numbers = #tpu.dot_dimension_numbers<[1], [0], [0], [1], [0, 0, 1, 1], [], []>} : vector<2x32xf32>, vector<32x128xf32>, vector<2x128xf32> -> vector<2x128xf32>
    %883 = arith.addf %862, %882 : vector<2x128xf32>
    %884 = arith.negf %883 : vector<2x128xf32>
    %885 = math.exp %884 : vector<2x128xf32>
    %cst_378 = arith.constant 1.000000e+00 : f32
    %886 = vector.broadcast %cst_378 : f32 to vector<2x128xf32>
    %887 = arith.addf %886, %885 : vector<2x128xf32>
    %888 = arith.divf %886, %887 : vector<2x128xf32>
    %889 = math.tanh %883 : vector<2x128xf32>
    %890 = vector.extract_strided_slice %888 {offsets = [0, 0], sizes = [2, 32], strides = [1, 1]} : vector<2x128xf32> to vector<2x32xf32>
    %891 = vector.extract_strided_slice %888 {offsets = [0, 32], sizes = [2, 32], strides = [1, 1]} : vector<2x128xf32> to vector<2x32xf32>
    %892 = vector.extract_strided_slice %889 {offsets = [0, 64], sizes = [2, 32], strides = [1, 1]} : vector<2x128xf32> to vector<2x32xf32>
    %893 = vector.extract_strided_slice %888 {offsets = [0, 96], sizes = [2, 32], strides = [1, 1]} : vector<2x128xf32> to vector<2x32xf32>
    %894 = arith.mulf %891, %831 : vector<2x32xf32>
    %895 = arith.mulf %890, %892 : vector<2x32xf32>
    %896 = arith.addf %894, %895 : vector<2x32xf32>
    %897 = math.tanh %896 : vector<2x32xf32>
    %898 = arith.mulf %893, %897 : vector<2x32xf32>
    %899 = arith.index_cast %c5_i32_365 : i32 to index
    %c0_379 = arith.constant 0 : index
    %c0_380 = arith.constant 0 : index
    %900 = vector.load %arg11[%899, %c0_379, %c0_380] : memref<8x2x128xf32, #tpu.memory_space<vmem>>, vector<1x2x128xf32>
    %901 = vector.shape_cast %900 : vector<1x2x128xf32> to vector<2x128xf32>
    %c0_381 = arith.constant 0 : index
    %c0_382 = arith.constant 0 : index
    %902 = vector.load %arg8[%c0_381, %c0_382] : memref<32x128xf32, #tpu.memory_space<vmem>>, vector<32x128xf32>
    %cst_383 = arith.constant dense<0.000000e+00> : vector<2x128xf32>
    %903 = tpu.matmul %880, %902, %cst_383 {dimension_numbers = #tpu.dot_dimension_numbers<[1], [0], [0], [1], [0, 0, 1, 1], [], []>} : vector<2x32xf32>, vector<32x128xf32>, vector<2x128xf32> -> vector<2x128xf32>
    %904 = arith.addf %901, %903 : vector<2x128xf32>
    %905 = arith.index_cast %c5_i32_365 : i32 to index
    %c0_384 = arith.constant 0 : index
    %c0_385 = arith.constant 0 : index
    %906 = vector.load %arg11[%905, %c0_384, %c0_385] : memref<8x2x128xf32, #tpu.memory_space<vmem>>, vector<1x2x128xf32>
    %907 = vector.shape_cast %906 : vector<1x2x128xf32> to vector<2x128xf32>
    %908 = vector.shape_cast %904 : vector<2x128xf32> to vector<1x2x128xf32>
    tpu.vector_store %arg11[%905, %c0_384, %c0_385], %908 {strides = array<i32>} : memref<8x2x128xf32, #tpu.memory_space<vmem>>, vector<1x2x128xf32>,
    %909 = arith.index_cast %854 : i32 to index
    %c0_386 = arith.constant 0 : index
    %c0_387 = arith.constant 0 : index
    %910 = vector.load %arg11[%909, %c0_386, %c0_387] : memref<8x2x128xf32, #tpu.memory_space<vmem>>, vector<1x2x128xf32>
    %911 = vector.shape_cast %910 : vector<1x2x128xf32> to vector<2x128xf32>
    %c0_388 = arith.constant 0 : index
    %c0_389 = arith.constant 0 : index
    %912 = vector.load %arg9[%c0_388, %c0_389] : memref<32x128xf32, #tpu.memory_space<vmem>>, vector<32x128xf32>
    %cst_390 = arith.constant dense<0.000000e+00> : vector<2x128xf32>
    %913 = tpu.matmul %898, %912, %cst_390 {dimension_numbers = #tpu.dot_dimension_numbers<[1], [0], [0], [1], [0, 0, 1, 1], [], []>} : vector<2x32xf32>, vector<32x128xf32>, vector<2x128xf32> -> vector<2x128xf32>
    %914 = arith.addf %911, %913 : vector<2x128xf32>
    %915 = arith.index_cast %854 : i32 to index
    %c0_391 = arith.constant 0 : index
    %c0_392 = arith.constant 0 : index
    %916 = vector.load %arg11[%915, %c0_391, %c0_392] : memref<8x2x128xf32, #tpu.memory_space<vmem>>, vector<1x2x128xf32>
    %917 = vector.shape_cast %916 : vector<1x2x128xf32> to vector<2x128xf32>
    %918 = vector.shape_cast %914 : vector<2x128xf32> to vector<1x2x128xf32>
    tpu.vector_store %arg11[%915, %c0_391, %c0_392], %918 {strides = array<i32>} : memref<8x2x128xf32, #tpu.memory_space<vmem>>, vector<1x2x128xf32>,
    %c6_i32_393 = arith.constant 6 : i32
    %c7_i32_394 = arith.constant 7 : i32
    %919 = arith.subi %c7_i32_394, %c6_i32_393 : i32
    %920 = arith.index_cast %c6_i32_393 : i32 to index
    %c0_395 = arith.constant 0 : index
    %c0_396 = arith.constant 0 : index
    %921 = vector.load %arg12[%920, %c0_395, %c0_396] : memref<8x2x256xf32, #tpu.memory_space<vmem>>, vector<1x2x256xf32>
    %922 = vector.shape_cast %921 : vector<1x2x256xf32> to vector<2x256xf32>
    %923 = vector.extract_strided_slice %922 {offsets = [0, 0], sizes = [2, 128], strides = [1, 1]} : vector<2x256xf32> to vector<2x128xf32>
    %924 = arith.index_cast %919 : i32 to index
    %c0_397 = arith.constant 0 : index
    %c0_398 = arith.constant 0 : index
    %925 = vector.load %arg12[%924, %c0_397, %c0_398] : memref<8x2x256xf32, #tpu.memory_space<vmem>>, vector<1x2x256xf32>
    %926 = vector.shape_cast %925 : vector<1x2x256xf32> to vector<2x256xf32>
    %927 = vector.extract_strided_slice %926 {offsets = [0, 128], sizes = [2, 128], strides = [1, 1]} : vector<2x256xf32> to vector<2x128xf32>
    %c0_399 = arith.constant 0 : index
    %c0_400 = arith.constant 0 : index
    %928 = vector.load %arg6[%c0_399, %c0_400] : memref<32x128xf32, #tpu.memory_space<vmem>>, vector<32x128xf32>
    %cst_401 = arith.constant dense<0.000000e+00> : vector<2x128xf32>
    %929 = tpu.matmul %880, %928, %cst_401 {dimension_numbers = #tpu.dot_dimension_numbers<[1], [0], [0], [1], [0, 0, 1, 1], [], []>} : vector<2x32xf32>, vector<32x128xf32>, vector<2x128xf32> -> vector<2x128xf32>
    %930 = arith.addf %923, %929 : vector<2x128xf32>
    %931 = arith.negf %930 : vector<2x128xf32>
    %932 = math.exp %931 : vector<2x128xf32>
    %cst_402 = arith.constant 1.000000e+00 : f32
    %933 = vector.broadcast %cst_402 : f32 to vector<2x128xf32>
    %934 = arith.addf %933, %932 : vector<2x128xf32>
    %935 = arith.divf %933, %934 : vector<2x128xf32>
    %936 = math.tanh %930 : vector<2x128xf32>
    %937 = vector.extract_strided_slice %935 {offsets = [0, 0], sizes = [2, 32], strides = [1, 1]} : vector<2x128xf32> to vector<2x32xf32>
    %938 = vector.extract_strided_slice %935 {offsets = [0, 32], sizes = [2, 32], strides = [1, 1]} : vector<2x128xf32> to vector<2x32xf32>
    %939 = vector.extract_strided_slice %936 {offsets = [0, 64], sizes = [2, 32], strides = [1, 1]} : vector<2x128xf32> to vector<2x32xf32>
    %940 = vector.extract_strided_slice %935 {offsets = [0, 96], sizes = [2, 32], strides = [1, 1]} : vector<2x128xf32> to vector<2x32xf32>
    %941 = arith.mulf %938, %878 : vector<2x32xf32>
    %942 = arith.mulf %937, %939 : vector<2x32xf32>
    %943 = arith.addf %941, %942 : vector<2x32xf32>
    %944 = math.tanh %943 : vector<2x32xf32>
    %945 = arith.mulf %940, %944 : vector<2x32xf32>
    %c0_403 = arith.constant 0 : index
    %c0_404 = arith.constant 0 : index
    %946 = vector.load %arg7[%c0_403, %c0_404] : memref<32x128xf32, #tpu.memory_space<vmem>>, vector<32x128xf32>
    %cst_405 = arith.constant dense<0.000000e+00> : vector<2x128xf32>
    %947 = tpu.matmul %898, %946, %cst_405 {dimension_numbers = #tpu.dot_dimension_numbers<[1], [0], [0], [1], [0, 0, 1, 1], [], []>} : vector<2x32xf32>, vector<32x128xf32>, vector<2x128xf32> -> vector<2x128xf32>
    %948 = arith.addf %927, %947 : vector<2x128xf32>
    %949 = arith.negf %948 : vector<2x128xf32>
    %950 = math.exp %949 : vector<2x128xf32>
    %cst_406 = arith.constant 1.000000e+00 : f32
    %951 = vector.broadcast %cst_406 : f32 to vector<2x128xf32>
    %952 = arith.addf %951, %950 : vector<2x128xf32>
    %953 = arith.divf %951, %952 : vector<2x128xf32>
    %954 = math.tanh %948 : vector<2x128xf32>
    %955 = vector.extract_strided_slice %953 {offsets = [0, 0], sizes = [2, 32], strides = [1, 1]} : vector<2x128xf32> to vector<2x32xf32>
    %956 = vector.extract_strided_slice %953 {offsets = [0, 32], sizes = [2, 32], strides = [1, 1]} : vector<2x128xf32> to vector<2x32xf32>
    %957 = vector.extract_strided_slice %954 {offsets = [0, 64], sizes = [2, 32], strides = [1, 1]} : vector<2x128xf32> to vector<2x32xf32>
    %958 = vector.extract_strided_slice %953 {offsets = [0, 96], sizes = [2, 32], strides = [1, 1]} : vector<2x128xf32> to vector<2x32xf32>
    %959 = arith.mulf %956, %896 : vector<2x32xf32>
    %960 = arith.mulf %955, %957 : vector<2x32xf32>
    %961 = arith.addf %959, %960 : vector<2x32xf32>
    %962 = math.tanh %961 : vector<2x32xf32>
    %963 = arith.mulf %958, %962 : vector<2x32xf32>
    %964 = arith.index_cast %c6_i32_393 : i32 to index
    %c0_407 = arith.constant 0 : index
    %c0_408 = arith.constant 0 : index
    %965 = vector.load %arg11[%964, %c0_407, %c0_408] : memref<8x2x128xf32, #tpu.memory_space<vmem>>, vector<1x2x128xf32>
    %966 = vector.shape_cast %965 : vector<1x2x128xf32> to vector<2x128xf32>
    %c0_409 = arith.constant 0 : index
    %c0_410 = arith.constant 0 : index
    %967 = vector.load %arg8[%c0_409, %c0_410] : memref<32x128xf32, #tpu.memory_space<vmem>>, vector<32x128xf32>
    %cst_411 = arith.constant dense<0.000000e+00> : vector<2x128xf32>
    %968 = tpu.matmul %945, %967, %cst_411 {dimension_numbers = #tpu.dot_dimension_numbers<[1], [0], [0], [1], [0, 0, 1, 1], [], []>} : vector<2x32xf32>, vector<32x128xf32>, vector<2x128xf32> -> vector<2x128xf32>
    %969 = arith.addf %966, %968 : vector<2x128xf32>
    %970 = arith.index_cast %c6_i32_393 : i32 to index
    %c0_412 = arith.constant 0 : index
    %c0_413 = arith.constant 0 : index
    %971 = vector.load %arg11[%970, %c0_412, %c0_413] : memref<8x2x128xf32, #tpu.memory_space<vmem>>, vector<1x2x128xf32>
    %972 = vector.shape_cast %971 : vector<1x2x128xf32> to vector<2x128xf32>
    %973 = vector.shape_cast %969 : vector<2x128xf32> to vector<1x2x128xf32>
    tpu.vector_store %arg11[%970, %c0_412, %c0_413], %973 {strides = array<i32>} : memref<8x2x128xf32, #tpu.memory_space<vmem>>, vector<1x2x128xf32>,
    %974 = arith.index_cast %919 : i32 to index
    %c0_414 = arith.constant 0 : index
    %c0_415 = arith.constant 0 : index
    %975 = vector.load %arg11[%974, %c0_414, %c0_415] : memref<8x2x128xf32, #tpu.memory_space<vmem>>, vector<1x2x128xf32>
    %976 = vector.shape_cast %975 : vector<1x2x128xf32> to vector<2x128xf32>
    %c0_416 = arith.constant 0 : index
    %c0_417 = arith.constant 0 : index
    %977 = vector.load %arg9[%c0_416, %c0_417] : memref<32x128xf32, #tpu.memory_space<vmem>>, vector<32x128xf32>
    %cst_418 = arith.constant dense<0.000000e+00> : vector<2x128xf32>
    %978 = tpu.matmul %963, %977, %cst_418 {dimension_numbers = #tpu.dot_dimension_numbers<[1], [0], [0], [1], [0, 0, 1, 1], [], []>} : vector<2x32xf32>, vector<32x128xf32>, vector<2x128xf32> -> vector<2x128xf32>
    %979 = arith.addf %976, %978 : vector<2x128xf32>
    %980 = arith.index_cast %919 : i32 to index
    %c0_419 = arith.constant 0 : index
    %c0_420 = arith.constant 0 : index
    %981 = vector.load %arg11[%980, %c0_419, %c0_420] : memref<8x2x128xf32, #tpu.memory_space<vmem>>, vector<1x2x128xf32>
    %982 = vector.shape_cast %981 : vector<1x2x128xf32> to vector<2x128xf32>
    %983 = vector.shape_cast %979 : vector<2x128xf32> to vector<1x2x128xf32>
    tpu.vector_store %arg11[%980, %c0_419, %c0_420], %983 {strides = array<i32>} : memref<8x2x128xf32, #tpu.memory_space<vmem>>, vector<1x2x128xf32>,
    %c7_i32_421 = arith.constant 7 : i32
    %c7_i32_422 = arith.constant 7 : i32
    %984 = arith.subi %c7_i32_422, %c7_i32_421 : i32
    %985 = arith.index_cast %c7_i32_421 : i32 to index
    %c0_423 = arith.constant 0 : index
    %c0_424 = arith.constant 0 : index
    %986 = vector.load %arg12[%985, %c0_423, %c0_424] : memref<8x2x256xf32, #tpu.memory_space<vmem>>, vector<1x2x256xf32>
    %987 = vector.shape_cast %986 : vector<1x2x256xf32> to vector<2x256xf32>
    %988 = vector.extract_strided_slice %987 {offsets = [0, 0], sizes = [2, 128], strides = [1, 1]} : vector<2x256xf32> to vector<2x128xf32>
    %989 = arith.index_cast %984 : i32 to index
    %c0_425 = arith.constant 0 : index
    %c0_426 = arith.constant 0 : index
    %990 = vector.load %arg12[%989, %c0_425, %c0_426] : memref<8x2x256xf32, #tpu.memory_space<vmem>>, vector<1x2x256xf32>
    %991 = vector.shape_cast %990 : vector<1x2x256xf32> to vector<2x256xf32>
    %992 = vector.extract_strided_slice %991 {offsets = [0, 128], sizes = [2, 128], strides = [1, 1]} : vector<2x256xf32> to vector<2x128xf32>
    %c0_427 = arith.constant 0 : index
    %c0_428 = arith.constant 0 : index
    %993 = vector.load %arg6[%c0_427, %c0_428] : memref<32x128xf32, #tpu.memory_space<vmem>>, vector<32x128xf32>
    %cst_429 = arith.constant dense<0.000000e+00> : vector<2x128xf32>
    %994 = tpu.matmul %945, %993, %cst_429 {dimension_numbers = #tpu.dot_dimension_numbers<[1], [0], [0], [1], [0, 0, 1, 1], [], []>} : vector<2x32xf32>, vector<32x128xf32>, vector<2x128xf32> -> vector<2x128xf32>
    %995 = arith.addf %988, %994 : vector<2x128xf32>
    %996 = arith.negf %995 : vector<2x128xf32>
    %997 = math.exp %996 : vector<2x128xf32>
    %cst_430 = arith.constant 1.000000e+00 : f32
    %998 = vector.broadcast %cst_430 : f32 to vector<2x128xf32>
    %999 = arith.addf %998, %997 : vector<2x128xf32>
    %1000 = arith.divf %998, %999 : vector<2x128xf32>
    %1001 = math.tanh %995 : vector<2x128xf32>
    %1002 = vector.extract_strided_slice %1000 {offsets = [0, 0], sizes = [2, 32], strides = [1, 1]} : vector<2x128xf32> to vector<2x32xf32>
    %1003 = vector.extract_strided_slice %1000 {offsets = [0, 32], sizes = [2, 32], strides = [1, 1]} : vector<2x128xf32> to vector<2x32xf32>
    %1004 = vector.extract_strided_slice %1001 {offsets = [0, 64], sizes = [2, 32], strides = [1, 1]} : vector<2x128xf32> to vector<2x32xf32>
    %1005 = vector.extract_strided_slice %1000 {offsets = [0, 96], sizes = [2, 32], strides = [1, 1]} : vector<2x128xf32> to vector<2x32xf32>
    %1006 = arith.mulf %1003, %943 : vector<2x32xf32>
    %1007 = arith.mulf %1002, %1004 : vector<2x32xf32>
    %1008 = arith.addf %1006, %1007 : vector<2x32xf32>
    %1009 = math.tanh %1008 : vector<2x32xf32>
    %1010 = arith.mulf %1005, %1009 : vector<2x32xf32>
    %c0_431 = arith.constant 0 : index
    %c0_432 = arith.constant 0 : index
    %1011 = vector.load %arg7[%c0_431, %c0_432] : memref<32x128xf32, #tpu.memory_space<vmem>>, vector<32x128xf32>
    %cst_433 = arith.constant dense<0.000000e+00> : vector<2x128xf32>
    %1012 = tpu.matmul %963, %1011, %cst_433 {dimension_numbers = #tpu.dot_dimension_numbers<[1], [0], [0], [1], [0, 0, 1, 1], [], []>} : vector<2x32xf32>, vector<32x128xf32>, vector<2x128xf32> -> vector<2x128xf32>
    %1013 = arith.addf %992, %1012 : vector<2x128xf32>
    %1014 = arith.negf %1013 : vector<2x128xf32>
    %1015 = math.exp %1014 : vector<2x128xf32>
    %cst_434 = arith.constant 1.000000e+00 : f32
    %1016 = vector.broadcast %cst_434 : f32 to vector<2x128xf32>
    %1017 = arith.addf %1016, %1015 : vector<2x128xf32>
    %1018 = arith.divf %1016, %1017 : vector<2x128xf32>
    %1019 = math.tanh %1013 : vector<2x128xf32>
    %1020 = vector.extract_strided_slice %1018 {offsets = [0, 0], sizes = [2, 32], strides = [1, 1]} : vector<2x128xf32> to vector<2x32xf32>
    %1021 = vector.extract_strided_slice %1018 {offsets = [0, 32], sizes = [2, 32], strides = [1, 1]} : vector<2x128xf32> to vector<2x32xf32>
    %1022 = vector.extract_strided_slice %1019 {offsets = [0, 64], sizes = [2, 32], strides = [1, 1]} : vector<2x128xf32> to vector<2x32xf32>
    %1023 = vector.extract_strided_slice %1018 {offsets = [0, 96], sizes = [2, 32], strides = [1, 1]} : vector<2x128xf32> to vector<2x32xf32>
    %1024 = arith.mulf %1021, %961 : vector<2x32xf32>
    %1025 = arith.mulf %1020, %1022 : vector<2x32xf32>
    %1026 = arith.addf %1024, %1025 : vector<2x32xf32>
    %1027 = math.tanh %1026 : vector<2x32xf32>
    %1028 = arith.mulf %1023, %1027 : vector<2x32xf32>
    %1029 = arith.index_cast %c7_i32_421 : i32 to index
    %c0_435 = arith.constant 0 : index
    %c0_436 = arith.constant 0 : index
    %1030 = vector.load %arg11[%1029, %c0_435, %c0_436] : memref<8x2x128xf32, #tpu.memory_space<vmem>>, vector<1x2x128xf32>
    %1031 = vector.shape_cast %1030 : vector<1x2x128xf32> to vector<2x128xf32>
    %c0_437 = arith.constant 0 : index
    %c0_438 = arith.constant 0 : index
    %1032 = vector.load %arg8[%c0_437, %c0_438] : memref<32x128xf32, #tpu.memory_space<vmem>>, vector<32x128xf32>
    %cst_439 = arith.constant dense<0.000000e+00> : vector<2x128xf32>
    %1033 = tpu.matmul %1010, %1032, %cst_439 {dimension_numbers = #tpu.dot_dimension_numbers<[1], [0], [0], [1], [0, 0, 1, 1], [], []>} : vector<2x32xf32>, vector<32x128xf32>, vector<2x128xf32> -> vector<2x128xf32>
    %1034 = arith.addf %1031, %1033 : vector<2x128xf32>
    %1035 = arith.index_cast %c7_i32_421 : i32 to index
    %c0_440 = arith.constant 0 : index
    %c0_441 = arith.constant 0 : index
    %1036 = vector.load %arg11[%1035, %c0_440, %c0_441] : memref<8x2x128xf32, #tpu.memory_space<vmem>>, vector<1x2x128xf32>
    %1037 = vector.shape_cast %1036 : vector<1x2x128xf32> to vector<2x128xf32>
    %1038 = vector.shape_cast %1034 : vector<2x128xf32> to vector<1x2x128xf32>
    tpu.vector_store %arg11[%1035, %c0_440, %c0_441], %1038 {strides = array<i32>} : memref<8x2x128xf32, #tpu.memory_space<vmem>>, vector<1x2x128xf32>,
    %1039 = arith.index_cast %984 : i32 to index
    %c0_442 = arith.constant 0 : index
    %c0_443 = arith.constant 0 : index
    %1040 = vector.load %arg11[%1039, %c0_442, %c0_443] : memref<8x2x128xf32, #tpu.memory_space<vmem>>, vector<1x2x128xf32>
    %1041 = vector.shape_cast %1040 : vector<1x2x128xf32> to vector<2x128xf32>
    %c0_444 = arith.constant 0 : index
    %c0_445 = arith.constant 0 : index
    %1042 = vector.load %arg9[%c0_444, %c0_445] : memref<32x128xf32, #tpu.memory_space<vmem>>, vector<32x128xf32>
    %cst_446 = arith.constant dense<0.000000e+00> : vector<2x128xf32>
    %1043 = tpu.matmul %1028, %1042, %cst_446 {dimension_numbers = #tpu.dot_dimension_numbers<[1], [0], [0], [1], [0, 0, 1, 1], [], []>} : vector<2x32xf32>, vector<32x128xf32>, vector<2x128xf32> -> vector<2x128xf32>
    %1044 = arith.addf %1041, %1043 : vector<2x128xf32>
    %1045 = arith.index_cast %984 : i32 to index
    %c0_447 = arith.constant 0 : index
    %c0_448 = arith.constant 0 : index
    %1046 = vector.load %arg11[%1045, %c0_447, %c0_448] : memref<8x2x128xf32, #tpu.memory_space<vmem>>, vector<1x2x128xf32>
    %1047 = vector.shape_cast %1046 : vector<1x2x128xf32> to vector<2x128xf32>
    %1048 = vector.shape_cast %1044 : vector<2x128xf32> to vector<1x2x128xf32>
    tpu.vector_store %arg11[%1045, %c0_447, %c0_448], %1048 {strides = array<i32>} : memref<8x2x128xf32, #tpu.memory_space<vmem>>, vector<1x2x128xf32>,
    %c8_i32_449 = arith.constant 8 : i32
    return
  }
}

</mosaic_0001>

<bundles_post_ra>
// kernel: tpu_custom_call.1
= control target key start
LH: loop header
LB: loop body
LE: loop exit
PB: predicated region body
PF: predicated region fallthrough
CT: control target
= control target key end

     0   :  { %16 = vsyncpa [#allocation4], 0  ;;  %s9427_s0 = inlined_call_operand.hbm [shape: f32[8,2,256], index: 0, kind: input, shape index: {}]   ;;  %s9428_s1 = inlined_call_operand.hbm [shape: f32[32,128], index: 1, kind: input, shape index: {}]   ;;  %s9429_s2 = inlined_call_operand.hbm [shape: f32[32,128], index: 2, kind: input, shape index: {}]   ;;  %s9430_s3 = inlined_call_operand.hbm [shape: f32[32,256], index: 3, kind: input, shape index: {}]   ;;  %s9431_s4 = inlined_call_operand.hbm [shape: f32[32,256], index: 4, kind: input, shape index: {}]   ;;  %s9432_s5 = inlined_call_operand.vmem [shape: f32[1,256], index: 5, kind: input, shape index: {}]   ;;  %s9433_s6 = inlined_call_operand.hbm [shape: f32[32,128], index: 6, kind: input, shape index: {}]   ;;  %s9434_s7 = inlined_call_operand.hbm [shape: f32[32,128], index: 7, kind: input, shape index: {}]   ;;  %s9435_s8 = inlined_call_operand.hbm [shape: f32[32,128], index: 8, kind: input, shape index: {}]   ;;  %s9436_s9 = inlined_call_operand.vmem [shape: f32[32,128], index: 9, kind: input, shape index: {}]   ;;  %s9437_s10 = inlined_call_operand.vmem [shape: f32[1,128], index: 10, kind: input, shape index: {}]   ;;  %s9438_s11 = inlined_call_operand.hbm [shape: f32[8,2,128], index: 11, kind: output, shape index: {}]  }
   0x1   :  { %17 = vsyncpa [#allocation7], 0 }
   0x2   :  { %18 = vsyncpa [#allocation10], 0 }
   0x3   :  { %19 = vsyncpa [#allocation13], 0 }
   0x4   :  { %20 = vsyncpa [#allocation16], 0 }
   0x5   :  { %21 = vsyncpa [#allocation5], 0  ;;  %s8360_s17 = smov [#allocation6]   ;;  %s8150_s21 = scalar_lea.hbm %s9428_s1, 512 }
   0x6   :  { %s39_s18 = sshll.u32 %s8360_s17, 4  ;;  %p8151_p0 = scmp.ne.s32.totalorder %s9428_s1, %s8150_s21  ;;  %s40_s18 = int_to_ptr.vmem [resolvable:$true] %s39_s18 }
   0x7   :  { %p8154_p1 = scmp.lt.u32.totalorder %s8150_s21, %s9428_s1 }
   0x9   :  { %p8156_p2 = pnand %p8154_p1, %p8151_p0 }
   0xb   :  { %8159 = shalt.err (!%p8156_p2)
}
   0xc   :  { %s8160_s26 = scalar_lea.vmem %s40_s18, 512  ;;  %p8165_p4 = scmp.lt.s32.totalorder %s40_s18, %s40_s18 }
   0xd   :  { %p8161_p3 = scmp.ne.s32.totalorder %s40_s18, %s8160_s26  ;;  %p8166_p5 = scmp.lt.s32.totalorder %s8160_s26, %s8160_s26 }
   0xf   :  { %p8167_p6 = por %p8166_p5, %p8165_p4 }
  0x11   :  { %p8168_p7 = pnand %p8167_p6, %p8161_p3 }
  0x13   :  { %8171 = shalt.err (!%p8168_p7)
}
  0x14   :  { %s8361_s27 = smov 128   ;;  %s8362_s28 = smov 8  }
  0x15   :  { %45 = dma.hbm_to_vmem [thread:$0]  %s9428_s1, 512, %s40_s18, [#allocation7], %s8361_s27, %s8361_s27, %s8362_s28  }
  0x16   :  { %s8363_s12 = smov [#allocation9]   ;;  %s8172_s16 = scalar_lea.hbm %s9430_s3, 1024 }
  0x17   :  { %s63_s13 = sshll.u32 %s8363_s12, 4  ;;  %p8173_p8 = scmp.ne.s32.totalorder %s9430_s3, %s8172_s16  ;;  %s64_s13 = int_to_ptr.vmem [resolvable:$true] %s63_s13 }
  0x18   :  { %p8176_p9 = scmp.lt.u32.totalorder %s8172_s16, %s9430_s3 }
  0x1a   :  { %p8178_p10 = pnand %p8176_p9, %p8173_p8 }
  0x1c   :  { %8181 = shalt.err (!%p8178_p10)
}
  0x1d   :  { %s8182_s22 = scalar_lea.vmem %s64_s13, 1024  ;;  %p8187_p12 = scmp.lt.s32.totalorder %s64_s13, %s64_s13 }
  0x1e   :  { %p8183_p11 = scmp.ne.s32.totalorder %s64_s13, %s8182_s22  ;;  %p8188_p13 = scmp.lt.s32.totalorder %s8182_s22, %s8182_s22 }
  0x20   :  { %p8189_p0 = por %p8188_p13, %p8187_p12 }
  0x22   :  { %p8190_p1 = pnand %p8189_p0, %p8183_p11 }
  0x24   :  { %8193 = shalt.err (!%p8190_p1)
}
  0x25   :  { %s8364_s1 = smov 256   ;;  %s8365_s18 = smov 16  }
  0x26   :  { %69 = dma.hbm_to_vmem [thread:$0]  %s9430_s3, 1024, %s64_s13, [#allocation10], %s8364_s1, %s8364_s1, %s8365_s18  }
  0x27   :  { %s8366_s25 = smov [#allocation12]   ;;  %s8367_s29 = smov [#allocation3]  }
  0x28   :  { %s89_s26 = sshll.u32 %s8366_s25, 4  ;;  %s27_s30 = sshll.u32 %s8367_s29, 4  ;;  %s90_s26 = int_to_ptr.vmem [resolvable:$true] %s89_s26  ;;  %s8471_s30 = int_to_ptr.vmem [resolvable:$true] %s27_s30 }
  0x29   :  { %s8194_s15 = scalar_lea.hbm %s9433_s6, 512 }
  0x2a   :  { %p8195_p2 = scmp.ne.s32.totalorder %s9433_s6, %s8194_s15  ;;  %p8198_p3 = scmp.lt.u32.totalorder %s8194_s15, %s9433_s6 }
  0x2c   :  { %p8200_p4 = pnand %p8198_p3, %p8195_p2 }
  0x2e   :  { %8203 = shalt.err (!%p8200_p4)
}
  0x2f   :  { %s8204_s3 = scalar_lea.vmem %s90_s26, 512  ;;  %p8209_p6 = scmp.lt.s32.totalorder %s90_s26, %s90_s26 }
  0x30   :  { %p8205_p5 = scmp.ne.s32.totalorder %s90_s26, %s8204_s3  ;;  %p8210_p7 = scmp.lt.s32.totalorder %s8204_s3, %s8204_s3 }
  0x32   :  { %p8211_p8 = por %p8210_p7, %p8209_p6 }
  0x34   :  { %p8212_p9 = pnand %p8211_p8, %p8205_p5 }
  0x36   :  { %8215 = shalt.err (!%p8212_p9)
}
  0x37   :  { %95 = dma.hbm_to_vmem [thread:$0]  %s9433_s6, 512, %s90_s26, [#allocation13], %s8361_s27, %s8361_s27, %s8362_s28  }
  0x38   :  { %s8216_s24 = scalar_lea.hbm %s9427_s0, 512 }
  0x39   :  { %p8217_p10 = scmp.ne.s32.totalorder %s9427_s0, %s8216_s24  ;;  %p8220_p11 = scmp.lt.u32.totalorder %s8216_s24, %s9427_s0 }
  0x3b   :  { %p8222_p12 = pnand %p8220_p11, %p8217_p10 }
  0x3d   :  { %8225 = shalt.err (!%p8222_p12)
}
  0x3e   :  { %s8226_s15 = scalar_lea.vmem %s8471_s30, 512  ;;  %p8231_p0 = scmp.lt.s32.totalorder %s8471_s30, %s8471_s30 }
  0x3f   :  { %p8227_p13 = scmp.ne.s32.totalorder %s8471_s30, %s8226_s15  ;;  %p8232_p1 = scmp.lt.s32.totalorder %s8226_s15, %s8226_s15 }
  0x41   :  { %p8233_p2 = por %p8232_p1, %p8231_p0 }
  0x43   :  { %p8234_p3 = pnand %p8233_p2, %p8227_p13 }
  0x45   :  { %8237 = shalt.err (!%p8234_p3)
}
  0x46   :  { %s8368_s6 = smov 64   ;;  %s8369_s26 = smov 4  }
  0x47   :  { %33 = dma.hbm_to_vmem [thread:$0]  %s9427_s0, 512, %s8471_s30, [#allocation4], %s8368_s6, %s8368_s6, %s8369_s26  }
  0x48   :  { %s8370_s19 = smov [#allocation8]   ;;  %s8371_s3 = smov [#allocation11]  }
  0x49   :  { %s51_s20 = sshll.u32 %s8370_s19, 4  ;;  %s75_s13 = sshll.u32 %s8371_s3, 4  ;;  %s52_s20 = int_to_ptr.vmem [resolvable:$true] %s51_s20  ;;  %s8507_s13 = int_to_ptr.vmem [resolvable:$true] %s75_s13 }
  0x4a   :  { %s8238_s23 = scalar_lea.hbm %s9429_s2, 512 }
  0x4b   :  { %p8239_p4 = scmp.ne.s32.totalorder %s9429_s2, %s8238_s23  ;;  %p8242_p5 = scmp.lt.u32.totalorder %s8238_s23, %s9429_s2 }
  0x4d   :  { %p8244_p6 = pnand %p8242_p5, %p8239_p4 }
  0x4f   :  { %8247 = shalt.err (!%p8244_p6)
}
  0x50   :  { %s8248_s0 = scalar_lea.vmem %s52_s20, 512  ;;  %p8253_p8 = scmp.lt.s32.totalorder %s52_s20, %s52_s20 }
  0x51   :  { %p8249_p7 = scmp.ne.s32.totalorder %s52_s20, %s8248_s0  ;;  %p8254_p9 = scmp.lt.s32.totalorder %s8248_s0, %s8248_s0 }
  0x53   :  { %p8255_p10 = por %p8254_p9, %p8253_p8 }
  0x55   :  { %p8256_p11 = pnand %p8255_p10, %p8249_p7 }
  0x57   :  { %8259 = shalt.err (!%p8256_p11)
}
  0x58   :  { %57 = dma.hbm_to_vmem [thread:$0]  %s9429_s2, 512, %s52_s20, [#allocation7], %s8361_s27, %s8361_s27, %s8362_s28  }
  0x59   :  { %s8260_s16 = scalar_lea.hbm %s9431_s4, 1024 }
  0x5a   :  { %p8261_p12 = scmp.ne.s32.totalorder %s9431_s4, %s8260_s16  ;;  %p8264_p13 = scmp.lt.u32.totalorder %s8260_s16, %s9431_s4 }
  0x5c   :  { %p8266_p0 = pnand %p8264_p13, %p8261_p12 }
  0x5e   :  { %8269 = shalt.err (!%p8266_p0)
}
  0x5f   :  { %s8270_s22 = scalar_lea.vmem %s8507_s13, 1024  ;;  %p8275_p2 = scmp.lt.s32.totalorder %s8507_s13, %s8507_s13 }
  0x60   :  { %p8271_p1 = scmp.ne.s32.totalorder %s8507_s13, %s8270_s22  ;;  %p8276_p3 = scmp.lt.s32.totalorder %s8270_s22, %s8270_s22 }
  0x62   :  { %p8277_p4 = por %p8276_p3, %p8275_p2 }
  0x64   :  { %p8278_p5 = pnand %p8277_p4, %p8271_p1 }
  0x66   :  { %8281 = shalt.err (!%p8278_p5)
}
  0x67   :  { %81 = dma.hbm_to_vmem [thread:$0]  %s9431_s4, 1024, %s8507_s13, [#allocation10], %s8364_s1, %s8364_s1, %s8365_s18  }
  0x68   :  { %s8372_s23 = smov [#allocation14]   ;;  %s8373_s25 = smov [#allocation15]  }
  0x69   :  { %s101_s24 = sshll.u32 %s8372_s23, 4  ;;  %s113_s29 = sshll.u32 %s8373_s25, 4  ;;  %s102_s24 = int_to_ptr.vmem [resolvable:$true] %s101_s24  ;;  %s8544_s29 = int_to_ptr.vmem [resolvable:$true] %s113_s29 }
  0x6a   :  { %s8282_s30 = scalar_lea.hbm %s9434_s7, 512 }
  0x6b   :  { %p8283_p6 = scmp.ne.s32.totalorder %s9434_s7, %s8282_s30  ;;  %p8286_p7 = scmp.lt.u32.totalorder %s8282_s30, %s9434_s7 }
  0x6d   :  { %p8288_p8 = pnand %p8286_p7, %p8283_p6 }
  0x6f   :  { %8291 = shalt.err (!%p8288_p8)
}
  0x70   :  { %s8292_s4 = scalar_lea.vmem %s102_s24, 512  ;;  %p8297_p10 = scmp.lt.s32.totalorder %s102_s24, %s102_s24 }
  0x71   :  { %p8293_p9 = scmp.ne.s32.totalorder %s102_s24, %s8292_s4  ;;  %p8298_p11 = scmp.lt.s32.totalorder %s8292_s4, %s8292_s4 }
  0x73   :  { %p8299_p12 = por %p8298_p11, %p8297_p10 }
  0x75   :  { %p8300_p13 = pnand %p8299_p12, %p8293_p9 }
  0x77   :  { %8303 = shalt.err (!%p8300_p13)
}
  0x78   :  { %107 = dma.hbm_to_vmem [thread:$0]  %s9434_s7, 512, %s102_s24, [#allocation13], %s8361_s27, %s8361_s27, %s8362_s28  }
  0x79   :  { %s8304_s19 = scalar_lea.hbm %s9435_s8, 512 }
  0x7a   :  { %p8305_p0 = scmp.ne.s32.totalorder %s9435_s8, %s8304_s19  ;;  %p8308_p1 = scmp.lt.u32.totalorder %s8304_s19, %s9435_s8 }
  0x7c   :  { %p8310_p2 = pnand %p8308_p1, %p8305_p0 }
  0x7e   :  { %8313 = shalt.err (!%p8310_p2)
}
  0x7f   :  { %s8314_s20 = scalar_lea.vmem %s8544_s29, 512  ;;  %p8319_p4 = scmp.lt.s32.totalorder %s8544_s29, %s8544_s29 }
  0x80   :  { %p8315_p3 = scmp.ne.s32.totalorder %s8544_s29, %s8314_s20  ;;  %p8320_p5 = scmp.lt.s32.totalorder %s8314_s20, %s8314_s20 }
  0x82   :  { %p8321_p6 = por %p8320_p5, %p8319_p4 }
  0x84   :  { %p8322_p7 = pnand %p8321_p6, %p8315_p3 }
  0x86   :  { %8325 = shalt.err (!%p8322_p7)
}
  0x87   :  { %119 = dma.hbm_to_vmem [thread:$0]  %s9435_s8, 512, %s8544_s29, [#allocation16], %s8361_s27, %s8361_s27, %s8362_s28  }
  0x88   :  { %8348 = dma.done.wait [#allocation4], 512  }
  0x89   :  { %8349 = vsyncadd [#allocation4], 4294966784 }
  0x8a   :  { %8350 = dma.done.wait [#allocation7], 1024  }
  0x8b   :  { %8351 = vsyncadd [#allocation7], 4294966272 }
  0x8c   :  { %8352 = dma.done.wait [#allocation10], 2048  }
  0x8d   :  { %8353 = vsyncadd [#allocation10], 4294965248 }
  0x8e   :  { %8354 = dma.done.wait [#allocation13], 1024  }
  0x8f   :  { %8355 = vsyncadd [#allocation13], 4294966272 }
  0x90   :  { %8356 = dma.done.wait [#allocation16], 512  }
  0x91   :  { %8357 = vsyncadd [#allocation16], 4294966784  ;;  %v8374_v0 = vmov 0.0|0.0   ;;  %vm8375_vm0 = vmmov 0   ;;  %v8376_v1 = vmov 0.0   ;;  %v193_v2 = vld [vmem:[#allocation6] sm:$0xff] }
  0x92   :  { %7457 = vmatprep.subr.bf16.mxu0 %v8374_v0  ;;  %7463 = vmatprep.subr.bf16.mxu1 %v8374_v0  ;;  %v194_v3 = vld [vmem:[#allocation6 + $0x8] sm:$0xff]  ;;  %v296_v4 = vld [vmem:[#allocation8] sm:$0xff]  ;;  %v195_v7 = vld [vmem:[#allocation6 + $0x10] sm:$0xff]  ;;  %s8377_s8 = smov 32   ;;  %vm197_vm1 = vcmask 261120  }
  0x93   :  { %6937 = vmatprep.mubr.msk.f32.mxu0 %vm8375_vm0, %v8376_v1  ;;  %6948 = vmatprep.mubr.msk.f32.mxu1 %vm8375_vm0, %v8376_v1  ;;  %v8587_v5 = vpack.c.bf16 %v194_v3, %v193_v2  ;;  %v297_v6 = vld [vmem:[#allocation8 + $0x8] sm:$0xff]  ;;  %v196_v8 = vld [vmem:[#allocation6 + $0x18] sm:$0xff]  ;;  %v298_v10 = vld [vmem:[#allocation8 + $0x10] sm:$0xff] }
  0x94   :  { %v8589_v9 = vpack.c.bf16 %v297_v6, %v296_v4  ;;  %v299_v11 = vld [vmem:[#allocation8 + $0x18] sm:$0xff]  ;;  %v8592_v12 = vpack.c.bf16 %v196_v8, %v195_v7  ;;  %v190_v15 = vld [vmem:[#allocation3] sm:$0xf]  ;;  %v400_v43 = vld [vmem:[#allocation9 + $0x8] sm:$0xff]  ;;  %v150_v8 = vlaneseq }
  0x95   :  { %7459 = vmatpush3.bf16.msra.mxu0 %v8587_v5  ;;  %v8596_v13 = vpack.c.bf16 %v299_v11, %v298_v10  ;;  %v192_v14 = vld [vmem:[#allocation3 + $0x1c] sm:$0xf]  ;;  %v399_v45 = vld [vmem:[#allocation9] sm:$0xff]  ;;  %v401_v47 = vld [vmem:[#allocation9 + $0x10] sm:$0xff]  ;;  %v8378_v10 = vmov 1983009808  }
  0x96   :  { %7460 = vmatprep.subr.bf16.mxu0 %v8374_v0  ;;  %7465 = vmatpush3.bf16.msra.mxu1 %v8589_v9  ;;  %v371_v16 = vrot.slane %v192_v14, 2  ;;  %v402_v44 = vld [vmem:[#allocation9 + $0x18] sm:$0xff]  ;;  %v404_v48 = vld [vmem:[#allocation9 + $0x28] sm:$0xff]  ;;  %v8617_v50 = vpack.c.bf16 %v401_v47, %v399_v45  ;;  %v403_v54 = vld [vmem:[#allocation9 + $0x20] sm:$0xff]  ;;  %v409_v11 = vunpack.c.l.s4 %v8378_v10  ;;  %v151_v14 = vshrl.u32 %v150_v8, 7 }
  0x97   :  { %7466 = vmatprep.subr.bf16.mxu1 %v8374_v0  ;;  %v8615_v46 = vpack.c.bf16 %v402_v44, %v400_v43  ;;  %v406_v49 = vld [vmem:[#allocation9 + $0x38] sm:$0xff]  ;;  %v506_v52 = vld [vmem:[#allocation11 + $0x8] sm:$0xff]  ;;  %v405_v56 = vld [vmem:[#allocation9 + $0x30] sm:$0xff] }
  0x98   :  { %v8619_v51 = vpack.c.bf16 %v406_v49, %v404_v48  ;;  %v508_v53 = vld [vmem:[#allocation11 + $0x18] sm:$0xff]  ;;  %v505_v57 = vld [vmem:[#allocation11] sm:$0xff]  ;;  %v507_v58 = vld [vmem:[#allocation11 + $0x10] sm:$0xff]  ;;  %v8625_v60 = vpack.c.bf16 %v405_v56, %v403_v54 }
  0x99   :  { %7462 = vmatpush3.bf16.msra.mxu0 %v8592_v12  ;;  %v8622_v55 = vpack.c.bf16 %v508_v53, %v506_v52  ;;  %v8627_v61 = vpack.c.bf16 %v507_v58, %v505_v57  ;;  %v510_v62 = vld [vmem:[#allocation11 + $0x28] sm:$0xff]  ;;  %v512_v63 = vld [vmem:[#allocation11 + $0x38] sm:$0xff]  ;;  %v509_v4 = vld [vmem:[#allocation11 + $0x20] sm:$0xff] }
  0x9a   :  { %7468 = vmatpush3.bf16.msra.mxu1 %v8596_v13  ;;  %7470 = vmatprep.subr.bf16.mxu0 %v8615_v46  ;;  %v8631_v2 = vpack.c.bf16 %v512_v63, %v510_v62  ;;  %v511_v6 = vld [vmem:[#allocation11 + $0x30] sm:$0xff]  ;;  %v612_v43 = vld [vmem:[#allocation3 + $0x18] sm:$0xf] }
  0x9b   :  { %7478 = vmatprep.subr.bf16.mxu1 %v8622_v55  ;;  %v8639_v7 = vpack.c.bf16 %v511_v6, %v509_v4  ;;  %v787_v52 = vrot.slane %v612_v43, 2 }
  0x9c   :  { %6938 = vmatmul.mubr.f32.vlgmr.msra.gmra.mrb[0].mxu0 %v8376_v1 }
  0x9d   :  { %6949 = vmatmul.mubr.f32.vlgmr.msra.gmra.mrb[0].mxu1 %v8376_v1  ;;  %483 = vmatprep.mubr.f32.mxu0 %v8376_v1 }
  0x9e   :  { %589 = vmatprep.mubr.f32.mxu1 %v8376_v1  ;;  %7472 = vmatpush1.bf16.msra.mxu0 %v8617_v50 }
  0x9f   :  { %7474 = vmatprep.subr.bf16.mxu0 %v8619_v51  ;;  %7480 = vmatpush1.bf16.msra.mxu1 %v8627_v61 }
  0xa0   :  { %7482 = vmatprep.subr.bf16.mxu1 %v8631_v2 }
  0xa2   :  { %7476 = vmatpush1.bf16.msra.mxu0 %v8625_v60 }
  0xa3   :  { %7485 = vmatprep.subr.bf16.mxu0 %v8374_v0  ;;  %7484 = vmatpush1.bf16.msra.mxu1 %v8639_v7 }
  0xa4   :  { %7491 = vmatprep.subr.bf16.mxu1 %v8374_v0 }
 0x16f   :  { %v267_v17 = vpop.f32.mrb[0].mxu0 }
 0x170   :  { %v271_v18 = vadd.f32 %v267_v17, %v190_v15  ;;  %v6939_v19 = vpop.f32.mrb[1].mxu0  ;;  %v366_v20 = vpop.f32.mrb[0].mxu1  ;;  %v410_v15 = vunpack.c.0.s8 %v409_v11 }
 0x171   :  { %v373_v21 = vadd.f32 %v371_v16, %v366_v20  ;;  %v6950_v22 = vpop.f32.mrb[1].mxu1 }
 0x172   :  { %7894 = vtanh.f32 %v271_v18  ;;  %v6597_v25 = vmul.f32 -1.442695, %v271_v18  ;;  %v8643_v16 = vsub.s32 %v410_v15, %v151_v14 }
 0x173   :  { %7896 = vtanh.f32 %v373_v21  ;;  %v6598_v26 = vmul.f32 -1.442695, %v373_v21 }
 0x174   :  { %7898 = vpow2.f32 %v6597_v25  ;;  %v152_v25 = vsub.s32 0, %v151_v14 }
 0x175   :  { %7900 = vpow2.f32 %v6598_v26  ;;  %v156_v26 = vsub.s32 1, %v151_v14 }
 0x17c   :  { %v7895_v23 = vpop.eup %7894 }
 0x17d   :  { %281 = vrot.lane.b32.xlu0 %v7895_v23, %s8368_s6  ;;  %v7897_v24 = vpop.eup %7896 }
 0x17e   :  { %v7899_v27 = vpop.eup %7898 }
 0x17f   :  { %v275_v28 = vadd.f32 1.0, %v7899_v27  ;;  %v7901_v29 = vpop.eup %7900  ;;  %v148_v27 = vld [vmem:[%s9432_s5] sm:$0x3] }
 0x180   :  { %v377_v30 = vadd.f32 1.0, %v7901_v29  ;;  %v157_v29 = vrot.slane %v148_v27, %v156_v26 }
 0x181   :  { %383 = vrot.lane.b32.xlu0 %v7897_v24, %s8368_s6  ;;  %7902 = vrcp.f32 %v275_v28  ;;  %v153_v28 = vrot.slane %v148_v27, %v152_v25 }
 0x182   :  { %7904 = vrcp.f32 %v377_v30 }
 0x183   :  { %v158_v30 = vcombine.low %v153_v28, %v157_v29 }
 0x185   :  { %6588 = vst.sshfl [vmem:[#allocation2] sm:$0x33 pattern:$0x76325410] %v158_v30 }
 0x186   :  { %6589 = vst.sshfl [vmem:[#allocation2 + $0x4] sm:$0x33 pattern:$0x76325410] %v158_v30 }
 0x187   :  { %6590 = vst.sshfl [vmem:[#allocation2 + $0x8] sm:$0x33 pattern:$0x76325410] %v158_v30 }
 0x188   :  { %6591 = vst.sshfl [vmem:[#allocation2 + $0xc] sm:$0x33 pattern:$0x76325410] %v158_v30 }
 0x189   :  { %6592 = vst.sshfl [vmem:[#allocation2 + $0x10] sm:$0x33 pattern:$0x76325410] %v158_v30 }
 0x18a   :  { %6593 = vst.sshfl [vmem:[#allocation2 + $0x14] sm:$0x33 pattern:$0x76325410] %v158_v30 }
 0x18b   :  { %v7903_v31 = vpop.eup %7902  ;;  %6594 = vst.sshfl [vmem:[#allocation2 + $0x18] sm:$0x33 pattern:$0x76325410] %v158_v30 }
 0x18c   :  { %v7905_v34 = vpop.eup %7904  ;;  %v279_v37 = vmul.f32 0.0, %v7903_v31  ;;  %6595 = vst.sshfl [vmem:[#allocation2 + $0x1c] sm:$0x33 pattern:$0x76325410] %v158_v30 }
 0x18d   :  { %v381_v40 = vmul.f32 0.0, %v7905_v34 }
 0x193   :  { %v504_v44 = vld [vmem:[#allocation2 + $0x1c] sm:$0xf] }
 0x1ef   :  { %v282_v32 = vpop.permute.xlu0 %281 }
 0x1f0   :  { %v284_v33 = vmul.f32 %v7903_v31, %v282_v32 }
 0x1f2   :  { %286 = vrot.lane.b32.xlu1 %v284_v33, %s8377_s8 }
 0x1f3   :  { %v384_v35 = vpop.permute.xlu0 %383 }
 0x1f4   :  { %v386_v36 = vmul.f32 %v7905_v34, %v384_v35 }
 0x1f6   :  { %388 = vrot.lane.b32.xlu1 %v386_v36, %s8377_s8 }
 0x264   :  { %v287_v38 = vpop.permute.xlu1 %286 }
 0x265   :  { %v8609_v39 = vadd.f32 %v287_v38, %v279_v37 }
 0x267   :  { %7906 = vtanh.f32 %v8609_v39 }
 0x268   :  { %v389_v41 = vpop.permute.xlu1 %388 }
 0x269   :  { %v8612_v42 = vadd.f32 %v389_v41, %v381_v40  ;;  %v610_v41 = vld [vmem:[#allocation3 + $0x4] sm:$0xf] }
 0x26b   :  { %7908 = vtanh.f32 %v8612_v42 }
 0x271   :  { %v7907_v59 = vpop.eup %7906 }
 0x272   :  { %292 = vrot.lane.b32.xlu0 %v7907_v59, %s8368_s6 }
 0x275   :  { %v7909_v3 = vpop.eup %7908 }
 0x276   :  { %394 = vrot.lane.b32.xlu1 %v7909_v3, %s8368_s6 }
 0x2e4   :  { %v293_v17 = vpop.permute.xlu0 %292 }
 0x2e5   :  { %v295_v18 = vmul.f32 %v7903_v31, %v293_v17 }
 0x2e7   :  { %v414_v19 = vrot.slane %v295_v18, %v8643_v16 }
 0x2e8   :  { %v395_v20 = vpop.permute.xlu1 %394 }
 0x2e9   :  { %v397_v21 = vmul.f32 %v7905_v34, %v395_v20  ;;  %415 = vrot.lane.b32.xlu0 %v414_v19, %s8377_s8  ;;  %v398_v34 = vld [vmem:[#allocation2] sm:$0xf] }
 0x2eb   :  { %v520_v22 = vrot.slane %v397_v21, %v8643_v16 }
 0x2ed   :  { %521 = vrot.lane.b32.xlu1 %v520_v22, %s8377_s8 }
 0x35b   :  { %v416_v23 = vpop.permute.xlu0 %415 }
 0x35c   :  { %6599 = vmatmul.mubr.msk.f32.vlgmr.msra.gmra.mrb[2].mxu0 %vm197_vm1, %v416_v23 }
 0x35d   :  { %7487 = vmatpush3.bf16.msra.mxu0 %v8587_v5  ;;  %6959 = vmatprep.mubr.msk.f32.mxu0 %vm8375_vm0, %v8376_v1 }
 0x35e   :  { %7488 = vmatprep.subr.bf16.mxu0 %v8374_v0 }
 0x35f   :  { %v522_v24 = vpop.permute.xlu1 %521 }
 0x360   :  { %6600 = vmatmul.mubr.msk.f32.vlgmr.msra.gmra.mrb[2].mxu1 %vm197_vm1, %v522_v24 }
 0x361   :  { %7490 = vmatpush3.bf16.msra.mxu0 %v8592_v12  ;;  %7493 = vmatpush3.bf16.msra.mxu1 %v8589_v9 }
 0x362   :  { %7494 = vmatprep.subr.bf16.mxu1 %v8374_v0  ;;  %6970 = vmatprep.mubr.msk.f32.mxu1 %vm8375_vm0, %v8376_v1 }
 0x363   :  { %7498 = vmatprep.subr.bf16.mxu0 %v8615_v46 }
 0x364   :  { %6960 = vmatmul.mubr.msk.f32.vlgmr.msra.gmra.mrb[4].mxu0 %vm197_vm1, %v416_v23 }
 0x365   :  { %7496 = vmatpush3.bf16.msra.mxu1 %v8596_v13  ;;  %7500 = vmatpush1.bf16.msra.mxu0 %v8617_v50 }
 0x366   :  { %7502 = vmatprep.subr.bf16.mxu0 %v8619_v51  ;;  %7506 = vmatprep.subr.bf16.mxu1 %v8622_v55 }
 0x367   :  { %900 = vmatprep.mubr.f32.mxu0 %v8376_v1 }
 0x368   :  { %6971 = vmatmul.mubr.msk.f32.vlgmr.msra.gmra.mrb[4].mxu1 %vm197_vm1, %v522_v24 }
 0x369   :  { %7504 = vmatpush1.bf16.msra.mxu0 %v8625_v60  ;;  %7508 = vmatpush1.bf16.msra.mxu1 %v8627_v61 }
 0x36a   :  { %7510 = vmatprep.subr.bf16.mxu1 %v8631_v2  ;;  %7513 = vmatprep.subr.bf16.mxu0 %v8374_v0 }
 0x36b   :  { %1006 = vmatprep.mubr.f32.mxu1 %v8376_v1 }
 0x36d   :  { %7512 = vmatpush1.bf16.msra.mxu1 %v8639_v7 }
 0x36e   :  { %7519 = vmatprep.subr.bf16.mxu1 %v8374_v0 }
 0x42f   :  { %v485_v31 = vpop.f32.mrb[2].mxu0 }
 0x430   :  { %v487_v32 = vpop.f32.mrb[3].mxu0 }
 0x431   :  { %v492_v33 = vcombine.low %v485_v31, %v487_v32 }
 0x433   :  { %v499_v35 = vrot.slane %v492_v33, %v8643_v16  ;;  %v591_v36 = vpop.f32.mrb[2].mxu1 }
 0x434   :  { %v593_v37 = vpop.f32.mrb[3].mxu1 }
 0x435   :  { %v501_v38 = vadd.f32 %v499_v35, %v398_v34  ;;  %v598_v40 = vcombine.low %v591_v36, %v593_v37  ;;  %v815_v36 = vld [vmem:[#allocation2 + $0x4] sm:$0xf] }
 0x437   :  { %502 = vst [vmem:[#allocation2] sm:$0xf] %v501_v38  ;;  %v605_v45 = vrot.slane %v598_v40, %v8643_v16  ;;  %v683_v47 = vpop.f32.mrb[4].mxu0 }
 0x438   :  { %v687_v48 = vadd.f32 %v683_v47, %v610_v41  ;;  %v6961_v49 = vpop.f32.mrb[5].mxu0  ;;  %v921_v47 = vld [vmem:[#allocation2 + $0x18] sm:$0xf] }
 0x439   :  { %v607_v53 = vadd.f32 %v605_v45, %v504_v44  ;;  %v1027_v44 = vld [vmem:[#allocation3 + $0x8] sm:$0xf]  ;;  %v1029_v45 = vld [vmem:[#allocation3 + $0x14] sm:$0xf] }
 0x43a   :  { %7910 = vtanh.f32 %v687_v48  ;;  %v6602_v62 = vmul.f32 -1.442695, %v687_v48 }
 0x43b   :  { %608 = vst [vmem:[#allocation2 + $0x1c] sm:$0xf] %v607_v53  ;;  %v782_v54 = vpop.f32.mrb[4].mxu1 }
 0x43c   :  { %v789_v56 = vadd.f32 %v787_v52, %v782_v54  ;;  %v6972_v57 = vpop.f32.mrb[5].mxu1  ;;  %v1204_v54 = vrot.slane %v1029_v45, 2 }
 0x43e   :  { %7912 = vtanh.f32 %v789_v56  ;;  %v6604_v63 = vmul.f32 -1.442695, %v789_v56 }
 0x43f   :  { %7914 = vpow2.f32 %v6602_v62 }
 0x440   :  { %7916 = vpow2.f32 %v6604_v63 }
 0x444   :  { %v7911_v58 = vpop.eup %7910 }
 0x445   :  { %697 = vrot.lane.b32.xlu0 %v7911_v58, %s8368_s6 }
 0x448   :  { %v7913_v59 = vpop.eup %7912 }
 0x449   :  { %799 = vrot.lane.b32.xlu1 %v7913_v59, %s8368_s6  ;;  %v7915_v3 = vpop.eup %7914 }
 0x44a   :  { %v691_v4 = vadd.f32 1.0, %v7915_v3  ;;  %v7917_v6 = vpop.eup %7916 }
 0x44b   :  { %v793_v8 = vadd.f32 1.0, %v7917_v6 }
 0x44c   :  { %7918 = vrcp.f32 %v691_v4 }
 0x44d   :  { %7920 = vrcp.f32 %v793_v8 }
 0x456   :  { %v7919_v10 = vpop.eup %7918 }
 0x457   :  { %v7921_v15 = vpop.eup %7920  ;;  %v695_v19 = vmul.f32 %v7919_v10, %v8609_v39 }
 0x458   :  { %v797_v22 = vmul.f32 %v7921_v15, %v8612_v42 }
 0x4b7   :  { %v698_v11 = vpop.permute.xlu0 %697 }
 0x4b8   :  { %v700_v14 = vmul.f32 %v7919_v10, %v698_v11 }
 0x4ba   :  { %702 = vrot.lane.b32.xlu0 %v700_v14, %s8377_s8 }
 0x4bb   :  { %v800_v17 = vpop.permute.xlu1 %799 }
 0x4bc   :  { %v802_v18 = vmul.f32 %v7921_v15, %v800_v17 }
 0x4be   :  { %804 = vrot.lane.b32.xlu1 %v802_v18, %s8377_s8 }
 0x52c   :  { %v703_v20 = vpop.permute.xlu0 %702 }
 0x52d   :  { %v8685_v21 = vadd.f32 %v703_v20, %v695_v19 }
 0x52f   :  { %7922 = vtanh.f32 %v8685_v21 }
 0x530   :  { %v805_v23 = vpop.permute.xlu1 %804 }
 0x531   :  { %v8689_v24 = vadd.f32 %v805_v23, %v797_v22 }
 0x533   :  { %7924 = vtanh.f32 %v8689_v24 }
 0x539   :  { %v7923_v25 = vpop.eup %7922 }
 0x53a   :  { %708 = vrot.lane.b32.xlu0 %v7923_v25, %s8368_s6 }
 0x53d   :  { %v7925_v26 = vpop.eup %7924 }
 0x53e   :  { %810 = vrot.lane.b32.xlu1 %v7925_v26, %s8368_s6 }
 0x5ac   :  { %v709_v27 = vpop.permute.xlu0 %708 }
 0x5ad   :  { %v711_v39 = vmul.f32 %v7919_v10, %v709_v27 }
 0x5af   :  { %v831_v28 = vrot.slane %v711_v39, %v8643_v16 }
 0x5b0   :  { %v811_v29 = vpop.permute.xlu1 %810 }
 0x5b1   :  { %v813_v30 = vmul.f32 %v7921_v15, %v811_v29  ;;  %832 = vrot.lane.b32.xlu0 %v831_v28, %s8377_s8 }
 0x5b3   :  { %v937_v42 = vrot.slane %v813_v30, %v8643_v16 }
 0x5b5   :  { %938 = vrot.lane.b32.xlu1 %v937_v42, %s8377_s8 }
 0x623   :  { %v833_v31 = vpop.permute.xlu0 %832 }
 0x624   :  { %6605 = vmatmul.mubr.msk.f32.vlgmr.msra.gmra.mrb[6].mxu0 %vm197_vm1, %v833_v31 }
 0x625   :  { %7515 = vmatpush3.bf16.msra.mxu0 %v8587_v5  ;;  %6981 = vmatprep.mubr.msk.f32.mxu0 %vm8375_vm0, %v8376_v1 }
 0x626   :  { %7516 = vmatprep.subr.bf16.mxu0 %v8374_v0 }
 0x627   :  { %v939_v32 = vpop.permute.xlu1 %938 }
 0x628   :  { %6606 = vmatmul.mubr.msk.f32.vlgmr.msra.gmra.mrb[6].mxu1 %vm197_vm1, %v939_v32 }
 0x629   :  { %7518 = vmatpush3.bf16.msra.mxu0 %v8592_v12  ;;  %7521 = vmatpush3.bf16.msra.mxu1 %v8589_v9 }
 0x62a   :  { %7522 = vmatprep.subr.bf16.mxu1 %v8374_v0  ;;  %6992 = vmatprep.mubr.msk.f32.mxu1 %vm8375_vm0, %v8376_v1 }
 0x62b   :  { %7526 = vmatprep.subr.bf16.mxu0 %v8615_v46 }
 0x62c   :  { %6982 = vmatmul.mubr.msk.f32.vlgmr.msra.gmra.mrb[8].mxu0 %vm197_vm1, %v833_v31 }
 0x62d   :  { %7524 = vmatpush3.bf16.msra.mxu1 %v8596_v13  ;;  %7528 = vmatpush1.bf16.msra.mxu0 %v8617_v50 }
 0x62e   :  { %7530 = vmatprep.subr.bf16.mxu0 %v8619_v51  ;;  %7534 = vmatprep.subr.bf16.mxu1 %v8622_v55 }
 0x62f   :  { %1317 = vmatprep.mubr.f32.mxu0 %v8376_v1 }
 0x630   :  { %6993 = vmatmul.mubr.msk.f32.vlgmr.msra.gmra.mrb[8].mxu1 %vm197_vm1, %v939_v32 }
 0x631   :  { %7532 = vmatpush1.bf16.msra.mxu0 %v8625_v60  ;;  %7536 = vmatpush1.bf16.msra.mxu1 %v8627_v61 }
 0x632   :  { %7538 = vmatprep.subr.bf16.mxu1 %v8631_v2  ;;  %7541 = vmatprep.subr.bf16.mxu0 %v8374_v0 }
 0x633   :  { %1423 = vmatprep.mubr.f32.mxu1 %v8376_v1 }
 0x635   :  { %7540 = vmatpush1.bf16.msra.mxu1 %v8639_v7 }
 0x636   :  { %7547 = vmatprep.subr.bf16.mxu1 %v8374_v0 }
 0x6f7   :  { %v902_v33 = vpop.f32.mrb[6].mxu0 }
 0x6f8   :  { %v904_v34 = vpop.f32.mrb[7].mxu0 }
 0x6f9   :  { %v909_v35 = vcombine.low %v902_v33, %v904_v34 }
 0x6fb   :  { %v916_v37 = vrot.slane %v909_v35, %v8643_v16  ;;  %v1008_v38 = vpop.f32.mrb[6].mxu1 }
 0x6fc   :  { %v1010_v40 = vpop.f32.mrb[7].mxu1 }
 0x6fd   :  { %v918_v41 = vadd.f32 %v916_v37, %v815_v36  ;;  %v1015_v43 = vcombine.low %v1008_v38, %v1010_v40  ;;  %v1232_v38 = vld [vmem:[#allocation2 + $0x8] sm:$0xf] }
 0x6ff   :  { %919 = vst [vmem:[#allocation2 + $0x4] sm:$0xf] %v918_v41  ;;  %v1022_v48 = vrot.slane %v1015_v43, %v8643_v16  ;;  %v1100_v49 = vpop.f32.mrb[8].mxu0 }
 0x700   :  { %v1104_v52 = vadd.f32 %v1100_v49, %v1027_v44  ;;  %v6983_v53 = vpop.f32.mrb[9].mxu0  ;;  %v1338_v49 = vld [vmem:[#allocation2 + $0x14] sm:$0xf] }
 0x701   :  { %v1024_v56 = vadd.f32 %v1022_v48, %v921_v47  ;;  %v1444_v47 = vld [vmem:[#allocation3 + $0xc] sm:$0xf]  ;;  %v1446_v48 = vld [vmem:[#allocation3 + $0x10] sm:$0xf] }
 0x702   :  { %7926 = vtanh.f32 %v1104_v52  ;;  %v6608_v3 = vmul.f32 -1.442695, %v1104_v52 }
 0x703   :  { %1025 = vst [vmem:[#allocation2 + $0x18] sm:$0xf] %v1024_v56  ;;  %v1199_v57 = vpop.f32.mrb[8].mxu1 }
 0x704   :  { %v1206_v58 = vadd.f32 %v1204_v54, %v1199_v57  ;;  %v6994_v59 = vpop.f32.mrb[9].mxu1  ;;  %v1621_v57 = vrot.slane %v1446_v48, 2 }
 0x706   :  { %7928 = vtanh.f32 %v1206_v58  ;;  %v6610_v4 = vmul.f32 -1.442695, %v1206_v58 }
 0x707   :  { %7930 = vpow2.f32 %v6608_v3 }
 0x708   :  { %7932 = vpow2.f32 %v6610_v4 }
 0x70c   :  { %v7927_v62 = vpop.eup %7926 }
 0x70d   :  { %1114 = vrot.lane.b32.xlu0 %v7927_v62, %s8368_s6 }
 0x710   :  { %v7929_v63 = vpop.eup %7928 }
 0x711   :  { %1216 = vrot.lane.b32.xlu1 %v7929_v63, %s8368_s6  ;;  %v7931_v6 = vpop.eup %7930 }
 0x712   :  { %v1108_v8 = vadd.f32 1.0, %v7931_v6  ;;  %v7933_v10 = vpop.eup %7932 }
 0x713   :  { %v1210_v11 = vadd.f32 1.0, %v7933_v10 }
 0x714   :  { %7934 = vrcp.f32 %v1108_v8 }
 0x715   :  { %7936 = vrcp.f32 %v1210_v11 }
 0x71e   :  { %v7935_v14 = vpop.eup %7934 }
 0x71f   :  { %v7937_v18 = vpop.eup %7936  ;;  %v1112_v22 = vmul.f32 %v7935_v14, %v8685_v21 }
 0x720   :  { %v1214_v26 = vmul.f32 %v7937_v18, %v8689_v24 }
 0x77f   :  { %v1115_v15 = vpop.permute.xlu0 %1114 }
 0x780   :  { %v1117_v17 = vmul.f32 %v7935_v14, %v1115_v15 }
 0x782   :  { %1119 = vrot.lane.b32.xlu0 %v1117_v17, %s8377_s8 }
 0x783   :  { %v1217_v19 = vpop.permute.xlu1 %1216 }
 0x784   :  { %v1219_v20 = vmul.f32 %v7937_v18, %v1217_v19 }
 0x786   :  { %1221 = vrot.lane.b32.xlu1 %v1219_v20, %s8377_s8 }
 0x7f4   :  { %v1120_v23 = vpop.permute.xlu0 %1119 }
 0x7f5   :  { %v8731_v25 = vadd.f32 %v1120_v23, %v1112_v22 }
 0x7f7   :  { %7938 = vtanh.f32 %v8731_v25 }
 0x7f8   :  { %v1222_v27 = vpop.permute.xlu1 %1221 }
 0x7f9   :  { %v8735_v39 = vadd.f32 %v1222_v27, %v1214_v26 }
 0x7fb   :  { %7940 = vtanh.f32 %v8735_v39 }
 0x801   :  { %v7939_v28 = vpop.eup %7938 }
 0x802   :  { %1125 = vrot.lane.b32.xlu0 %v7939_v28, %s8368_s6 }
 0x805   :  { %v7941_v29 = vpop.eup %7940 }
 0x806   :  { %1227 = vrot.lane.b32.xlu1 %v7941_v29, %s8368_s6 }
 0x874   :  { %v1126_v30 = vpop.permute.xlu0 %1125 }
 0x875   :  { %v1128_v21 = vmul.f32 %v7935_v14, %v1126_v30 }
 0x877   :  { %v1248_v42 = vrot.slane %v1128_v21, %v8643_v16 }
 0x878   :  { %v1228_v31 = vpop.permute.xlu1 %1227 }
 0x879   :  { %v1230_v32 = vmul.f32 %v7937_v18, %v1228_v31  ;;  %1249 = vrot.lane.b32.xlu0 %v1248_v42, %s8377_s8 }
 0x87b   :  { %v1354_v24 = vrot.slane %v1230_v32, %v8643_v16 }
 0x87d   :  { %1355 = vrot.lane.b32.xlu1 %v1354_v24, %s8377_s8 }
 0x8eb   :  { %v1250_v33 = vpop.permute.xlu0 %1249 }
 0x8ec   :  { %6611 = vmatmul.mubr.msk.f32.vlgmr.msra.gmra.mrb[10].mxu0 %vm197_vm1, %v1250_v33 }
 0x8ed   :  { %7543 = vmatpush3.bf16.msra.mxu0 %v8587_v5  ;;  %7003 = vmatprep.mubr.msk.f32.mxu0 %vm8375_vm0, %v8376_v1 }
 0x8ee   :  { %7544 = vmatprep.subr.bf16.mxu0 %v8374_v0 }
 0x8ef   :  { %v1356_v34 = vpop.permute.xlu1 %1355 }
 0x8f0   :  { %6612 = vmatmul.mubr.msk.f32.vlgmr.msra.gmra.mrb[10].mxu1 %vm197_vm1, %v1356_v34 }
 0x8f1   :  { %7546 = vmatpush3.bf16.msra.mxu0 %v8592_v12  ;;  %7549 = vmatpush3.bf16.msra.mxu1 %v8589_v9 }
 0x8f2   :  { %7550 = vmatprep.subr.bf16.mxu1 %v8374_v0  ;;  %7014 = vmatprep.mubr.msk.f32.mxu1 %vm8375_vm0, %v8376_v1 }
 0x8f3   :  { %7554 = vmatprep.subr.bf16.mxu0 %v8615_v46 }
 0x8f4   :  { %7004 = vmatmul.mubr.msk.f32.vlgmr.msra.gmra.mrb[12].mxu0 %vm197_vm1, %v1250_v33 }
 0x8f5   :  { %7552 = vmatpush3.bf16.msra.mxu1 %v8596_v13  ;;  %7556 = vmatpush1.bf16.msra.mxu0 %v8617_v50 }
 0x8f6   :  { %7558 = vmatprep.subr.bf16.mxu0 %v8619_v51  ;;  %7562 = vmatprep.subr.bf16.mxu1 %v8622_v55 }
 0x8f7   :  { %1734 = vmatprep.mubr.f32.mxu0 %v8376_v1 }
 0x8f8   :  { %7015 = vmatmul.mubr.msk.f32.vlgmr.msra.gmra.mrb[12].mxu1 %vm197_vm1, %v1356_v34 }
 0x8f9   :  { %7560 = vmatpush1.bf16.msra.mxu0 %v8625_v60  ;;  %7564 = vmatpush1.bf16.msra.mxu1 %v8627_v61 }
 0x8fa   :  { %7566 = vmatprep.subr.bf16.mxu1 %v8631_v2  ;;  %7569 = vmatprep.subr.bf16.mxu0 %v8374_v0 }
 0x8fb   :  { %1840 = vmatprep.mubr.f32.mxu1 %v8376_v1 }
 0x8fd   :  { %7568 = vmatpush1.bf16.msra.mxu1 %v8639_v7 }
 0x8fe   :  { %7575 = vmatprep.subr.bf16.mxu1 %v8374_v0 }
 0x9bf   :  { %v1319_v35 = vpop.f32.mrb[10].mxu0 }
 0x9c0   :  { %v1321_v36 = vpop.f32.mrb[11].mxu0 }
 0x9c1   :  { %v1326_v37 = vcombine.low %v1319_v35, %v1321_v36 }
 0x9c3   :  { %v1333_v40 = vrot.slane %v1326_v37, %v8643_v16  ;;  %v1425_v41 = vpop.f32.mrb[10].mxu1  ;;  %v1755_v37 = vld [vmem:[#allocation2 + $0x10] sm:$0xf] }
 0x9c4   :  { %v1427_v43 = vpop.f32.mrb[11].mxu1 }
 0x9c5   :  { %v1335_v44 = vadd.f32 %v1333_v40, %v1232_v38  ;;  %v1432_v45 = vcombine.low %v1425_v41, %v1427_v43 }
 0x9c7   :  { %1336 = vst [vmem:[#allocation2 + $0x8] sm:$0xf] %v1335_v44  ;;  %v1439_v52 = vrot.slane %v1432_v45, %v8643_v16  ;;  %v1517_v53 = vpop.f32.mrb[12].mxu0 }
 0x9c8   :  { %v1521_v54 = vadd.f32 %v1517_v53, %v1444_v47  ;;  %v7005_v56 = vpop.f32.mrb[13].mxu0 }
 0x9c9   :  { %v1441_v58 = vadd.f32 %v1439_v52, %v1338_v49 }
 0x9ca   :  { %7942 = vtanh.f32 %v1521_v54  ;;  %v6614_v6 = vmul.f32 -1.442695, %v1521_v54 }
 0x9cb   :  { %1442 = vst [vmem:[#allocation2 + $0x14] sm:$0xf] %v1441_v58  ;;  %v1616_v59 = vpop.f32.mrb[12].mxu1 }
 0x9cc   :  { %v1623_v62 = vadd.f32 %v1621_v57, %v1616_v59  ;;  %v7016_v63 = vpop.f32.mrb[13].mxu1 }
 0x9ce   :  { %7944 = vtanh.f32 %v1623_v62  ;;  %v6616_v8 = vmul.f32 -1.442695, %v1623_v62 }
 0x9cf   :  { %7946 = vpow2.f32 %v6614_v6 }
 0x9d0   :  { %7948 = vpow2.f32 %v6616_v8 }
 0x9d4   :  { %v7943_v3 = vpop.eup %7942 }
 0x9d5   :  { %1531 = vrot.lane.b32.xlu0 %v7943_v3, %s8368_s6 }
 0x9d8   :  { %v7945_v4 = vpop.eup %7944 }
 0x9d9   :  { %1633 = vrot.lane.b32.xlu1 %v7945_v4, %s8368_s6  ;;  %v7947_v10 = vpop.eup %7946 }
 0x9da   :  { %v1525_v11 = vadd.f32 1.0, %v7947_v10  ;;  %v7949_v14 = vpop.eup %7948 }
 0x9db   :  { %v1627_v15 = vadd.f32 1.0, %v7949_v14 }
 0x9dc   :  { %7950 = vrcp.f32 %v1525_v11 }
 0x9dd   :  { %7952 = vrcp.f32 %v1627_v15 }
 0x9e6   :  { %v7951_v17 = vpop.eup %7950 }
 0x9e7   :  { %v7953_v20 = vpop.eup %7952  ;;  %v1529_v26 = vmul.f32 %v7951_v17, %v8731_v25 }
 0x9e8   :  { %v1631_v29 = vmul.f32 %v7953_v20, %v8735_v39 }
 0xa47   :  { %v1532_v18 = vpop.permute.xlu0 %1531 }
 0xa48   :  { %v1534_v19 = vmul.f32 %v7951_v17, %v1532_v18 }
 0xa4a   :  { %1536 = vrot.lane.b32.xlu0 %v1534_v19, %s8377_s8 }
 0xa4b   :  { %v1634_v22 = vpop.permute.xlu1 %1633 }
 0xa4c   :  { %v1636_v23 = vmul.f32 %v7953_v20, %v1634_v22 }
 0xa4e   :  { %1638 = vrot.lane.b32.xlu1 %v1636_v23, %s8377_s8 }
 0xabc   :  { %v1537_v27 = vpop.permute.xlu0 %1536 }
 0xabd   :  { %v8777_v28 = vadd.f32 %v1537_v27, %v1529_v26 }
 0xabf   :  { %7954 = vtanh.f32 %v8777_v28 }
 0xac0   :  { %v1639_v30 = vpop.permute.xlu1 %1638 }
 0xac1   :  { %v8781_v21 = vadd.f32 %v1639_v30, %v1631_v29  ;;  %v2275_v30 = vld [vmem:[#allocation6] sm:$0xff] }
 0xac3   :  { %7956 = vtanh.f32 %v8781_v21 }
 0xac9   :  { %v7955_v42 = vpop.eup %7954 }
 0xaca   :  { %1542 = vrot.lane.b32.xlu0 %v7955_v42, %s8368_s6 }
 0xacd   :  { %v7957_v31 = vpop.eup %7956 }
 0xace   :  { %1644 = vrot.lane.b32.xlu1 %v7957_v31, %s8368_s6  ;;  %v2277_v31 = vld [vmem:[#allocation6 + $0x10] sm:$0xff] }
 0xb3c   :  { %v1543_v32 = vpop.permute.xlu0 %1542 }
 0xb3d   :  { %v1545_v25 = vmul.f32 %v7951_v17, %v1543_v32  ;;  %v2278_v32 = vld [vmem:[#allocation6 + $0x18] sm:$0xff] }
 0xb3f   :  { %v1665_v24 = vrot.slane %v1545_v25, %v8643_v16  ;;  %v2374_v25 = vld [vmem:[#allocation8] sm:$0xff] }
 0xb40   :  { %v1645_v33 = vpop.permute.xlu1 %1644 }
 0xb41   :  { %v1647_v34 = vmul.f32 %v7953_v20, %v1645_v33  ;;  %1666 = vrot.lane.b32.xlu0 %v1665_v24, %s8377_s8  ;;  %v2375_v24 = vld [vmem:[#allocation8 + $0x8] sm:$0xff] }
 0xb43   :  { %v1771_v39 = vrot.slane %v1647_v34, %v8643_v16  ;;  %v8840_v34 = vpack.c.bf16 %v2278_v32, %v2277_v31 }
 0xb45   :  { %1772 = vrot.lane.b32.xlu1 %v1771_v39, %s8377_s8  ;;  %v8842_v39 = vpack.c.bf16 %v2375_v24, %v2374_v25  ;;  %v2583_v25 = vld [vmem:[#allocation11 + $0x8] sm:$0xff]  ;;  %v2585_v24 = vld [vmem:[#allocation11 + $0x18] sm:$0xff] }
 0xbb3   :  { %v1667_v35 = vpop.permute.xlu0 %1666 }
 0xbb4   :  { %6617 = vmatmul.mubr.msk.f32.vlgmr.msra.gmra.mrb[14].mxu0 %vm197_vm1, %v1667_v35 }
 0xbb5   :  { %7571 = vmatpush3.bf16.msra.mxu0 %v8587_v5  ;;  %7025 = vmatprep.mubr.msk.f32.mxu0 %vm8375_vm0, %v8376_v1 }
 0xbb6   :  { %7572 = vmatprep.subr.bf16.mxu0 %v8374_v0 }
 0xbb7   :  { %v1773_v36 = vpop.permute.xlu1 %1772 }
 0xbb8   :  { %6618 = vmatmul.mubr.msk.f32.vlgmr.msra.gmra.mrb[14].mxu1 %vm197_vm1, %v1773_v36 }
 0xbb9   :  { %7574 = vmatpush3.bf16.msra.mxu0 %v8592_v12  ;;  %7577 = vmatpush3.bf16.msra.mxu1 %v8589_v9 }
 0xbba   :  { %7578 = vmatprep.subr.bf16.mxu1 %v8374_v0  ;;  %7036 = vmatprep.mubr.msk.f32.mxu1 %vm8375_vm0, %v8376_v1 }
 0xbbb   :  { %7582 = vmatprep.subr.bf16.mxu0 %v8615_v46 }
 0xbbc   :  { %7026 = vmatmul.mubr.msk.f32.vlgmr.msra.gmra.mrb[16].mxu0 %vm197_vm1, %v1667_v35  ;;  %v2376_v35 = vld [vmem:[#allocation8 + $0x10] sm:$0xff] }
 0xbbd   :  { %7580 = vmatpush3.bf16.msra.mxu1 %v8596_v13  ;;  %7584 = vmatpush1.bf16.msra.mxu0 %v8617_v50  ;;  %v1649_v13 = vld [vmem:[#allocation2 + $0xc] sm:$0xf] }
 0xbbe   :  { %7586 = vmatprep.subr.bf16.mxu0 %v8619_v51  ;;  %7590 = vmatprep.subr.bf16.mxu1 %v8622_v55 }
 0xbbf   :  { %2148 = vmatprep.mubr.f32.mxu0 %v8376_v1 }
 0xbc0   :  { %7037 = vmatmul.mubr.msk.f32.vlgmr.msra.gmra.mrb[16].mxu1 %vm197_vm1, %v1773_v36  ;;  %v2377_v36 = vld [vmem:[#allocation8 + $0x18] sm:$0xff] }
 0xbc1   :  { %7588 = vmatpush1.bf16.msra.mxu0 %v8625_v60  ;;  %7592 = vmatpush1.bf16.msra.mxu1 %v8627_v61  ;;  %v1860_v61 = vld [vmem:[#allocation3 + $0x10] sm:$0xf] }
 0xbc2   :  { %7594 = vmatprep.subr.bf16.mxu1 %v8631_v2  ;;  %7597 = vmatprep.subr.bf16.mxu0 %v8374_v0  ;;  %v1861_v2 = vld [vmem:[#allocation3 + $0xc] sm:$0xf] }
 0xbc3   :  { %2253 = vmatprep.mubr.f32.mxu1 %v8376_v1  ;;  %v2036_v43 = vrot.slane %v1861_v2, 2 }
 0xbc5   :  { %7596 = vmatpush1.bf16.msra.mxu1 %v8639_v7 }
 0xbc6   :  { %7603 = vmatprep.subr.bf16.mxu1 %v8374_v0 }
 0xc87   :  { %v1736_v5 = vpop.f32.mrb[14].mxu0 }
 0xc88   :  { %v1738_v9 = vpop.f32.mrb[15].mxu0 }
 0xc89   :  { %v1743_v12 = vcombine.low %v1736_v5, %v1738_v9  ;;  %v8850_v9 = vpack.c.bf16 %v2377_v36, %v2376_v35  ;;  %v2483_v35 = vld [vmem:[#allocation9 + $0x30] sm:$0xff]  ;;  %v2582_v36 = vld [vmem:[#allocation11] sm:$0xff] }
 0xc8b   :  { %v1750_v46 = vrot.slane %v1743_v12, %v8643_v16  ;;  %v1842_v50 = vpop.f32.mrb[14].mxu1 }
 0xc8c   :  { %v1844_v51 = vpop.f32.mrb[15].mxu1 }
 0xc8d   :  { %v1752_v55 = vadd.f32 %v1750_v46, %v1649_v13  ;;  %v1849_v60 = vcombine.low %v1842_v50, %v1844_v51 }
 0xc8f   :  { %1753 = vst [vmem:[#allocation2 + $0xc] sm:$0xf] %v1752_v55  ;;  %v1856_v38 = vrot.slane %v1849_v60, %v8643_v16  ;;  %v1932_v40 = vpop.f32.mrb[16].mxu0 }
 0xc90   :  { %v1936_v7 = vadd.f32 %v1932_v40, %v1860_v61  ;;  %v7027_v41 = vpop.f32.mrb[17].mxu0 }
 0xc91   :  { %v1858_v44 = vadd.f32 %v1856_v38, %v1755_v37  ;;  %v2273_v37 = vld [vmem:[#allocation3 + $0x14] sm:$0xf]  ;;  %v2274_v38 = vld [vmem:[#allocation3 + $0x8] sm:$0xf] }
 0xc92   :  { %7958 = vtanh.f32 %v1936_v7  ;;  %v6620_v53 = vmul.f32 -1.442695, %v1936_v7 }
 0xc93   :  { %1859 = vst [vmem:[#allocation2 + $0x10] sm:$0xf] %v1858_v44  ;;  %v2031_v45 = vpop.f32.mrb[16].mxu1 }
 0xc94   :  { %v2038_v47 = vadd.f32 %v2036_v43, %v2031_v45  ;;  %v7038_v48 = vpop.f32.mrb[17].mxu1  ;;  %v2449_v45 = vrot.slane %v2274_v38, 2 }
 0xc96   :  { %7960 = vtanh.f32 %v2038_v47  ;;  %v6622_v54 = vmul.f32 -1.442695, %v2038_v47  ;;  %v2168_v41 = vld [vmem:[#allocation2 + $0xc] sm:$0xf] }
 0xc97   :  { %7962 = vpow2.f32 %v6620_v53 }
 0xc98   :  { %7964 = vpow2.f32 %v6622_v54 }
 0xc9a   :  { %v2063_v55 = vld [vmem:[#allocation2 + $0x10] sm:$0xf] }
 0xc9c   :  { %v7959_v49 = vpop.eup %7958 }
 0xc9d   :  { %1946 = vrot.lane.b32.xlu0 %v7959_v49, %s8368_s6 }
 0xca0   :  { %v7961_v52 = vpop.eup %7960 }
 0xca1   :  { %2048 = vrot.lane.b32.xlu1 %v7961_v52, %s8368_s6  ;;  %v7963_v56 = vpop.eup %7962 }
 0xca2   :  { %v1940_v57 = vadd.f32 1.0, %v7963_v56  ;;  %v7965_v58 = vpop.eup %7964 }
 0xca3   :  { %v2042_v59 = vadd.f32 1.0, %v7965_v58 }
 0xca4   :  { %7966 = vrcp.f32 %v1940_v57 }
 0xca5   :  { %7968 = vrcp.f32 %v2042_v59 }
 0xcae   :  { %v7967_v62 = vpop.eup %7966 }
 0xcaf   :  { %v7969_v4 = vpop.eup %7968  ;;  %v1944_v10 = vmul.f32 %v7967_v62, %v8777_v28 }
 0xcb0   :  { %v2046_v15 = vmul.f32 %v7969_v4, %v8781_v21  ;;  %v2276_v21 = vld [vmem:[#allocation6 + $0x8] sm:$0xff] }
 0xcb1   :  { %v8836_v42 = vpack.c.bf16 %v2276_v21, %v2275_v30  ;;  %v2479_v30 = vld [vmem:[#allocation9 + $0x10] sm:$0xff]  ;;  %v2482_v21 = vld [vmem:[#allocation9 + $0x28] sm:$0xff] }
 0xd0f   :  { %v1947_v63 = vpop.permute.xlu0 %1946 }
 0xd10   :  { %v1949_v3 = vmul.f32 %v7967_v62, %v1947_v63 }
 0xd12   :  { %1951 = vrot.lane.b32.xlu0 %v1949_v3, %s8377_s8 }
 0xd13   :  { %v2049_v6 = vpop.permute.xlu1 %2048 }
 0xd14   :  { %v2051_v8 = vmul.f32 %v7969_v4, %v2049_v6 }
 0xd16   :  { %2053 = vrot.lane.b32.xlu1 %v2051_v8, %s8377_s8 }
 0xd84   :  { %v1952_v11 = vpop.permute.xlu0 %1951 }
 0xd85   :  { %v8823_v14 = vadd.f32 %v1952_v11, %v1944_v10 }
 0xd87   :  { %7970 = vtanh.f32 %v8823_v14 }
 0xd88   :  { %v2054_v17 = vpop.permute.xlu1 %2053 }
 0xd89   :  { %v8827_v18 = vadd.f32 %v2054_v17, %v2046_v15 }
 0xd8b   :  { %7972 = vtanh.f32 %v8827_v18 }
 0xd91   :  { %v7971_v19 = vpop.eup %7970 }
 0xd92   :  { %1957 = vrot.lane.b32.xlu0 %v7971_v19, %s8368_s6 }
 0xd95   :  { %v7973_v20 = vpop.eup %7972 }
 0xd96   :  { %2059 = vrot.lane.b32.xlu1 %v7973_v20, %s8368_s6 }
 0xe04   :  { %v1958_v22 = vpop.permute.xlu0 %1957 }
 0xe05   :  { %v1960_v23 = vmul.f32 %v7967_v62, %v1958_v22 }
 0xe07   :  { %v2079_v26 = vrot.slane %v1960_v23, %v8643_v16 }
 0xe08   :  { %v2060_v27 = vpop.permute.xlu1 %2059 }
 0xe09   :  { %v2062_v28 = vmul.f32 %v7969_v4, %v2060_v27  ;;  %2080 = vrot.lane.b32.xlu0 %v2079_v26, %s8377_s8  ;;  %v2478_v26 = vld [vmem:[#allocation9 + $0x8] sm:$0xff]  ;;  %v2480_v27 = vld [vmem:[#allocation9 + $0x18] sm:$0xff] }
 0xe0b   :  { %v2184_v29 = vrot.slane %v2062_v28, %v8643_v16  ;;  %v2477_v28 = vld [vmem:[#allocation9] sm:$0xff] }
 0xe0c   :  { %v8876_v31 = vpack.c.bf16 %v2479_v30, %v2477_v28 }
 0xe0d   :  { %2185 = vrot.lane.b32.xlu1 %v2184_v29, %s8377_s8  ;;  %v8874_v29 = vpack.c.bf16 %v2480_v27, %v2478_v26 }
 0xe7b   :  { %v2081_v33 = vpop.permute.xlu0 %2080 }
 0xe7c   :  { %6623 = vmatmul.mubr.msk.f32.vlgmr.msra.gmra.mrb[18].mxu0 %vm197_vm1, %v2081_v33 }
 0xe7d   :  { %7599 = vmatpush3.bf16.msra.mxu0 %v8836_v42  ;;  %7047 = vmatprep.mubr.msk.f32.mxu0 %vm8375_vm0, %v8376_v1 }
 0xe7e   :  { %7600 = vmatprep.subr.bf16.mxu0 %v8374_v0 }
 0xe7f   :  { %v2186_v5 = vpop.permute.xlu1 %2185 }
 0xe80   :  { %6624 = vmatmul.mubr.msk.f32.vlgmr.msra.gmra.mrb[18].mxu1 %vm197_vm1, %v2186_v5 }
 0xe81   :  { %7602 = vmatpush3.bf16.msra.mxu0 %v8840_v34  ;;  %7605 = vmatpush3.bf16.msra.mxu1 %v8842_v39 }
 0xe82   :  { %7606 = vmatprep.subr.bf16.mxu1 %v8374_v0  ;;  %7058 = vmatprep.mubr.msk.f32.mxu1 %vm8375_vm0, %v8376_v1 }
 0xe83   :  { %7610 = vmatprep.subr.bf16.mxu0 %v8874_v29 }
 0xe84   :  { %7048 = vmatmul.mubr.msk.f32.vlgmr.msra.gmra.mrb[20].mxu0 %vm197_vm1, %v2081_v33  ;;  %v8881_v33 = vpack.c.bf16 %v2585_v24, %v2583_v25 }
 0xe85   :  { %7608 = vmatpush3.bf16.msra.mxu1 %v8850_v9  ;;  %2561 = vmatprep.mubr.f32.mxu0 %v8376_v1 }
 0xe86   :  { %7612 = vmatpush1.bf16.msra.mxu0 %v8876_v31  ;;  %7618 = vmatprep.subr.bf16.mxu1 %v8881_v33 }
 0xe88   :  { %7059 = vmatmul.mubr.msk.f32.vlgmr.msra.gmra.mrb[20].mxu1 %vm197_vm1, %v2186_v5  ;;  %v2584_v5 = vld [vmem:[#allocation11 + $0x10] sm:$0xff] }
 0xe89   :  { %2666 = vmatprep.mubr.f32.mxu1 %v8376_v1 }
 0xf4f   :  { %v2150_v12 = vpop.f32.mrb[18].mxu0 }
 0xf50   :  { %v2152_v13 = vpop.f32.mrb[19].mxu0 }
 0xf51   :  { %v2157_v46 = vcombine.low %v2150_v12, %v2152_v13 }
 0xf53   :  { %v2164_v50 = vrot.slane %v2157_v46, %v8643_v16  ;;  %v2255_v51 = vpop.f32.mrb[18].mxu1  ;;  %v8886_v46 = vpack.c.bf16 %v2584_v5, %v2582_v36 }
 0xf54   :  { %v2257_v60 = vpop.f32.mrb[19].mxu1 }
 0xf55   :  { %v2166_v61 = vadd.f32 %v2164_v50, %v2063_v55  ;;  %v2262_v2 = vcombine.low %v2255_v51, %v2257_v60  ;;  %v2587_v50 = vld [vmem:[#allocation11 + $0x28] sm:$0xff]  ;;  %v2589_v51 = vld [vmem:[#allocation11 + $0x38] sm:$0xff]  ;;  %7620 = vmatpush1.bf16.msra.mxu1 %v8886_v46 }
 0xf56   :  { %v8890_v55 = vpack.c.bf16 %v2589_v51, %v2587_v50 }
 0xf57   :  { %2167 = vst [vmem:[#allocation2 + $0x10] sm:$0xf] %v2166_v61  ;;  %v2269_v40 = vrot.slane %v2262_v2, %v8643_v16  ;;  %v2345_v7 = vpop.f32.mrb[20].mxu0  ;;  %v2586_v61 = vld [vmem:[#allocation11 + $0x20] sm:$0xff]  ;;  %v2588_v2 = vld [vmem:[#allocation11 + $0x30] sm:$0xff] }
 0xf58   :  { %v2349_v43 = vadd.f32 %v2345_v7, %v2273_v37  ;;  %v7049_v44 = vpop.f32.mrb[21].mxu0  ;;  %7622 = vmatprep.subr.bf16.mxu1 %v8890_v55  ;;  %v8898_v37 = vpack.c.bf16 %v2588_v2, %v2586_v61 }
 0xf59   :  { %v2271_v47 = vadd.f32 %v2269_v40, %v2168_v41 }
 0xf5a   :  { %7974 = vtanh.f32 %v2349_v43  ;;  %v6626_v56 = vmul.f32 -1.442695, %v2349_v43  ;;  %7624 = vmatpush1.bf16.msra.mxu1 %v8898_v37 }
 0xf5b   :  { %2272 = vst [vmem:[#allocation2 + $0xc] sm:$0xf] %v2271_v47  ;;  %v2444_v48 = vpop.f32.mrb[20].mxu1  ;;  %7631 = vmatprep.subr.bf16.mxu1 %v8374_v0 }
 0xf5c   :  { %v2451_v49 = vadd.f32 %v2449_v45, %v2444_v48  ;;  %v7060_v52 = vpop.f32.mrb[21].mxu1 }
 0xf5e   :  { %7976 = vtanh.f32 %v2451_v49  ;;  %v6628_v57 = vmul.f32 -1.442695, %v2451_v49 }
 0xf5f   :  { %7978 = vpow2.f32 %v6626_v56  ;;  %v2476_v56 = vld [vmem:[#allocation2 + $0x14] sm:$0xf] }
 0xf60   :  { %7980 = vpow2.f32 %v6628_v57 }
 0xf64   :  { %v7975_v53 = vpop.eup %7974 }
 0xf65   :  { %2359 = vrot.lane.b32.xlu0 %v7975_v53, %s8368_s6 }
 0xf68   :  { %v7977_v54 = vpop.eup %7976 }
 0xf69   :  { %2461 = vrot.lane.b32.xlu1 %v7977_v54, %s8368_s6  ;;  %v7979_v58 = vpop.eup %7978 }
 0xf6a   :  { %v2353_v59 = vadd.f32 1.0, %v7979_v58  ;;  %v7981_v62 = vpop.eup %7980 }
 0xf6b   :  { %v2455_v63 = vadd.f32 1.0, %v7981_v62  ;;  %v2686_v62 = vld [vmem:[#allocation3 + $0x18] sm:$0xf] }
 0xf6c   :  { %7982 = vrcp.f32 %v2353_v59 }
 0xf6d   :  { %7984 = vrcp.f32 %v2455_v63  ;;  %v2687_v63 = vld [vmem:[#allocation3 + $0x4] sm:$0xf] }
 0xf76   :  { %v7983_v3 = vpop.eup %7982 }
 0xf77   :  { %v7985_v8 = vpop.eup %7984  ;;  %v2357_v15 = vmul.f32 %v7983_v3, %v8823_v14  ;;  %v2484_v14 = vld [vmem:[#allocation9 + $0x38] sm:$0xff] }
 0xf78   :  { %v2459_v20 = vmul.f32 %v7985_v8, %v8827_v18  ;;  %v8878_v32 = vpack.c.bf16 %v2484_v14, %v2482_v21  ;;  %v2481_v18 = vld [vmem:[#allocation9 + $0x20] sm:$0xff] }
 0xf79   :  { %v8884_v13 = vpack.c.bf16 %v2483_v35, %v2481_v18 }
 0xf7a   :  { %7614 = vmatprep.subr.bf16.mxu0 %v8878_v32 }
 0xf7b   :  { %7616 = vmatpush1.bf16.msra.mxu0 %v8884_v13 }
 0xf7c   :  { %7625 = vmatprep.subr.bf16.mxu0 %v8374_v0 }
 0xfd7   :  { %v2360_v4 = vpop.permute.xlu0 %2359 }
 0xfd8   :  { %v2362_v6 = vmul.f32 %v7983_v3, %v2360_v4 }
 0xfda   :  { %2364 = vrot.lane.b32.xlu0 %v2362_v6, %s8377_s8  ;;  %v2581_v6 = vld [vmem:[#allocation2 + $0x8] sm:$0xf] }
 0xfdb   :  { %v2462_v10 = vpop.permute.xlu1 %2461 }
 0xfdc   :  { %v2464_v11 = vmul.f32 %v7985_v8, %v2462_v10 }
 0xfde   :  { %2466 = vrot.lane.b32.xlu1 %v2464_v11, %s8377_s8  ;;  %v2862_v11 = vrot.slane %v2687_v63, 2 }
0x104c   :  { %v2365_v17 = vpop.permute.xlu0 %2364 }
0x104d   :  { %v8867_v19 = vadd.f32 %v2365_v17, %v2357_v15 }
0x104f   :  { %7986 = vtanh.f32 %v8867_v19 }
0x1050   :  { %v2467_v22 = vpop.permute.xlu1 %2466 }
0x1051   :  { %v8871_v23 = vadd.f32 %v2467_v22, %v2459_v20 }
0x1053   :  { %7988 = vtanh.f32 %v8871_v23 }
0x1059   :  { %v7987_v12 = vpop.eup %7986 }
0x105a   :  { %2370 = vrot.lane.b32.xlu0 %v7987_v12, %s8368_s6 }
0x105d   :  { %v7989_v60 = vpop.eup %7988 }
0x105e   :  { %2472 = vrot.lane.b32.xlu1 %v7989_v60, %s8368_s6 }
0x10cc   :  { %v2371_v38 = vpop.permute.xlu0 %2370 }
0x10cd   :  { %v2373_v40 = vmul.f32 %v7983_v3, %v2371_v38 }
0x10cf   :  { %v2492_v7 = vrot.slane %v2373_v40, %v8643_v16 }
0x10d0   :  { %v2473_v41 = vpop.permute.xlu1 %2472 }
0x10d1   :  { %v2475_v43 = vmul.f32 %v7985_v8, %v2473_v41  ;;  %2493 = vrot.lane.b32.xlu0 %v2492_v7, %s8377_s8 }
0x10d3   :  { %v2597_v44 = vrot.slane %v2475_v43, %v8643_v16 }
0x10d5   :  { %2598 = vrot.lane.b32.xlu1 %v2597_v44, %s8377_s8 }
0x1143   :  { %v2494_v45 = vpop.permute.xlu0 %2493 }
0x1144   :  { %6629 = vmatmul.mubr.msk.f32.vlgmr.msra.gmra.mrb[22].mxu0 %vm197_vm1, %v2494_v45 }
0x1145   :  { %7627 = vmatpush3.bf16.msra.mxu0 %v8836_v42  ;;  %7069 = vmatprep.mubr.msk.f32.mxu0 %vm8375_vm0, %v8376_v1 }
0x1146   :  { %7628 = vmatprep.subr.bf16.mxu0 %v8374_v0 }
0x1147   :  { %v2599_v47 = vpop.permute.xlu1 %2598 }
0x1148   :  { %6630 = vmatmul.mubr.msk.f32.vlgmr.msra.gmra.mrb[22].mxu1 %vm197_vm1, %v2599_v47 }
0x1149   :  { %7630 = vmatpush3.bf16.msra.mxu0 %v8840_v34  ;;  %7633 = vmatpush3.bf16.msra.mxu1 %v8842_v39 }
0x114a   :  { %7634 = vmatprep.subr.bf16.mxu1 %v8374_v0  ;;  %7080 = vmatprep.mubr.msk.f32.mxu1 %vm8375_vm0, %v8376_v1 }
0x114b   :  { %7638 = vmatprep.subr.bf16.mxu0 %v8874_v29 }
0x114c   :  { %7070 = vmatmul.mubr.msk.f32.vlgmr.msra.gmra.mrb[24].mxu0 %vm197_vm1, %v2494_v45 }
0x114d   :  { %7636 = vmatpush3.bf16.msra.mxu1 %v8850_v9  ;;  %7640 = vmatpush1.bf16.msra.mxu0 %v8876_v31 }
0x114e   :  { %7642 = vmatprep.subr.bf16.mxu0 %v8878_v32  ;;  %7646 = vmatprep.subr.bf16.mxu1 %v8881_v33 }
0x114f   :  { %2974 = vmatprep.mubr.f32.mxu0 %v8376_v1 }
0x1150   :  { %7081 = vmatmul.mubr.msk.f32.vlgmr.msra.gmra.mrb[24].mxu1 %vm197_vm1, %v2599_v47 }
0x1151   :  { %7644 = vmatpush1.bf16.msra.mxu0 %v8884_v13  ;;  %7648 = vmatpush1.bf16.msra.mxu1 %v8886_v46 }
0x1152   :  { %7650 = vmatprep.subr.bf16.mxu1 %v8890_v55  ;;  %7653 = vmatprep.subr.bf16.mxu0 %v8374_v0 }
0x1153   :  { %3079 = vmatprep.mubr.f32.mxu1 %v8376_v1 }
0x1155   :  { %7652 = vmatpush1.bf16.msra.mxu1 %v8898_v37 }
0x1156   :  { %7659 = vmatprep.subr.bf16.mxu1 %v8374_v0 }
0x1217   :  { %v2563_v48 = vpop.f32.mrb[22].mxu0 }
0x1218   :  { %v2565_v49 = vpop.f32.mrb[23].mxu0 }
0x1219   :  { %v2570_v52 = vcombine.low %v2563_v48, %v2565_v49 }
0x121b   :  { %v2577_v53 = vrot.slane %v2570_v52, %v8643_v16  ;;  %v2668_v54 = vpop.f32.mrb[22].mxu1 }
0x121c   :  { %v2670_v57 = vpop.f32.mrb[23].mxu1 }
0x121d   :  { %v2579_v58 = vadd.f32 %v2577_v53, %v2476_v56  ;;  %v2675_v59 = vcombine.low %v2668_v54, %v2670_v57  ;;  %v2994_v54 = vld [vmem:[#allocation2 + $0x4] sm:$0xf] }
0x121f   :  { %2580 = vst [vmem:[#allocation2 + $0x14] sm:$0xf] %v2579_v58  ;;  %v2682_v3 = vrot.slane %v2675_v59, %v8643_v16  ;;  %v2758_v4 = vpop.f32.mrb[24].mxu0 }
0x1220   :  { %v2762_v8 = vadd.f32 %v2758_v4, %v2686_v62  ;;  %v7071_v10 = vpop.f32.mrb[25].mxu0 }
0x1221   :  { %v2684_v15 = vadd.f32 %v2682_v3, %v2581_v6 }
0x1222   :  { %7990 = vtanh.f32 %v2762_v8  ;;  %v6632_v28 = vmul.f32 -1.442695, %v2762_v8 }
0x1223   :  { %2685 = vst [vmem:[#allocation2 + $0x8] sm:$0xf] %v2684_v15  ;;  %v2857_v17 = vpop.f32.mrb[24].mxu1 }
0x1224   :  { %v2864_v20 = vadd.f32 %v2862_v11, %v2857_v17  ;;  %v7082_v22 = vpop.f32.mrb[25].mxu1 }
0x1226   :  { %7992 = vtanh.f32 %v2864_v20  ;;  %v6634_v30 = vmul.f32 -1.442695, %v2864_v20 }
0x1227   :  { %7994 = vpow2.f32 %v6632_v28 }
0x1228   :  { %7996 = vpow2.f32 %v6634_v30 }
0x122c   :  { %v7991_v26 = vpop.eup %7990 }
0x122d   :  { %2772 = vrot.lane.b32.xlu0 %v7991_v26, %s8368_s6 }
0x1230   :  { %v7993_v27 = vpop.eup %7992 }
0x1231   :  { %2874 = vrot.lane.b32.xlu1 %v7993_v27, %s8368_s6  ;;  %v7995_v21 = vpop.eup %7994 }
0x1232   :  { %v2766_v14 = vadd.f32 1.0, %v7995_v21  ;;  %v7997_v25 = vpop.eup %7996 }
0x1233   :  { %v2868_v24 = vadd.f32 1.0, %v7997_v25 }
0x1234   :  { %7998 = vrcp.f32 %v2766_v14 }
0x1235   :  { %8000 = vrcp.f32 %v2868_v24 }
0x123e   :  { %v7999_v18 = vpop.eup %7998 }
0x123f   :  { %v8001_v5 = vpop.eup %8000  ;;  %v2770_v51 = vmul.f32 %v7999_v18, %v8867_v19 }
0x1240   :  { %v2872_v2 = vmul.f32 %v8001_v5, %v8871_v23 }
0x129f   :  { %v2773_v35 = vpop.permute.xlu0 %2772 }
0x12a0   :  { %v2775_v36 = vmul.f32 %v7999_v18, %v2773_v35 }
0x12a2   :  { %2777 = vrot.lane.b32.xlu0 %v2775_v36, %s8377_s8 }
0x12a3   :  { %v2875_v12 = vpop.permute.xlu1 %2874 }
0x12a4   :  { %v2877_v50 = vmul.f32 %v8001_v5, %v2875_v12 }
0x12a6   :  { %2879 = vrot.lane.b32.xlu1 %v2877_v50, %s8377_s8 }
0x1314   :  { %v2778_v60 = vpop.permute.xlu0 %2777 }
0x1315   :  { %v8939_v61 = vadd.f32 %v2778_v60, %v2770_v51 }
0x1317   :  { %8002 = vtanh.f32 %v8939_v61 }
0x1318   :  { %v2880_v38 = vpop.permute.xlu1 %2879 }
0x1319   :  { %v8943_v40 = vadd.f32 %v2880_v38, %v2872_v2  ;;  %v3514_v38 = vld [vmem:[#allocation12] sm:$0xff] }
0x131b   :  { %8004 = vtanh.f32 %v8943_v40 }
0x1321   :  { %v8003_v7 = vpop.eup %8002 }
0x1322   :  { %2783 = vrot.lane.b32.xlu0 %v8003_v7, %s8368_s6  ;;  %v3613_v7 = vld [vmem:[#allocation14] sm:$0xff] }
0x1325   :  { %v8005_v41 = vpop.eup %8004 }
0x1326   :  { %2885 = vrot.lane.b32.xlu1 %v8005_v41, %s8368_s6 }
0x1394   :  { %v2784_v43 = vpop.permute.xlu0 %2783 }
0x1395   :  { %v2786_v19 = vmul.f32 %v7999_v18, %v2784_v43  ;;  %v3614_v43 = vld [vmem:[#allocation14 + $0x8] sm:$0xff] }
0x1397   :  { %v2905_v44 = vrot.slane %v2786_v19, %v8643_v16  ;;  %v3516_v19 = vld [vmem:[#allocation12 + $0x10] sm:$0xff] }
0x1398   :  { %v2886_v45 = vpop.permute.xlu1 %2885 }
0x1399   :  { %v2888_v47 = vmul.f32 %v8001_v5, %v2886_v45  ;;  %2906 = vrot.lane.b32.xlu0 %v2905_v44, %s8377_s8  ;;  %v3517_v44 = vld [vmem:[#allocation12 + $0x18] sm:$0xff] }
0x139b   :  { %v3010_v23 = vrot.slane %v2888_v47, %v8643_v16  ;;  %v8995_v47 = vpack.c.bf16 %v3614_v43, %v3613_v7  ;;  %v3718_v7 = vld [vmem:[#allocation15 + $0x10] sm:$0xff]  ;;  %v3719_v43 = vld [vmem:[#allocation15 + $0x18] sm:$0xff] }
0x139d   :  { %3011 = vrot.lane.b32.xlu1 %v3010_v23, %s8377_s8  ;;  %v8998_v23 = vpack.c.bf16 %v3517_v44, %v3516_v19  ;;  %v9053_v44 = vpack.c.bf16 %v3719_v43, %v3718_v7 }
0x140b   :  { %v2907_v48 = vpop.permute.xlu0 %2906 }
0x140c   :  { %6635 = vmatmul.mubr.msk.f32.vlgmr.msra.gmra.mrb[26].mxu0 %vm197_vm1, %v2907_v48 }
0x140d   :  { %7655 = vmatpush3.bf16.msra.mxu0 %v8836_v42  ;;  %7091 = vmatprep.mubr.msk.f32.mxu0 %vm8375_vm0, %v8376_v1 }
0x140e   :  { %7656 = vmatprep.subr.bf16.mxu0 %v8374_v0 }
0x140f   :  { %v3012_v49 = vpop.permute.xlu1 %3011 }
0x1410   :  { %6636 = vmatmul.mubr.msk.f32.vlgmr.msra.gmra.mrb[26].mxu1 %vm197_vm1, %v3012_v49 }
0x1411   :  { %7658 = vmatpush3.bf16.msra.mxu0 %v8840_v34  ;;  %7661 = vmatpush3.bf16.msra.mxu1 %v8842_v39 }
0x1412   :  { %7662 = vmatprep.subr.bf16.mxu1 %v8374_v0  ;;  %7102 = vmatprep.mubr.msk.f32.mxu1 %vm8375_vm0, %v8376_v1 }
0x1413   :  { %7666 = vmatprep.subr.bf16.mxu0 %v8874_v29 }
0x1414   :  { %7092 = vmatmul.mubr.msk.f32.vlgmr.msra.gmra.mrb[28].mxu0 %vm197_vm1, %v2907_v48  ;;  %v3615_v48 = vld [vmem:[#allocation14 + $0x10] sm:$0xff] }
0x1415   :  { %7664 = vmatpush3.bf16.msra.mxu1 %v8850_v9  ;;  %7668 = vmatpush1.bf16.msra.mxu0 %v8876_v31  ;;  %v2889_v31 = vld [vmem:[#allocation2 + $0x18] sm:$0xf] }
0x1416   :  { %7670 = vmatprep.subr.bf16.mxu0 %v8878_v32  ;;  %7674 = vmatprep.subr.bf16.mxu1 %v8881_v33 }
0x1417   :  { %3387 = vmatprep.mubr.f32.mxu0 %v8376_v1 }
0x1418   :  { %7103 = vmatmul.mubr.msk.f32.vlgmr.msra.gmra.mrb[28].mxu1 %vm197_vm1, %v3012_v49  ;;  %v3616_v49 = vld [vmem:[#allocation14 + $0x18] sm:$0xff] }
0x1419   :  { %7672 = vmatpush1.bf16.msra.mxu0 %v8884_v13  ;;  %7676 = vmatpush1.bf16.msra.mxu1 %v8886_v46  ;;  %v3099_v46 = vld [vmem:[#allocation3 + $0x1c] sm:$0xf] }
0x141a   :  { %7678 = vmatprep.subr.bf16.mxu1 %v8890_v55  ;;  %3492 = vmatprep.mubr.f32.mxu1 %v8376_v1  ;;  %v3100_v55 = vld [vmem:[#allocation3] sm:$0xf] }
0x141b   :  { %7681 = vmatprep.subr.bf16.mxu0 %v8374_v0  ;;  %v3275_v57 = vrot.slane %v3100_v55, 2 }
0x141d   :  { %7680 = vmatpush1.bf16.msra.mxu1 %v8898_v37 }
0x141e   :  { %7687 = vmatprep.subr.bf16.mxu1 %v8374_v0 }
0x14df   :  { %v2976_v42 = vpop.f32.mrb[26].mxu0 }
0x14e0   :  { %v2978_v34 = vpop.f32.mrb[27].mxu0 }
0x14e1   :  { %v2983_v39 = vcombine.low %v2976_v42, %v2978_v34  ;;  %v9005_v34 = vpack.c.bf16 %v3616_v49, %v3615_v48 }
0x14e3   :  { %v2990_v9 = vrot.slane %v2983_v39, %v8643_v16  ;;  %v3081_v29 = vpop.f32.mrb[26].mxu1 }
0x14e4   :  { %v3083_v32 = vpop.f32.mrb[27].mxu1 }
0x14e5   :  { %v2992_v33 = vadd.f32 %v2990_v9, %v2889_v31  ;;  %v3088_v13 = vcombine.low %v3081_v29, %v3083_v32 }
0x14e7   :  { %2993 = vst [vmem:[#allocation2 + $0x18] sm:$0xf] %v2992_v33  ;;  %v3095_v52 = vrot.slane %v3088_v13, %v8643_v16  ;;  %v3171_v53 = vpop.f32.mrb[28].mxu0  ;;  %v3302_v33 = vld [vmem:[#allocation2 + $0x1c] sm:$0xf] }
0x14e8   :  { %v3175_v37 = vadd.f32 %v3171_v53, %v3099_v46  ;;  %v7093_v56 = vpop.f32.mrb[29].mxu0 }
0x14e9   :  { %v3097_v58 = vadd.f32 %v3095_v52, %v2994_v54  ;;  %v3407_v54 = vld [vmem:[#allocation2] sm:$0xf] }
0x14ea   :  { %8006 = vtanh.f32 %v3175_v37  ;;  %v6638_v6 = vmul.f32 -1.442695, %v3175_v37 }
0x14eb   :  { %3098 = vst [vmem:[#allocation2 + $0x4] sm:$0xf] %v3097_v58  ;;  %v3270_v59 = vpop.f32.mrb[28].mxu1 }
0x14ec   :  { %v3277_v62 = vadd.f32 %v3275_v57, %v3270_v59  ;;  %v7104_v63 = vpop.f32.mrb[29].mxu1 }
0x14ee   :  { %8008 = vtanh.f32 %v3277_v62  ;;  %v6640_v8 = vmul.f32 -1.442695, %v3277_v62 }
0x14ef   :  { %8010 = vpow2.f32 %v6638_v6 }
0x14f0   :  { %8012 = vpow2.f32 %v6640_v8 }
0x14f4   :  { %v8007_v3 = vpop.eup %8006 }
0x14f5   :  { %3185 = vrot.lane.b32.xlu0 %v8007_v3, %s8368_s6 }
0x14f8   :  { %v8009_v4 = vpop.eup %8008 }
0x14f9   :  { %3287 = vrot.lane.b32.xlu1 %v8009_v4, %s8368_s6  ;;  %v8011_v10 = vpop.eup %8010 }
0x14fa   :  { %v3179_v11 = vadd.f32 1.0, %v8011_v10  ;;  %v8013_v15 = vpop.eup %8012 }
0x14fb   :  { %v3281_v17 = vadd.f32 1.0, %v8013_v15 }
0x14fc   :  { %8014 = vrcp.f32 %v3179_v11 }
0x14fd   :  { %8016 = vrcp.f32 %v3281_v17 }
0x1506   :  { %v8015_v20 = vpop.eup %8014 }
0x1507   :  { %v8017_v27 = vpop.eup %8016  ;;  %v3183_v21 = vmul.f32 %v8015_v20, %v8939_v61 }
0x1508   :  { %v3285_v24 = vmul.f32 %v8017_v27, %v8943_v40  ;;  %v3515_v40 = vld [vmem:[#allocation12 + $0x8] sm:$0xff] }
0x1509   :  { %v8992_v41 = vpack.c.bf16 %v3515_v40, %v3514_v38  ;;  %v3809_v38 = vld [vmem:[%s9436_s9 + $0x18] sm:$0xff] }
0x1567   :  { %v3186_v22 = vpop.permute.xlu0 %3185 }
0x1568   :  { %v3188_v26 = vmul.f32 %v8015_v20, %v3186_v22 }
0x156a   :  { %3190 = vrot.lane.b32.xlu0 %v3188_v26, %s8377_s8 }
0x156b   :  { %v3288_v28 = vpop.permute.xlu1 %3287 }
0x156c   :  { %v3290_v30 = vmul.f32 %v8017_v27, %v3288_v28 }
0x156e   :  { %3292 = vrot.lane.b32.xlu1 %v3290_v30, %s8377_s8 }
0x15dc   :  { %v3191_v14 = vpop.permute.xlu0 %3190 }
0x15dd   :  { %v3193_v25 = vadd.f32 %v3191_v14, %v3183_v21 }
0x15df   :  { %8018 = vtanh.f32 %v3193_v25 }
0x15e0   :  { %v3293_v18 = vpop.permute.xlu1 %3292 }
0x15e1   :  { %v3295_v35 = vadd.f32 %v3293_v18, %v3285_v24 }
0x15e3   :  { %8020 = vtanh.f32 %v3295_v35 }
0x15e9   :  { %v8019_v36 = vpop.eup %8018 }
0x15ea   :  { %3196 = vrot.lane.b32.xlu0 %v8019_v36, %s8368_s6 }
0x15ed   :  { %v8021_v5 = vpop.eup %8020 }
0x15ee   :  { %3298 = vrot.lane.b32.xlu1 %v8021_v5, %s8368_s6 }
0x165c   :  { %v3197_v12 = vpop.permute.xlu0 %3196 }
0x165d   :  { %v3199_v50 = vmul.f32 %v8015_v20, %v3197_v12  ;;  %v3806_v12 = vld [vmem:[%s9436_s9] sm:$0xff] }
0x165f   :  { %v3318_v51 = vrot.slane %v3199_v50, %v8643_v16  ;;  %v3807_v50 = vld [vmem:[%s9436_s9 + $0x8] sm:$0xff] }
0x1660   :  { %v3299_v60 = vpop.permute.xlu1 %3298 }
0x1661   :  { %v3301_v61 = vmul.f32 %v8017_v27, %v3299_v60  ;;  %3319 = vrot.lane.b32.xlu0 %v3318_v51, %s8377_s8  ;;  %v3716_v51 = vld [vmem:[#allocation15] sm:$0xff]  ;;  %v9038_v60 = vpack.c.bf16 %v3807_v50, %v3806_v12 }
0x1663   :  { %v3423_v2 = vrot.slane %v3301_v61, %v8643_v16  ;;  %v3717_v61 = vld [vmem:[#allocation15 + $0x8] sm:$0xff] }
0x1664   :  { %v9046_v40 = vpack.c.bf16 %v3717_v61, %v3716_v51 }
0x1665   :  { %3424 = vrot.lane.b32.xlu1 %v3423_v2, %s8377_s8  ;;  %v3808_v2 = vld [vmem:[%s9436_s9 + $0x10] sm:$0xff] }
0x1666   :  { %v9049_v19 = vpack.c.bf16 %v3809_v38, %v3808_v2 }
0x16d3   :  { %v3320_v45 = vpop.permute.xlu0 %3319 }
0x16d4   :  { %6641 = vmatmul.mubr.msk.f32.vlgmr.msra.gmra.mrb[30].mxu0 %vm197_vm1, %v3320_v45 }
0x16d5   :  { %7683 = vmatpush3.bf16.msra.mxu0 %v8992_v41  ;;  %7113 = vmatprep.mubr.msk.f32.mxu0 %vm8375_vm0, %v8376_v1 }
0x16d6   :  { %7684 = vmatprep.subr.bf16.mxu0 %v8374_v0 }
0x16d7   :  { %v3425_v42 = vpop.permute.xlu1 %3424 }
0x16d8   :  { %6642 = vmatmul.mubr.msk.f32.vlgmr.msra.gmra.mrb[30].mxu1 %vm197_vm1, %v3425_v42 }
0x16d9   :  { %7689 = vmatpush3.bf16.msra.mxu1 %v8995_v47  ;;  %7686 = vmatpush3.bf16.msra.mxu0 %v8998_v23 }
0x16da   :  { %7690 = vmatprep.subr.bf16.mxu1 %v8374_v0  ;;  %7124 = vmatprep.mubr.msk.f32.mxu1 %vm8375_vm0, %v8376_v1 }
0x16db   :  { %7693 = vmatprep.subr.bf16.mxu0 %v8374_v0 }
0x16dc   :  { %7114 = vmatmul.mubr.f32.vlgmr.msra.gmra.mrb[32].mxu0 %v8376_v1 }
0x16dd   :  { %7692 = vmatpush3.bf16.msra.mxu1 %v9005_v34  ;;  %7135 = vmatprep.mubr.msk.f32.mxu0 %vm8375_vm0, %v8376_v1 }
0x16de   :  { %7699 = vmatprep.subr.bf16.mxu1 %v8374_v0  ;;  %7695 = vmatpush3.bf16.msra.mxu0 %v9046_v40 }
0x16df   :  { %7696 = vmatprep.subr.bf16.mxu0 %v8374_v0 }
0x16e0   :  { %7125 = vmatmul.mubr.f32.vlgmr.msra.gmra.mrb[32].mxu1 %v8376_v1 }
0x16e1   :  { %7146 = vmatprep.mubr.msk.f32.mxu1 %vm8375_vm0, %v8376_v1  ;;  %7701 = vmatpush3.bf16.msra.mxu1 %v9038_v60 }
0x16e2   :  { %7702 = vmatprep.subr.bf16.mxu1 %v8374_v0  ;;  %7698 = vmatpush3.bf16.msra.mxu0 %v9053_v44 }
0x16e3   :  { %7705 = vmatprep.subr.bf16.mxu0 %v8374_v0 }
0x16e5   :  { %7704 = vmatpush3.bf16.msra.mxu1 %v9049_v19 }
0x16e6   :  { %7711 = vmatprep.subr.bf16.mxu1 %v8374_v0 }
0x17a7   :  { %v3389_v39 = vpop.f32.mrb[30].mxu0 }
0x17a8   :  { %v3391_v9 = vpop.f32.mrb[31].mxu0 }
0x17a9   :  { %v3396_v29 = vcombine.low %v3389_v39, %v3391_v9 }
0x17ab   :  { %v3403_v31 = vrot.slane %v3396_v29, %v8643_v16  ;;  %v3494_v32 = vpop.f32.mrb[30].mxu1  ;;  %v6596_v29 = vld [vmem:[%s9437_s10] ss:$0 sm:$0xff] }
0x17ac   :  { %v3496_v13 = vpop.f32.mrb[31].mxu1  ;;  %189 = vst [vmem:[#allocation17 + $0xe] sm:$0x3] %v6596_v29  ;;  %182 = vst [vmem:[#allocation17] sm:$0x3] %v6596_v29 }
0x17ad   :  { %v3405_v46 = vadd.f32 %v3403_v31, %v3302_v33  ;;  %v3501_v55 = vcombine.low %v3494_v32, %v3496_v13  ;;  %183 = vst [vmem:[#allocation17 + $0x2] sm:$0x3] %v6596_v29  ;;  %184 = vst [vmem:[#allocation17 + $0x4] sm:$0x3] %v6596_v29 }
0x17ae   :  { %185 = vst [vmem:[#allocation17 + $0x6] sm:$0x3] %v6596_v29  ;;  %186 = vst [vmem:[#allocation17 + $0x8] sm:$0x3] %v6596_v29 }
0x17af   :  { %3406 = vst [vmem:[#allocation2 + $0x1c] sm:$0xf] %v3405_v46  ;;  %v3508_v52 = vrot.slane %v3501_v55, %v8643_v16  ;;  %v3584_v53 = vpop.f32.mrb[32].mxu0  ;;  %187 = vst [vmem:[#allocation17 + $0xa] sm:$0x3] %v6596_v29 }
0x17b0   :  { %v7115_v37 = vpop.f32.mrb[33].mxu0  ;;  %188 = vst [vmem:[#allocation17 + $0xc] sm:$0x3] %v6596_v29 }
0x17b1   :  { %v3510_v56 = vadd.f32 %v3508_v52, %v3407_v54 }
0x17b3   :  { %3511 = vst [vmem:[#allocation2] sm:$0xf] %v3510_v56  ;;  %v3683_v57 = vpop.f32.mrb[32].mxu1  ;;  %v3805_v46 = vld [vmem:[#allocation17 + $0xe] sm:$0x3] }
0x17b4   :  { %v7126_v58 = vpop.f32.mrb[33].mxu1  ;;  %v3715_v54 = vld [vmem:[#allocation17] sm:$0x3] }
0x17b5   :  { %v3895_v58 = vld [vmem:[#allocation2 + $0x18] sm:$0xf] }
0x17b6   :  { %v3513_v59 = vld [vmem:[#allocation2 + $0x1c] sm:$0xf] }
0x17b7   :  { %v3688_v62 = vrot.slane %v3513_v59, 2  ;;  %v4070_v59 = vrot.slane %v3895_v58, 2 }
0x17b9   :  { %v3690_v63 = vadd.f32 %v3688_v62, %v3683_v57 }
0x17ba   :  { %v3512_v3 = vld [vmem:[#allocation2] sm:$0xf] }
0x17bb   :  { %8022 = vtanh.f32 %v3690_v63  ;;  %v3588_v4 = vadd.f32 %v3584_v53, %v3512_v3  ;;  %v6644_v10 = vmul.f32 -1.442695, %v3690_v63 }
0x17bd   :  { %8024 = vtanh.f32 %v3588_v4  ;;  %v6643_v11 = vmul.f32 -1.442695, %v3588_v4  ;;  %v3894_v4 = vld [vmem:[#allocation2 + $0x4] sm:$0xf] }
0x17be   :  { %8026 = vpow2.f32 %v6644_v10 }
0x17bf   :  { %8028 = vpow2.f32 %v6643_v11 }
0x17c5   :  { %v8023_v6 = vpop.eup %8022 }
0x17c6   :  { %3700 = vrot.lane.b32.xlu1 %v8023_v6, %s8368_s6 }
0x17c7   :  { %v8025_v8 = vpop.eup %8024 }
0x17c8   :  { %3598 = vrot.lane.b32.xlu0 %v8025_v8, %s8368_s6  ;;  %v8027_v15 = vpop.eup %8026 }
0x17c9   :  { %v8029_v17 = vpop.eup %8028  ;;  %v3694_v20 = vadd.f32 1.0, %v8027_v15 }
0x17ca   :  { %v3592_v22 = vadd.f32 1.0, %v8029_v17 }
0x17cb   :  { %8030 = vrcp.f32 %v3694_v20 }
0x17cc   :  { %8032 = vrcp.f32 %v3592_v22 }
0x17d5   :  { %v8031_v26 = vpop.eup %8030 }
0x17d6   :  { %v8033_v30 = vpop.eup %8032  ;;  %v3698_v25 = vmul.f32 0.0, %v8031_v26 }
0x17d7   :  { %v3596_v35 = vmul.f32 0.0, %v8033_v30 }
0x1838   :  { %v3701_v27 = vpop.permute.xlu1 %3700 }
0x1839   :  { %v3703_v28 = vmul.f32 %v8031_v26, %v3701_v27 }
0x183a   :  { %v3599_v21 = vpop.permute.xlu0 %3598 }
0x183b   :  { %3705 = vrot.lane.b32.xlu1 %v3703_v28, %s8377_s8  ;;  %v3601_v14 = vmul.f32 %v8033_v30, %v3599_v21 }
0x183d   :  { %3603 = vrot.lane.b32.xlu0 %v3601_v14, %s8377_s8 }
0x18ad   :  { %v3706_v24 = vpop.permute.xlu1 %3705 }
0x18ae   :  { %v9026_v18 = vadd.f32 %v3706_v24, %v3698_v25 }
0x18af   :  { %v3604_v36 = vpop.permute.xlu0 %3603 }
0x18b0   :  { %8034 = vtanh.f32 %v9026_v18  ;;  %v9029_v5 = vadd.f32 %v3604_v36, %v3596_v35 }
0x18b2   :  { %8036 = vtanh.f32 %v9029_v5 }
0x18ba   :  { %v8035_v45 = vpop.eup %8034 }
0x18bb   :  { %3711 = vrot.lane.b32.xlu1 %v8035_v45, %s8368_s6 }
0x18bc   :  { %v8037_v48 = vpop.eup %8036 }
0x18bd   :  { %3609 = vrot.lane.b32.xlu0 %v8037_v48, %s8368_s6 }
0x192d   :  { %v3712_v49 = vpop.permute.xlu1 %3711 }
0x192e   :  { %v3714_v42 = vmul.f32 %v8031_v26, %v3712_v49 }
0x192f   :  { %v3610_v9 = vpop.permute.xlu0 %3609 }
0x1930   :  { %v3817_v39 = vrot.slane %v3714_v42, %v8643_v16  ;;  %v3612_v31 = vmul.f32 %v8033_v30, %v3610_v9  ;;  %v4188_v9 = vld [vmem:[#allocation17 + $0xc] sm:$0x3] }
0x1932   :  { %3818 = vrot.lane.b32.xlu1 %v3817_v39, %s8377_s8  ;;  %v3727_v32 = vrot.slane %v3612_v31, %v8643_v16 }
0x1934   :  { %3728 = vrot.lane.b32.xlu0 %v3727_v32, %s8377_s8 }
0x19a4   :  { %v3819_v33 = vpop.permute.xlu1 %3818 }
0x19a5   :  { %7147 = vmatmul.mubr.msk.f32.vlgmr.msra.gmra.mrb[34].mxu1 %vm197_vm1, %v3819_v33 }
0x19a6   :  { %7713 = vmatpush3.bf16.msra.mxu1 %v8995_v47  ;;  %7168 = vmatprep.mubr.msk.f32.mxu1 %vm8375_vm0, %v8376_v1  ;;  %v3729_v13 = vpop.permute.xlu0 %3728 }
0x19a7   :  { %7714 = vmatprep.subr.bf16.mxu1 %v8374_v0  ;;  %7136 = vmatmul.mubr.msk.f32.vlgmr.msra.gmra.mrb[34].mxu0 %vm197_vm1, %v3729_v13 }
0x19a8   :  { %7707 = vmatpush3.bf16.msra.mxu0 %v8992_v41  ;;  %7157 = vmatprep.mubr.msk.f32.mxu0 %vm8375_vm0, %v8376_v1 }
0x19a9   :  { %7708 = vmatprep.subr.bf16.mxu0 %v8374_v0 }
0x19aa   :  { %7716 = vmatpush3.bf16.msra.mxu1 %v9005_v34 }
0x19ab   :  { %7723 = vmatprep.subr.bf16.mxu1 %v8374_v0 }
0x19ac   :  { %7710 = vmatpush3.bf16.msra.mxu0 %v8998_v23 }
0x19ad   :  { %7169 = vmatmul.mubr.msk.f32.vlgmr.msra.gmra.mrb[36].mxu1 %vm197_vm1, %v3819_v33  ;;  %7717 = vmatprep.subr.bf16.mxu0 %v8374_v0  ;;  %v4098_v33 = vld [vmem:[#allocation17 + $0x2] sm:$0x3] }
0x19ae   :  { %7725 = vmatpush3.bf16.msra.mxu1 %v9038_v60  ;;  %7190 = vmatprep.mubr.msk.f32.mxu1 %vm8375_vm0, %v8376_v1 }
0x19af   :  { %7726 = vmatprep.subr.bf16.mxu1 %v8374_v0  ;;  %7158 = vmatmul.mubr.msk.f32.vlgmr.msra.gmra.mrb[36].mxu0 %vm197_vm1, %v3729_v13 }
0x19b0   :  { %7719 = vmatpush3.bf16.msra.mxu0 %v9046_v40  ;;  %7179 = vmatprep.mubr.msk.f32.mxu0 %vm8375_vm0, %v8376_v1 }
0x19b1   :  { %7720 = vmatprep.subr.bf16.mxu0 %v8374_v0 }
0x19b2   :  { %7728 = vmatpush3.bf16.msra.mxu1 %v9049_v19 }
0x19b3   :  { %7735 = vmatprep.subr.bf16.mxu1 %v8374_v0 }
0x19b4   :  { %7722 = vmatpush3.bf16.msra.mxu0 %v9053_v44 }
0x19b5   :  { %7729 = vmatprep.subr.bf16.mxu0 %v8374_v0 }
0x1a78   :  { %v3888_v55 = vpop.f32.mrb[34].mxu1 }
0x1a79   :  { %v3892_v52 = vadd.f32 %v3888_v55, %v3805_v46  ;;  %v7148_v53 = vpop.f32.mrb[35].mxu1 }
0x1a7a   :  { %v3798_v37 = vpop.f32.mrb[34].mxu0 }
0x1a7b   :  { %3893 = vst [vmem:[#allocation17 + $0xe] sm:$0x3] %v3892_v52  ;;  %v3802_v56 = vadd.f32 %v3798_v37, %v3715_v54  ;;  %v7137_v57 = vpop.f32.mrb[35].mxu0  ;;  %v4278_v52 = vld [vmem:[#allocation2 + $0x14] sm:$0xf] }
0x1a7c   :  { %v4453_v53 = vrot.slane %v4278_v52, 2  ;;  %v4277_v57 = vld [vmem:[#allocation2 + $0x8] sm:$0xf] }
0x1a7d   :  { %3803 = vst [vmem:[#allocation17] sm:$0x3] %v3802_v56 }
0x1a80   :  { %v4065_v62 = vpop.f32.mrb[36].mxu1 }
0x1a81   :  { %v4072_v63 = vadd.f32 %v4070_v59, %v4065_v62  ;;  %v7170_v3 = vpop.f32.mrb[37].mxu1 }
0x1a82   :  { %v3966_v6 = vpop.f32.mrb[36].mxu0 }
0x1a83   :  { %8038 = vtanh.f32 %v4072_v63  ;;  %v3970_v8 = vadd.f32 %v3966_v6, %v3894_v4  ;;  %v7159_v10 = vpop.f32.mrb[37].mxu0  ;;  %v6650_v17 = vmul.f32 -1.442695, %v4072_v63 }
0x1a85   :  { %8040 = vtanh.f32 %v3970_v8  ;;  %v6648_v20 = vmul.f32 -1.442695, %v3970_v8 }
0x1a86   :  { %8042 = vpow2.f32 %v6650_v17 }
0x1a87   :  { %8044 = vpow2.f32 %v6648_v20 }
0x1a8d   :  { %v8039_v11 = vpop.eup %8038 }
0x1a8e   :  { %4082 = vrot.lane.b32.xlu1 %v8039_v11, %s8368_s6 }
0x1a8f   :  { %v8041_v15 = vpop.eup %8040 }
0x1a90   :  { %3980 = vrot.lane.b32.xlu0 %v8041_v15, %s8368_s6  ;;  %v8043_v22 = vpop.eup %8042 }
0x1a91   :  { %v8045_v26 = vpop.eup %8044  ;;  %v4076_v27 = vadd.f32 1.0, %v8043_v22 }
0x1a92   :  { %v3974_v28 = vadd.f32 1.0, %v8045_v26 }
0x1a93   :  { %8046 = vrcp.f32 %v4076_v27 }
0x1a94   :  { %8048 = vrcp.f32 %v3974_v28 }
0x1a9d   :  { %v8047_v30 = vpop.eup %8046 }
0x1a9e   :  { %v8049_v25 = vpop.eup %8048  ;;  %v4080_v36 = vmul.f32 %v8047_v30, %v9026_v18 }
0x1a9f   :  { %v3978_v51 = vmul.f32 %v8049_v25, %v9029_v5 }
0x1b00   :  { %v4083_v21 = vpop.permute.xlu1 %4082 }
0x1b01   :  { %v4085_v14 = vmul.f32 %v8047_v30, %v4083_v21 }
0x1b02   :  { %v3981_v24 = vpop.permute.xlu0 %3980 }
0x1b03   :  { %4087 = vrot.lane.b32.xlu1 %v4085_v14, %s8377_s8  ;;  %v3983_v35 = vmul.f32 %v8049_v25, %v3981_v24 }
0x1b05   :  { %3985 = vrot.lane.b32.xlu0 %v3983_v35, %s8377_s8 }
0x1b75   :  { %v4088_v12 = vpop.permute.xlu1 %4087 }
0x1b76   :  { %v9102_v50 = vadd.f32 %v4088_v12, %v4080_v36 }
0x1b77   :  { %v3986_v61 = vpop.permute.xlu0 %3985 }
0x1b78   :  { %8050 = vtanh.f32 %v9102_v50  ;;  %v9106_v2 = vadd.f32 %v3986_v61, %v3978_v51 }
0x1b7a   :  { %8052 = vtanh.f32 %v9106_v2 }
0x1b82   :  { %v8051_v38 = vpop.eup %8050 }
0x1b83   :  { %4093 = vrot.lane.b32.xlu1 %v8051_v38, %s8368_s6 }
0x1b84   :  { %v8053_v7 = vpop.eup %8052 }
0x1b85   :  { %3991 = vrot.lane.b32.xlu0 %v8053_v7, %s8368_s6 }
0x1bf5   :  { %v4094_v43 = vpop.permute.xlu1 %4093 }
0x1bf6   :  { %v4096_v18 = vmul.f32 %v8047_v30, %v4094_v43 }
0x1bf7   :  { %v3992_v48 = vpop.permute.xlu0 %3991 }
0x1bf8   :  { %v4200_v45 = vrot.slane %v4096_v18, %v8643_v16  ;;  %v3994_v49 = vmul.f32 %v8049_v25, %v3992_v48 }
0x1bfa   :  { %4201 = vrot.lane.b32.xlu1 %v4200_v45, %s8377_s8  ;;  %v4110_v5 = vrot.slane %v3994_v49, %v8643_v16  ;;  %v4571_v45 = vld [vmem:[#allocation17 + $0xa] sm:$0x3] }
0x1bfc   :  { %4111 = vrot.lane.b32.xlu0 %v4110_v5, %s8377_s8 }
0x1c6c   :  { %v4202_v42 = vpop.permute.xlu1 %4201 }
0x1c6d   :  { %7191 = vmatmul.mubr.msk.f32.vlgmr.msra.gmra.mrb[38].mxu1 %vm197_vm1, %v4202_v42 }
0x1c6e   :  { %7737 = vmatpush3.bf16.msra.mxu1 %v8995_v47  ;;  %7212 = vmatprep.mubr.msk.f32.mxu1 %vm8375_vm0, %v8376_v1  ;;  %v4112_v39 = vpop.permute.xlu0 %4111 }
0x1c6f   :  { %7738 = vmatprep.subr.bf16.mxu1 %v8374_v0  ;;  %7180 = vmatmul.mubr.msk.f32.vlgmr.msra.gmra.mrb[38].mxu0 %vm197_vm1, %v4112_v39 }
0x1c70   :  { %7731 = vmatpush3.bf16.msra.mxu0 %v8992_v41  ;;  %7201 = vmatprep.mubr.msk.f32.mxu0 %vm8375_vm0, %v8376_v1 }
0x1c71   :  { %7732 = vmatprep.subr.bf16.mxu0 %v8374_v0 }
0x1c72   :  { %7740 = vmatpush3.bf16.msra.mxu1 %v9005_v34 }
0x1c73   :  { %7747 = vmatprep.subr.bf16.mxu1 %v8374_v0 }
0x1c74   :  { %7734 = vmatpush3.bf16.msra.mxu0 %v8998_v23 }
0x1c75   :  { %7213 = vmatmul.mubr.msk.f32.vlgmr.msra.gmra.mrb[40].mxu1 %vm197_vm1, %v4202_v42  ;;  %7741 = vmatprep.subr.bf16.mxu0 %v8374_v0  ;;  %v4481_v42 = vld [vmem:[#allocation17 + $0x4] sm:$0x3] }
0x1c76   :  { %7749 = vmatpush3.bf16.msra.mxu1 %v9038_v60  ;;  %7234 = vmatprep.mubr.msk.f32.mxu1 %vm8375_vm0, %v8376_v1 }
0x1c77   :  { %7750 = vmatprep.subr.bf16.mxu1 %v8374_v0  ;;  %7202 = vmatmul.mubr.msk.f32.vlgmr.msra.gmra.mrb[40].mxu0 %vm197_vm1, %v4112_v39 }
0x1c78   :  { %7743 = vmatpush3.bf16.msra.mxu0 %v9046_v40  ;;  %7223 = vmatprep.mubr.msk.f32.mxu0 %vm8375_vm0, %v8376_v1 }
0x1c79   :  { %7744 = vmatprep.subr.bf16.mxu0 %v8374_v0 }
0x1c7a   :  { %7752 = vmatpush3.bf16.msra.mxu1 %v9049_v19 }
0x1c7b   :  { %7759 = vmatprep.subr.bf16.mxu1 %v8374_v0 }
0x1c7c   :  { %7746 = vmatpush3.bf16.msra.mxu0 %v9053_v44 }
0x1c7d   :  { %7753 = vmatprep.subr.bf16.mxu0 %v8374_v0 }
0x1d40   :  { %v4271_v29 = vpop.f32.mrb[38].mxu1 }
0x1d41   :  { %v4275_v31 = vadd.f32 %v4271_v29, %v4188_v9  ;;  %v7192_v32 = vpop.f32.mrb[39].mxu1 }
0x1d42   :  { %v4181_v13 = vpop.f32.mrb[38].mxu0 }
0x1d43   :  { %4276 = vst [vmem:[#allocation17 + $0xc] sm:$0x3] %v4275_v31  ;;  %v4185_v46 = vadd.f32 %v4181_v13, %v4098_v33  ;;  %v7181_v55 = vpop.f32.mrb[39].mxu0  ;;  %v4661_v31 = vld [vmem:[#allocation2 + $0x10] sm:$0xf] }
0x1d44   :  { %v4836_v32 = vrot.slane %v4661_v31, 2  ;;  %v4660_v55 = vld [vmem:[#allocation2 + $0xc] sm:$0xf] }
0x1d45   :  { %4186 = vst [vmem:[#allocation17 + $0x2] sm:$0x3] %v4185_v46 }
0x1d48   :  { %v4448_v54 = vpop.f32.mrb[40].mxu1 }
0x1d49   :  { %v4455_v37 = vadd.f32 %v4453_v53, %v4448_v54  ;;  %v7214_v56 = vpop.f32.mrb[41].mxu1 }
0x1d4a   :  { %v4349_v58 = vpop.f32.mrb[40].mxu0 }
0x1d4b   :  { %8054 = vtanh.f32 %v4455_v37  ;;  %v4353_v59 = vadd.f32 %v4349_v58, %v4277_v57  ;;  %v7203_v62 = vpop.f32.mrb[41].mxu0  ;;  %v6656_v4 = vmul.f32 -1.442695, %v4455_v37 }
0x1d4d   :  { %8056 = vtanh.f32 %v4353_v59  ;;  %v6654_v6 = vmul.f32 -1.442695, %v4353_v59 }
0x1d4e   :  { %8058 = vpow2.f32 %v6656_v4 }
0x1d4f   :  { %8060 = vpow2.f32 %v6654_v6 }
0x1d55   :  { %v8055_v63 = vpop.eup %8054 }
0x1d56   :  { %4465 = vrot.lane.b32.xlu1 %v8055_v63, %s8368_s6 }
0x1d57   :  { %v8057_v3 = vpop.eup %8056 }
0x1d58   :  { %4363 = vrot.lane.b32.xlu0 %v8057_v3, %s8368_s6  ;;  %v8059_v8 = vpop.eup %8058 }
0x1d59   :  { %v8061_v10 = vpop.eup %8060  ;;  %v4459_v11 = vadd.f32 1.0, %v8059_v8 }
0x1d5a   :  { %v4357_v15 = vadd.f32 1.0, %v8061_v10 }
0x1d5b   :  { %8062 = vrcp.f32 %v4459_v11 }
0x1d5c   :  { %8064 = vrcp.f32 %v4357_v15 }
0x1d65   :  { %v8063_v17 = vpop.eup %8062 }
0x1d66   :  { %v8065_v26 = vpop.eup %8064  ;;  %v4463_v30 = vmul.f32 %v8063_v17, %v9102_v50 }
0x1d67   :  { %v4361_v25 = vmul.f32 %v8065_v26, %v9106_v2 }
0x1dc8   :  { %v4466_v20 = vpop.permute.xlu1 %4465 }
0x1dc9   :  { %v4468_v22 = vmul.f32 %v8063_v17, %v4466_v20 }
0x1dca   :  { %v4364_v27 = vpop.permute.xlu0 %4363 }
0x1dcb   :  { %4470 = vrot.lane.b32.xlu1 %v4468_v22, %s8377_s8  ;;  %v4366_v28 = vmul.f32 %v8065_v26, %v4364_v27 }
0x1dcd   :  { %4368 = vrot.lane.b32.xlu0 %v4366_v28, %s8377_s8 }
0x1e3d   :  { %v4471_v21 = vpop.permute.xlu1 %4470 }
0x1e3e   :  { %v9148_v14 = vadd.f32 %v4471_v21, %v4463_v30 }
0x1e3f   :  { %v4369_v24 = vpop.permute.xlu0 %4368 }
0x1e40   :  { %8066 = vtanh.f32 %v9148_v14  ;;  %v9152_v35 = vadd.f32 %v4369_v24, %v4361_v25 }
0x1e42   :  { %8068 = vtanh.f32 %v9152_v35 }
0x1e4a   :  { %v8067_v36 = vpop.eup %8066 }
0x1e4b   :  { %4476 = vrot.lane.b32.xlu1 %v8067_v36, %s8368_s6 }
0x1e4c   :  { %v8069_v12 = vpop.eup %8068 }
0x1e4d   :  { %4374 = vrot.lane.b32.xlu0 %v8069_v12, %s8368_s6 }
0x1ebd   :  { %v4477_v51 = vpop.permute.xlu1 %4476 }
0x1ebe   :  { %v4479_v50 = vmul.f32 %v8063_v17, %v4477_v51 }
0x1ebf   :  { %v4375_v38 = vpop.permute.xlu0 %4374 }
0x1ec0   :  { %v4583_v61 = vrot.slane %v4479_v50, %v8643_v16  ;;  %v4377_v7 = vmul.f32 %v8065_v26, %v4375_v38 }
0x1ec2   :  { %4584 = vrot.lane.b32.xlu1 %v4583_v61, %s8377_s8  ;;  %v4493_v2 = vrot.slane %v4377_v7, %v8643_v16  ;;  %v5044_v7 = vld [vmem:[#allocation2 + $0xc] sm:$0xf] }
0x1ec4   :  { %4494 = vrot.lane.b32.xlu0 %v4493_v2, %s8377_s8 }
0x1f34   :  { %v4585_v43 = vpop.permute.xlu1 %4584 }
0x1f35   :  { %7235 = vmatmul.mubr.msk.f32.vlgmr.msra.gmra.mrb[42].mxu1 %vm197_vm1, %v4585_v43 }
0x1f36   :  { %7761 = vmatpush3.bf16.msra.mxu1 %v8995_v47  ;;  %7256 = vmatprep.mubr.msk.f32.mxu1 %vm8375_vm0, %v8376_v1  ;;  %v4495_v18 = vpop.permute.xlu0 %4494 }
0x1f37   :  { %7762 = vmatprep.subr.bf16.mxu1 %v8374_v0  ;;  %7224 = vmatmul.mubr.msk.f32.vlgmr.msra.gmra.mrb[42].mxu0 %vm197_vm1, %v4495_v18 }
0x1f38   :  { %7755 = vmatpush3.bf16.msra.mxu0 %v8992_v41  ;;  %7245 = vmatprep.mubr.msk.f32.mxu0 %vm8375_vm0, %v8376_v1 }
0x1f39   :  { %7756 = vmatprep.subr.bf16.mxu0 %v8374_v0 }
0x1f3a   :  { %7764 = vmatpush3.bf16.msra.mxu1 %v9005_v34 }
0x1f3b   :  { %7771 = vmatprep.subr.bf16.mxu1 %v8374_v0 }
0x1f3c   :  { %7758 = vmatpush3.bf16.msra.mxu0 %v8998_v23 }
0x1f3d   :  { %7257 = vmatmul.mubr.msk.f32.vlgmr.msra.gmra.mrb[44].mxu1 %vm197_vm1, %v4585_v43  ;;  %7765 = vmatprep.subr.bf16.mxu0 %v8374_v0 }
0x1f3e   :  { %7773 = vmatpush3.bf16.msra.mxu1 %v9038_v60  ;;  %7278 = vmatprep.mubr.msk.f32.mxu1 %vm8375_vm0, %v8376_v1 }
0x1f3f   :  { %7774 = vmatprep.subr.bf16.mxu1 %v8374_v0  ;;  %7246 = vmatmul.mubr.msk.f32.vlgmr.msra.gmra.mrb[44].mxu0 %vm197_vm1, %v4495_v18 }
0x1f40   :  { %7767 = vmatpush3.bf16.msra.mxu0 %v9046_v40  ;;  %7267 = vmatprep.mubr.msk.f32.mxu0 %vm8375_vm0, %v8376_v1 }
0x1f41   :  { %7768 = vmatprep.subr.bf16.mxu0 %v8374_v0 }
0x1f42   :  { %7776 = vmatpush3.bf16.msra.mxu1 %v9049_v19 }
0x1f43   :  { %7783 = vmatprep.subr.bf16.mxu1 %v8374_v0 }
0x1f44   :  { %7770 = vmatpush3.bf16.msra.mxu0 %v9053_v44 }
0x1f45   :  { %7777 = vmatprep.subr.bf16.mxu0 %v8374_v0 }
0x2008   :  { %v4654_v48 = vpop.f32.mrb[42].mxu1 }
0x2009   :  { %v4658_v49 = vadd.f32 %v4654_v48, %v4571_v45  ;;  %v7236_v5 = vpop.f32.mrb[43].mxu1  ;;  %v5043_v45 = vld [vmem:[#allocation2 + $0x10] sm:$0xf] }
0x200a   :  { %v4564_v39 = vpop.f32.mrb[42].mxu0 }
0x200b   :  { %4659 = vst [vmem:[#allocation17 + $0xa] sm:$0x3] %v4658_v49  ;;  %v4568_v9 = vadd.f32 %v4564_v39, %v4481_v42  ;;  %v7225_v29 = vpop.f32.mrb[43].mxu0 }
0x200d   :  { %4569 = vst [vmem:[#allocation17 + $0x4] sm:$0x3] %v4568_v9 }
0x2010   :  { %v4831_v33 = vpop.f32.mrb[44].mxu1 }
0x2011   :  { %v4838_v13 = vadd.f32 %v4836_v32, %v4831_v33  ;;  %v7258_v46 = vpop.f32.mrb[45].mxu1 }
0x2012   :  { %v4732_v52 = vpop.f32.mrb[44].mxu0 }
0x2013   :  { %8070 = vtanh.f32 %v4838_v13  ;;  %v4736_v53 = vadd.f32 %v4732_v52, %v4660_v55  ;;  %v7247_v54 = vpop.f32.mrb[45].mxu0  ;;  %v6662_v57 = vmul.f32 -1.442695, %v4838_v13 }
0x2015   :  { %8072 = vtanh.f32 %v4736_v53  ;;  %v6660_v58 = vmul.f32 -1.442695, %v4736_v53 }
0x2016   :  { %8074 = vpow2.f32 %v6662_v57 }
0x2017   :  { %8076 = vpow2.f32 %v6660_v58 }
0x201d   :  { %v8071_v37 = vpop.eup %8070 }
0x201e   :  { %4848 = vrot.lane.b32.xlu1 %v8071_v37, %s8368_s6 }
0x201f   :  { %v8073_v56 = vpop.eup %8072 }
0x2020   :  { %4746 = vrot.lane.b32.xlu0 %v8073_v56, %s8368_s6  ;;  %v8075_v59 = vpop.eup %8074 }
0x2021   :  { %v8077_v62 = vpop.eup %8076  ;;  %v4842_v63 = vadd.f32 1.0, %v8075_v59 }
0x2022   :  { %v4740_v3 = vadd.f32 1.0, %v8077_v62 }
0x2023   :  { %8078 = vrcp.f32 %v4842_v63 }
0x2024   :  { %8080 = vrcp.f32 %v4740_v3 }
0x202d   :  { %v8079_v4 = vpop.eup %8078 }
0x202e   :  { %v8081_v10 = vpop.eup %8080  ;;  %v4846_v17 = vmul.f32 %v8079_v4, %v9148_v14 }
0x202f   :  { %v4744_v26 = vmul.f32 %v8081_v10, %v9152_v35 }
0x2090   :  { %v4849_v6 = vpop.permute.xlu1 %4848 }
0x2091   :  { %v4851_v8 = vmul.f32 %v8079_v4, %v4849_v6 }
0x2092   :  { %v4747_v11 = vpop.permute.xlu0 %4746 }
0x2093   :  { %4853 = vrot.lane.b32.xlu1 %v4851_v8, %s8377_s8  ;;  %v4749_v15 = vmul.f32 %v8081_v10, %v4747_v11 }
0x2095   :  { %4751 = vrot.lane.b32.xlu0 %v4749_v15, %s8377_s8 }
0x2105   :  { %v4854_v20 = vpop.permute.xlu1 %4853 }
0x2106   :  { %v9194_v22 = vadd.f32 %v4854_v20, %v4846_v17  ;;  %v5525_v17 = vld [vmem:[#allocation14] sm:$0xff]  ;;  %v5526_v20 = vld [vmem:[#allocation14 + $0x8] sm:$0xff] }
0x2107   :  { %v4752_v27 = vpop.permute.xlu0 %4751 }
0x2108   :  { %8082 = vtanh.f32 %v9194_v22  ;;  %v9198_v28 = vadd.f32 %v4752_v27, %v4744_v26  ;;  %v5426_v26 = vld [vmem:[#allocation12] sm:$0xff]  ;;  %v5427_v27 = vld [vmem:[#allocation12 + $0x8] sm:$0xff] }
0x210a   :  { %8084 = vtanh.f32 %v9198_v28 }
0x2112   :  { %v8083_v30 = vpop.eup %8082 }
0x2113   :  { %4859 = vrot.lane.b32.xlu1 %v8083_v30, %s8368_s6  ;;  %v5528_v30 = vld [vmem:[#allocation14 + $0x18] sm:$0xff] }
0x2114   :  { %v8085_v21 = vpop.eup %8084 }
0x2115   :  { %4757 = vrot.lane.b32.xlu0 %v8085_v21, %s8368_s6 }
0x2185   :  { %v4860_v25 = vpop.permute.xlu1 %4859 }
0x2186   :  { %v4862_v14 = vmul.f32 %v8079_v4, %v4860_v25  ;;  %v9256_v25 = vpack.c.bf16 %v5427_v27, %v5426_v26 }
0x2187   :  { %v4758_v36 = vpop.permute.xlu0 %4757 }
0x2188   :  { %v4966_v24 = vrot.slane %v4862_v14, %v8643_v16  ;;  %v4760_v12 = vmul.f32 %v8081_v10, %v4758_v36  ;;  %v5429_v36 = vld [vmem:[#allocation12 + $0x18] sm:$0xff] }
0x218a   :  { %4967 = vrot.lane.b32.xlu1 %v4966_v24, %s8377_s8  ;;  %v4876_v35 = vrot.slane %v4760_v12, %v8643_v16  ;;  %v5428_v24 = vld [vmem:[#allocation12 + $0x10] sm:$0xff] }
0x218c   :  { %4877 = vrot.lane.b32.xlu0 %v4876_v35, %s8377_s8  ;;  %v9266_v35 = vpack.c.bf16 %v5429_v36, %v5428_v24 }
0x21fc   :  { %v4968_v51 = vpop.permute.xlu1 %4967 }
0x21fd   :  { %7279 = vmatmul.mubr.msk.f32.vlgmr.msra.gmra.mrb[46].mxu1 %vm197_vm1, %v4968_v51 }
0x21fe   :  { %7785 = vmatpush3.bf16.msra.mxu1 %v8995_v47  ;;  %7300 = vmatprep.mubr.msk.f32.mxu1 %vm8375_vm0, %v8376_v1  ;;  %v4878_v50 = vpop.permute.xlu0 %4877 }
0x21ff   :  { %7786 = vmatprep.subr.bf16.mxu1 %v8374_v0  ;;  %7268 = vmatmul.mubr.msk.f32.vlgmr.msra.gmra.mrb[46].mxu0 %vm197_vm1, %v4878_v50 }
0x2200   :  { %7779 = vmatpush3.bf16.msra.mxu0 %v8992_v41  ;;  %7289 = vmatprep.mubr.msk.f32.mxu0 %vm8375_vm0, %v8376_v1  ;;  %v4954_v41 = vld [vmem:[#allocation17 + $0x8] sm:$0x3] }
0x2201   :  { %7780 = vmatprep.subr.bf16.mxu0 %v8374_v0 }
0x2202   :  { %7788 = vmatpush3.bf16.msra.mxu1 %v9005_v34 }
0x2203   :  { %7795 = vmatprep.subr.bf16.mxu1 %v8374_v0 }
0x2204   :  { %7782 = vmatpush3.bf16.msra.mxu0 %v8998_v23 }
0x2205   :  { %7301 = vmatmul.mubr.msk.f32.vlgmr.msra.gmra.mrb[48].mxu1 %vm197_vm1, %v4968_v51  ;;  %7789 = vmatprep.subr.bf16.mxu0 %v8374_v0 }
0x2206   :  { %7797 = vmatpush3.bf16.msra.mxu1 %v9038_v60  ;;  %7322 = vmatprep.mubr.msk.f32.mxu1 %vm8375_vm0, %v8376_v1  ;;  %v4864_v60 = vld [vmem:[#allocation17 + $0x6] sm:$0x3] }
0x2207   :  { %7798 = vmatprep.subr.bf16.mxu1 %v8374_v0  ;;  %7290 = vmatmul.mubr.msk.f32.vlgmr.msra.gmra.mrb[48].mxu0 %vm197_vm1, %v4878_v50 }
0x2208   :  { %7791 = vmatpush3.bf16.msra.mxu0 %v9046_v40  ;;  %7311 = vmatprep.mubr.msk.f32.mxu0 %vm8375_vm0, %v8376_v1 }
0x2209   :  { %7792 = vmatprep.subr.bf16.mxu0 %v8374_v0 }
0x220a   :  { %7800 = vmatpush3.bf16.msra.mxu1 %v9049_v19  ;;  %v5219_v19 = vrot.slane %v5044_v7, 2 }
0x220b   :  { %7807 = vmatprep.subr.bf16.mxu1 %v8374_v0 }
0x220c   :  { %7794 = vmatpush3.bf16.msra.mxu0 %v9053_v44 }
0x220d   :  { %7801 = vmatprep.subr.bf16.mxu0 %v8374_v0 }
0x22d0   :  { %v5037_v47 = vpop.f32.mrb[46].mxu1 }
0x22d1   :  { %v5041_v23 = vadd.f32 %v5037_v47, %v4954_v41  ;;  %v7280_v34 = vpop.f32.mrb[47].mxu1 }
0x22d2   :  { %v4947_v40 = vpop.f32.mrb[46].mxu0 }
0x22d3   :  { %5042 = vst [vmem:[#allocation17 + $0x8] sm:$0x3] %v5041_v23  ;;  %v4951_v61 = vadd.f32 %v4947_v40, %v4864_v60  ;;  %v7269_v38 = vpop.f32.mrb[47].mxu0 }
0x22d5   :  { %4952 = vst [vmem:[#allocation17 + $0x6] sm:$0x3] %v4951_v61  ;;  %v5425_v61 = vld [vmem:[#allocation2 + $0x8] sm:$0xf] }
0x22d6   :  { %v5600_v38 = vrot.slane %v5425_v61, 2 }
0x22d8   :  { %v5214_v2 = vpop.f32.mrb[48].mxu1 }
0x22d9   :  { %v5221_v43 = vadd.f32 %v5219_v19, %v5214_v2  ;;  %v7302_v18 = vpop.f32.mrb[49].mxu1 }
0x22da   :  { %v5115_v44 = vpop.f32.mrb[48].mxu0  ;;  %v5246_v23 = vld [vmem:[#allocation17 + $0x8] sm:$0x3] }
0x22db   :  { %8086 = vtanh.f32 %v5221_v43  ;;  %v5119_v48 = vadd.f32 %v5115_v44, %v5043_v45  ;;  %v7291_v49 = vpop.f32.mrb[49].mxu0  ;;  %v6668_v39 = vmul.f32 -1.442695, %v5221_v43  ;;  %v5424_v43 = vld [vmem:[#allocation2 + $0x14] sm:$0xf] }
0x22dc   :  { %v5335_v51 = vld [vmem:[#allocation17 + $0x6] sm:$0x3] }
0x22dd   :  { %8088 = vtanh.f32 %v5119_v48  ;;  %v6666_v9 = vmul.f32 -1.442695, %v5119_v48 }
0x22de   :  { %8090 = vpow2.f32 %v6668_v39 }
0x22df   :  { %8092 = vpow2.f32 %v6666_v9 }
0x22e5   :  { %v8087_v5 = vpop.eup %8086 }
0x22e6   :  { %5231 = vrot.lane.b32.xlu1 %v8087_v5, %s8368_s6 }
0x22e7   :  { %v8089_v42 = vpop.eup %8088 }
0x22e8   :  { %5129 = vrot.lane.b32.xlu0 %v8089_v42, %s8368_s6  ;;  %v8091_v29 = vpop.eup %8090 }
0x22e9   :  { %v8093_v31 = vpop.eup %8092  ;;  %v5225_v32 = vadd.f32 1.0, %v8091_v29 }
0x22ea   :  { %v5123_v33 = vadd.f32 1.0, %v8093_v31 }
0x22eb   :  { %8094 = vrcp.f32 %v5225_v32 }
0x22ec   :  { %8096 = vrcp.f32 %v5123_v33 }
0x22f5   :  { %v8095_v13 = vpop.eup %8094 }
0x22f6   :  { %v8097_v52 = vpop.eup %8096  ;;  %v5229_v37 = vmul.f32 %v8095_v13, %v9194_v22  ;;  %v9253_v22 = vpack.c.bf16 %v5526_v20, %v5525_v17 }
0x22f7   :  { %v5127_v58 = vmul.f32 %v8097_v52, %v9198_v28  ;;  %v5527_v28 = vld [vmem:[#allocation14 + $0x10] sm:$0xff] }
0x22f8   :  { %v9259_v14 = vpack.c.bf16 %v5528_v30, %v5527_v28 }
0x2358   :  { %v5232_v46 = vpop.permute.xlu1 %5231 }
0x2359   :  { %v5234_v55 = vmul.f32 %v8095_v13, %v5232_v46 }
0x235a   :  { %v5130_v53 = vpop.permute.xlu0 %5129 }
0x235b   :  { %5236 = vrot.lane.b32.xlu1 %v5234_v55, %s8377_s8  ;;  %v5132_v54 = vmul.f32 %v8097_v52, %v5130_v53 }
0x235d   :  { %5134 = vrot.lane.b32.xlu0 %v5132_v54, %s8377_s8 }
0x23cd   :  { %v5237_v56 = vpop.permute.xlu1 %5236 }
0x23ce   :  { %v9240_v57 = vadd.f32 %v5237_v56, %v5229_v37 }
0x23cf   :  { %v5135_v59 = vpop.permute.xlu0 %5134 }
0x23d0   :  { %8098 = vtanh.f32 %v9240_v57  ;;  %v9244_v62 = vadd.f32 %v5135_v59, %v5127_v58 }
0x23d2   :  { %8100 = vtanh.f32 %v9244_v62 }
0x23da   :  { %v8099_v63 = vpop.eup %8098 }
0x23db   :  { %5242 = vrot.lane.b32.xlu1 %v8099_v63, %s8368_s6  ;;  %v5717_v63 = vld [vmem:[%s9436_s9] sm:$0xff] }
0x23dc   :  { %v8101_v3 = vpop.eup %8100 }
0x23dd   :  { %5140 = vrot.lane.b32.xlu0 %v8101_v3, %s8368_s6  ;;  %v5628_v3 = vld [vmem:[#allocation15] sm:$0xff] }
0x244d   :  { %v5243_v4 = vpop.permute.xlu1 %5242 }
0x244e   :  { %v5245_v6 = vmul.f32 %v8095_v13, %v5243_v4 }
0x244f   :  { %v5141_v10 = vpop.permute.xlu0 %5140 }
0x2450   :  { %v5347_v8 = vrot.slane %v5245_v6, %v8643_v16  ;;  %v5143_v11 = vmul.f32 %v8097_v52, %v5141_v10  ;;  %v5629_v6 = vld [vmem:[#allocation15 + $0x8] sm:$0xff] }
0x2451   :  { %v9307_v10 = vpack.c.bf16 %v5629_v6, %v5628_v3 }
0x2452   :  { %5348 = vrot.lane.b32.xlu1 %v5347_v8, %s8377_s8  ;;  %v5258_v15 = vrot.slane %v5143_v11, %v8643_v16  ;;  %v5720_v8 = vld [vmem:[%s9436_s9 + $0x18] sm:$0xff]  ;;  %v5630_v11 = vld [vmem:[#allocation15 + $0x10] sm:$0xff] }
0x2454   :  { %5259 = vrot.lane.b32.xlu0 %v5258_v15, %s8377_s8  ;;  %v5631_v15 = vld [vmem:[#allocation15 + $0x18] sm:$0xff] }
0x2455   :  { %v9314_v20 = vpack.c.bf16 %v5631_v15, %v5630_v11 }
0x24c4   :  { %v5349_v21 = vpop.permute.xlu1 %5348 }
0x24c5   :  { %7323 = vmatmul.mubr.msk.f32.vlgmr.msra.gmra.mrb[50].mxu1 %vm197_vm1, %v5349_v21 }
0x24c6   :  { %7809 = vmatpush3.bf16.msra.mxu1 %v9253_v22  ;;  %7344 = vmatprep.mubr.msk.f32.mxu1 %vm8375_vm0, %v8376_v1  ;;  %v5260_v12 = vpop.permute.xlu0 %5259 }
0x24c7   :  { %7810 = vmatprep.subr.bf16.mxu1 %v8374_v0  ;;  %7312 = vmatmul.mubr.msk.f32.vlgmr.msra.gmra.mrb[50].mxu0 %vm197_vm1, %v5260_v12 }
0x24c8   :  { %7803 = vmatpush3.bf16.msra.mxu0 %v9256_v25  ;;  %7333 = vmatprep.mubr.msk.f32.mxu0 %vm8375_vm0, %v8376_v1 }
0x24c9   :  { %7804 = vmatprep.subr.bf16.mxu0 %v8374_v0 }
0x24ca   :  { %7812 = vmatpush3.bf16.msra.mxu1 %v9259_v14 }
0x24cb   :  { %7819 = vmatprep.subr.bf16.mxu1 %v8374_v0 }
0x24cc   :  { %7806 = vmatpush3.bf16.msra.mxu0 %v9266_v35 }
0x24cd   :  { %7345 = vmatmul.mubr.msk.f32.vlgmr.msra.gmra.mrb[52].mxu1 %vm197_vm1, %v5349_v21  ;;  %7813 = vmatprep.subr.bf16.mxu0 %v8374_v0 }
0x24ce   :  { %7366 = vmatprep.mubr.msk.f32.mxu1 %vm8375_vm0, %v8376_v1 }
0x24cf   :  { %7334 = vmatmul.mubr.msk.f32.vlgmr.msra.gmra.mrb[52].mxu0 %vm197_vm1, %v5260_v12 }
0x24d0   :  { %7355 = vmatprep.mubr.msk.f32.mxu0 %vm8375_vm0, %v8376_v1  ;;  %7815 = vmatpush3.bf16.msra.mxu0 %v9307_v10 }
0x24d1   :  { %7816 = vmatprep.subr.bf16.mxu0 %v8374_v0 }
0x24d4   :  { %7818 = vmatpush3.bf16.msra.mxu0 %v9314_v20 }
0x24d5   :  { %7825 = vmatprep.subr.bf16.mxu0 %v8374_v0 }
0x2598   :  { %v5418_v50 = vpop.f32.mrb[50].mxu1 }
0x2599   :  { %v5422_v41 = vadd.f32 %v5418_v50, %v5335_v51  ;;  %v7324_v47 = vpop.f32.mrb[51].mxu1 }
0x259a   :  { %v5329_v34 = vpop.f32.mrb[50].mxu0 }
0x259b   :  { %5423 = vst [vmem:[#allocation17 + $0x6] sm:$0x3] %v5422_v41  ;;  %v5333_v60 = vadd.f32 %v5329_v34, %v5246_v23  ;;  %v7313_v40 = vpop.f32.mrb[51].mxu0  ;;  %v5716_v41 = vld [vmem:[#allocation17 + $0x4] sm:$0x3] }
0x259d   :  { %5334 = vst [vmem:[#allocation17 + $0x8] sm:$0x3] %v5333_v60  ;;  %v5627_v60 = vld [vmem:[#allocation17 + $0xa] sm:$0x3] }
0x25a0   :  { %v5595_v7 = vpop.f32.mrb[52].mxu1 }
0x25a1   :  { %v5602_v19 = vadd.f32 %v5600_v38, %v5595_v7  ;;  %v7346_v2 = vpop.f32.mrb[53].mxu1  ;;  %v5806_v7 = vld [vmem:[#allocation2 + $0x4] sm:$0xf] }
0x25a2   :  { %v5496_v18 = vpop.f32.mrb[52].mxu0 }
0x25a3   :  { %8102 = vtanh.f32 %v5602_v19  ;;  %v5500_v45 = vadd.f32 %v5496_v18, %v5424_v43  ;;  %v7335_v44 = vpop.f32.mrb[53].mxu0  ;;  %v6674_v5 = vmul.f32 -1.442695, %v5602_v19  ;;  %v5981_v19 = vrot.slane %v5806_v7, 2 }
0x25a5   :  { %8104 = vtanh.f32 %v5500_v45  ;;  %v6672_v42 = vmul.f32 -1.442695, %v5500_v45  ;;  %v5805_v45 = vld [vmem:[#allocation2 + $0x18] sm:$0xf] }
0x25a6   :  { %8106 = vpow2.f32 %v6674_v5 }
0x25a7   :  { %8108 = vpow2.f32 %v6672_v42 }
0x25ad   :  { %v8103_v48 = vpop.eup %8102 }
0x25ae   :  { %5612 = vrot.lane.b32.xlu1 %v8103_v48, %s8368_s6 }
0x25af   :  { %v8105_v49 = vpop.eup %8104 }
0x25b0   :  { %5510 = vrot.lane.b32.xlu0 %v8105_v49, %s8368_s6  ;;  %v8107_v39 = vpop.eup %8106 }
0x25b1   :  { %v8109_v9 = vpop.eup %8108  ;;  %v5606_v29 = vadd.f32 1.0, %v8107_v39 }
0x25b2   :  { %v5504_v31 = vadd.f32 1.0, %v8109_v9 }
0x25b3   :  { %8110 = vrcp.f32 %v5606_v29 }
0x25b4   :  { %8112 = vrcp.f32 %v5504_v31 }
0x25bd   :  { %v8111_v32 = vpop.eup %8110 }
0x25be   :  { %v8113_v46 = vpop.eup %8112  ;;  %v5610_v53 = vmul.f32 %v8111_v32, %v9240_v57  ;;  %v5718_v57 = vld [vmem:[%s9436_s9 + $0x8] sm:$0xff] }
0x25bf   :  { %v5508_v56 = vmul.f32 %v8113_v46, %v9244_v62  ;;  %v9299_v4 = vpack.c.bf16 %v5718_v57, %v5717_v63  ;;  %v5719_v62 = vld [vmem:[%s9436_s9 + $0x10] sm:$0xff]  ;;  %s8379_s9 = smov [#allocation17]  }
0x25c0   :  { %v9310_v17 = vpack.c.bf16 %v5720_v8, %v5719_v62 }
0x25c1   :  { %7821 = vmatpush3.bf16.msra.mxu1 %v9299_v4 }
0x25c2   :  { %7822 = vmatprep.subr.bf16.mxu1 %v8374_v0 }
0x25c5   :  { %7824 = vmatpush3.bf16.msra.mxu1 %v9310_v17 }
0x25c6   :  { %7831 = vmatprep.subr.bf16.mxu1 %v8374_v0 }
0x2620   :  { %v5613_v33 = vpop.permute.xlu1 %5612 }
0x2621   :  { %v5615_v13 = vmul.f32 %v8111_v32, %v5613_v33 }
0x2622   :  { %v5511_v55 = vpop.permute.xlu0 %5510 }
0x2623   :  { %5617 = vrot.lane.b32.xlu1 %v5615_v13, %s8377_s8  ;;  %v5513_v52 = vmul.f32 %v8113_v46, %v5511_v55 }
0x2625   :  { %5515 = vrot.lane.b32.xlu0 %v5513_v52, %s8377_s8 }
0x2695   :  { %v5618_v54 = vpop.permute.xlu1 %5617 }
0x2696   :  { %v9286_v37 = vadd.f32 %v5618_v54, %v5610_v53 }
0x2697   :  { %v5516_v58 = vpop.permute.xlu0 %5515 }
0x2698   :  { %8114 = vtanh.f32 %v9286_v37  ;;  %v9290_v59 = vadd.f32 %v5516_v58, %v5508_v56 }
0x269a   :  { %8116 = vtanh.f32 %v9290_v59 }
0x26a2   :  { %v8115_v26 = vpop.eup %8114 }
0x26a3   :  { %5623 = vrot.lane.b32.xlu1 %v8115_v26, %s8368_s6 }
0x26a4   :  { %v8117_v27 = vpop.eup %8116 }
0x26a5   :  { %5521 = vrot.lane.b32.xlu0 %v8117_v27, %s8368_s6 }
0x2715   :  { %v5624_v28 = vpop.permute.xlu1 %5623 }
0x2716   :  { %v5626_v30 = vmul.f32 %v8111_v32, %v5624_v28 }
0x2717   :  { %v5522_v24 = vpop.permute.xlu0 %5521 }
0x2718   :  { %v5728_v21 = vrot.slane %v5626_v30, %v8643_v16  ;;  %v5524_v36 = vmul.f32 %v8113_v46, %v5522_v24 }
0x271a   :  { %5729 = vrot.lane.b32.xlu1 %v5728_v21, %s8377_s8  ;;  %v5639_v12 = vrot.slane %v5524_v36, %v8643_v16 }
0x271c   :  { %5640 = vrot.lane.b32.xlu0 %v5639_v12, %s8377_s8  ;;  %v6187_v12 = vld [vmem:[#allocation2] sm:$0xf] }
0x278c   :  { %v5730_v51 = vpop.permute.xlu1 %5729 }
0x278d   :  { %7367 = vmatmul.mubr.msk.f32.vlgmr.msra.gmra.mrb[54].mxu1 %vm197_vm1, %v5730_v51 }
0x278e   :  { %7833 = vmatpush3.bf16.msra.mxu1 %v9253_v22  ;;  %7388 = vmatprep.mubr.msk.f32.mxu1 %vm8375_vm0, %v8376_v1  ;;  %v5641_v50 = vpop.permute.xlu0 %5640 }
0x278f   :  { %7834 = vmatprep.subr.bf16.mxu1 %v8374_v0  ;;  %7356 = vmatmul.mubr.msk.f32.vlgmr.msra.gmra.mrb[54].mxu0 %vm197_vm1, %v5641_v50 }
0x2790   :  { %7827 = vmatpush3.bf16.msra.mxu0 %v9256_v25  ;;  %7377 = vmatprep.mubr.msk.f32.mxu0 %vm8375_vm0, %v8376_v1 }
0x2791   :  { %7828 = vmatprep.subr.bf16.mxu0 %v8374_v0 }
0x2792   :  { %7836 = vmatpush3.bf16.msra.mxu1 %v9259_v14 }
0x2793   :  { %7843 = vmatprep.subr.bf16.mxu1 %v8374_v0 }
0x2794   :  { %7830 = vmatpush3.bf16.msra.mxu0 %v9266_v35 }
0x2795   :  { %7389 = vmatmul.mubr.msk.f32.vlgmr.msra.gmra.mrb[56].mxu1 %vm197_vm1, %v5730_v51  ;;  %7837 = vmatprep.subr.bf16.mxu0 %v8374_v0 }
0x2796   :  { %7845 = vmatpush3.bf16.msra.mxu1 %v9299_v4  ;;  %7410 = vmatprep.mubr.msk.f32.mxu1 %vm8375_vm0, %v8376_v1 }
0x2797   :  { %7846 = vmatprep.subr.bf16.mxu1 %v8374_v0  ;;  %7378 = vmatmul.mubr.msk.f32.vlgmr.msra.gmra.mrb[56].mxu0 %vm197_vm1, %v5641_v50 }
0x2798   :  { %7839 = vmatpush3.bf16.msra.mxu0 %v9307_v10  ;;  %7399 = vmatprep.mubr.msk.f32.mxu0 %vm8375_vm0, %v8376_v1 }
0x2799   :  { %7840 = vmatprep.subr.bf16.mxu0 %v8374_v0 }
0x279a   :  { %7848 = vmatpush3.bf16.msra.mxu1 %v9310_v17 }
0x279b   :  { %7855 = vmatprep.subr.bf16.mxu1 %v8374_v0 }
0x279c   :  { %7842 = vmatpush3.bf16.msra.mxu0 %v9314_v20 }
0x279d   :  { %7849 = vmatprep.subr.bf16.mxu0 %v8374_v0 }
0x2860   :  { %v5799_v47 = vpop.f32.mrb[54].mxu1 }
0x2861   :  { %v5803_v23 = vadd.f32 %v5799_v47, %v5716_v41  ;;  %v7368_v34 = vpop.f32.mrb[55].mxu1 }
0x2862   :  { %v5710_v40 = vpop.f32.mrb[54].mxu0 }
0x2863   :  { %5804 = vst [vmem:[#allocation17 + $0x4] sm:$0x3] %v5803_v23  ;;  %v5714_v61 = vadd.f32 %v5710_v40, %v5627_v60  ;;  %v7357_v38 = vpop.f32.mrb[55].mxu0 }
0x2865   :  { %5715 = vst [vmem:[#allocation17 + $0xa] sm:$0x3] %v5714_v61 }
0x2868   :  { %v5976_v2 = vpop.f32.mrb[56].mxu1 }
0x2869   :  { %v5983_v43 = vadd.f32 %v5981_v19, %v5976_v2  ;;  %v7390_v18 = vpop.f32.mrb[57].mxu1 }
0x286a   :  { %v5877_v44 = vpop.f32.mrb[56].mxu0 }
0x286b   :  { %8118 = vtanh.f32 %v5983_v43  ;;  %v5881_v48 = vadd.f32 %v5877_v44, %v5805_v45  ;;  %v7379_v49 = vpop.f32.mrb[57].mxu0  ;;  %v6680_v39 = vmul.f32 -1.442695, %v5983_v43 }
0x286d   :  { %8120 = vtanh.f32 %v5881_v48  ;;  %v6678_v9 = vmul.f32 -1.442695, %v5881_v48 }
0x286e   :  { %8122 = vpow2.f32 %v6680_v39 }
0x286f   :  { %8124 = vpow2.f32 %v6678_v9 }
0x2875   :  { %v8119_v5 = vpop.eup %8118 }
0x2876   :  { %5993 = vrot.lane.b32.xlu1 %v8119_v5, %s8368_s6 }
0x2877   :  { %v8121_v42 = vpop.eup %8120 }
0x2878   :  { %5891 = vrot.lane.b32.xlu0 %v8121_v42, %s8368_s6  ;;  %v8123_v29 = vpop.eup %8122 }
0x2879   :  { %v8125_v31 = vpop.eup %8124  ;;  %v5987_v32 = vadd.f32 1.0, %v8123_v29 }
0x287a   :  { %v5885_v33 = vadd.f32 1.0, %v8125_v31 }
0x287b   :  { %8126 = vrcp.f32 %v5987_v32 }
0x287c   :  { %8128 = vrcp.f32 %v5885_v33 }
0x2885   :  { %v8127_v13 = vpop.eup %8126 }
0x2886   :  { %v8129_v52 = vpop.eup %8128  ;;  %v5991_v56 = vmul.f32 %v8127_v13, %v9286_v37 }
0x2887   :  { %v5889_v57 = vmul.f32 %v8129_v52, %v9290_v59 }
0x28e8   :  { %v5994_v46 = vpop.permute.xlu1 %5993 }
0x28e9   :  { %v5996_v55 = vmul.f32 %v8127_v13, %v5994_v46 }
0x28ea   :  { %v5892_v53 = vpop.permute.xlu0 %5891 }
0x28eb   :  { %5998 = vrot.lane.b32.xlu1 %v5996_v55, %s8377_s8  ;;  %v5894_v54 = vmul.f32 %v8129_v52, %v5892_v53 }
0x28ed   :  { %5896 = vrot.lane.b32.xlu0 %v5894_v54, %s8377_s8 }
0x295d   :  { %v5999_v58 = vpop.permute.xlu1 %5998 }
0x295e   :  { %v9360_v63 = vadd.f32 %v5999_v58, %v5991_v56  ;;  %v6478_v56 = vld [vmem:[#allocation17] sm:$0x3] }
0x295f   :  { %v5897_v3 = vpop.permute.xlu0 %5896 }
0x2960   :  { %8130 = vtanh.f32 %v9360_v63  ;;  %v9364_v6 = vadd.f32 %v5897_v3, %v5889_v57  ;;  %v6389_v3 = vld [vmem:[#allocation17 + $0xe] sm:$0x3] }
0x2962   :  { %8132 = vtanh.f32 %v9364_v6 }
0x296a   :  { %v8131_v62 = vpop.eup %8130 }
0x296b   :  { %6004 = vrot.lane.b32.xlu1 %v8131_v62, %s8368_s6 }
0x296c   :  { %v8133_v8 = vpop.eup %8132 }
0x296d   :  { %5902 = vrot.lane.b32.xlu0 %v8133_v8, %s8368_s6 }
0x29dd   :  { %v6005_v11 = vpop.permute.xlu1 %6004 }
0x29de   :  { %v6007_v37 = vmul.f32 %v8127_v13, %v6005_v11 }
0x29df   :  { %v5903_v26 = vpop.permute.xlu0 %5902 }
0x29e0   :  { %v6109_v15 = vrot.slane %v6007_v37, %v8643_v16  ;;  %v5905_v27 = vmul.f32 %v8129_v52, %v5903_v26 }
0x29e2   :  { %6110 = vrot.lane.b32.xlu1 %v6109_v15, %s8377_s8  ;;  %v6020_v59 = vrot.slane %v5905_v27, %v8643_v16 }
0x29e4   :  { %6021 = vrot.lane.b32.xlu0 %v6020_v59, %s8377_s8 }
0x2a54   :  { %v6111_v28 = vpop.permute.xlu1 %6110 }
0x2a55   :  { %7411 = vmatmul.mubr.msk.f32.vlgmr.msra.gmra.mrb[58].mxu1 %vm197_vm1, %v6111_v28 }
0x2a56   :  { %7857 = vmatpush3.bf16.msra.mxu1 %v9253_v22  ;;  %7432 = vmatprep.mubr.msk.f32.mxu1 %vm8375_vm0, %v8376_v1  ;;  %v6022_v30 = vpop.permute.xlu0 %6021  ;;  %v6097_v22 = vld [vmem:[#allocation17 + $0x2] sm:$0x3] }
0x2a57   :  { %7858 = vmatprep.subr.bf16.mxu1 %v8374_v0  ;;  %7400 = vmatmul.mubr.msk.f32.vlgmr.msra.gmra.mrb[58].mxu0 %vm197_vm1, %v6022_v30 }
0x2a58   :  { %7851 = vmatpush3.bf16.msra.mxu0 %v9256_v25  ;;  %7421 = vmatprep.mubr.msk.f32.mxu0 %vm8375_vm0, %v8376_v1 }
0x2a59   :  { %7852 = vmatprep.subr.bf16.mxu0 %v8374_v0 }
0x2a5a   :  { %7860 = vmatpush3.bf16.msra.mxu1 %v9259_v14 }
0x2a5b   :  { %7867 = vmatprep.subr.bf16.mxu1 %v8374_v0 }
0x2a5c   :  { %7854 = vmatpush3.bf16.msra.mxu0 %v9266_v35 }
0x2a5d   :  { %7433 = vmatmul.mubr.msk.f32.vlgmr.msra.gmra.mrb[60].mxu1 %vm197_vm1, %v6111_v28  ;;  %7861 = vmatprep.subr.bf16.mxu0 %v8374_v0 }
0x2a5e   :  { %7869 = vmatpush3.bf16.msra.mxu1 %v9299_v4  ;;  %7454 = vmatprep.mubr.msk.f32.mxu1 %vm8375_vm0, %v8376_v1  ;;  %v6008_v4 = vld [vmem:[#allocation17 + $0xc] sm:$0x3] }
0x2a5f   :  { %7870 = vmatprep.subr.bf16.mxu1 %v8374_v0  ;;  %7422 = vmatmul.mubr.msk.f32.vlgmr.msra.gmra.mrb[60].mxu0 %vm197_vm1, %v6022_v30 }
0x2a60   :  { %7863 = vmatpush3.bf16.msra.mxu0 %v9307_v10  ;;  %7443 = vmatprep.mubr.msk.f32.mxu0 %vm8375_vm0, %v8376_v1  ;;  %v6362_v10 = vrot.slane %v6187_v12, 2 }
0x2a61   :  { %7864 = vmatprep.subr.bf16.mxu0 %v8374_v0 }
0x2a62   :  { %7872 = vmatpush3.bf16.msra.mxu1 %v9310_v17  ;;  %v6186_v17 = vld [vmem:[#allocation2 + $0x1c] sm:$0xf] }
0x2a64   :  { %7866 = vmatpush3.bf16.msra.mxu0 %v9314_v20 }
0x2b28   :  { %v6180_v25 = vpop.f32.mrb[58].mxu1 }
0x2b29   :  { %v6184_v14 = vadd.f32 %v6180_v25, %v6097_v22  ;;  %v7412_v35 = vpop.f32.mrb[59].mxu1 }
0x2b2a   :  { %v6091_v21 = vpop.f32.mrb[58].mxu0 }
0x2b2b   :  { %6185 = vst [vmem:[#allocation17 + $0x2] sm:$0x3] %v6184_v14  ;;  %v6095_v24 = vadd.f32 %v6091_v21, %v6008_v4  ;;  %v7401_v36 = vpop.f32.mrb[59].mxu0 }
0x2b2d   :  { %6096 = vst [vmem:[#allocation17 + $0xc] sm:$0x3] %v6095_v24 }
0x2b30   :  { %v6357_v51 = vpop.f32.mrb[60].mxu1 }
0x2b31   :  { %v6364_v1 = vadd.f32 %v6362_v10, %v6357_v51  ;;  %v7434_v50 = vpop.f32.mrb[61].mxu1 }
0x2b32   :  { %v6258_v0 = vpop.f32.mrb[60].mxu0 }
0x2b33   :  { %8134 = vtanh.f32 %v6364_v1  ;;  %v6262_v41 = vadd.f32 %v6258_v0, %v6186_v17  ;;  %v7423_v20 = vpop.f32.mrb[61].mxu0  ;;  %v6686_v34 = vmul.f32 -1.442695, %v6364_v1 }
0x2b35   :  { %8136 = vtanh.f32 %v6262_v41  ;;  %v6684_v60 = vmul.f32 -1.442695, %v6262_v41 }
0x2b36   :  { %8138 = vpow2.f32 %v6686_v34 }
0x2b37   :  { %8140 = vpow2.f32 %v6684_v60 }
0x2b3d   :  { %v8135_v47 = vpop.eup %8134 }
0x2b3e   :  { %6374 = vrot.lane.b32.xlu1 %v8135_v47, %s8368_s6 }
0x2b3f   :  { %v8137_v23 = vpop.eup %8136 }
0x2b40   :  { %6272 = vrot.lane.b32.xlu0 %v8137_v23, %s8368_s6  ;;  %v8139_v40 = vpop.eup %8138 }
0x2b41   :  { %v8141_v61 = vpop.eup %8140  ;;  %v6368_v38 = vadd.f32 1.0, %v8139_v40 }
0x2b42   :  { %v6266_v7 = vadd.f32 1.0, %v8141_v61 }
0x2b43   :  { %8142 = vrcp.f32 %v6368_v38 }
0x2b44   :  { %8144 = vrcp.f32 %v6266_v7 }
0x2b4d   :  { %v8143_v19 = vpop.eup %8142 }
0x2b4e   :  { %v8145_v18 = vpop.eup %8144  ;;  %v6372_v48 = vmul.f32 %v8143_v19, %v9360_v63 }
0x2b4f   :  { %v6270_v42 = vmul.f32 %v8145_v18, %v9364_v6 }
0x2bb0   :  { %v6375_v2 = vpop.permute.xlu1 %6374 }
0x2bb1   :  { %v6377_v43 = vmul.f32 %v8143_v19, %v6375_v2 }
0x2bb2   :  { %v6273_v45 = vpop.permute.xlu0 %6272 }
0x2bb3   :  { %6379 = vrot.lane.b32.xlu1 %v6377_v43, %s8377_s8  ;;  %v6275_v44 = vmul.f32 %v8145_v18, %v6273_v45 }
0x2bb5   :  { %6277 = vrot.lane.b32.xlu0 %v6275_v44, %s8377_s8 }
0x2c25   :  { %v6380_v49 = vpop.permute.xlu1 %6379 }
0x2c26   :  { %v6382_v5 = vadd.f32 %v6380_v49, %v6372_v48 }
0x2c27   :  { %v6278_v39 = vpop.permute.xlu0 %6277 }
0x2c28   :  { %8146 = vtanh.f32 %v6382_v5  ;;  %v6280_v9 = vadd.f32 %v6278_v39, %v6270_v42 }
0x2c2a   :  { %8148 = vtanh.f32 %v6280_v9 }
0x2c32   :  { %v8147_v29 = vpop.eup %8146 }
0x2c33   :  { %6385 = vrot.lane.b32.xlu1 %v8147_v29, %s8368_s6 }
0x2c34   :  { %v8149_v31 = vpop.eup %8148 }
0x2c35   :  { %6283 = vrot.lane.b32.xlu0 %v8149_v31, %s8368_s6  ;;  %s6572_s6 = sshll.u32 %s8379_s9, 4  ;;  %s6573_s6 = int_to_ptr.vmem [resolvable:$true] %s6572_s6 }
0x2c36   :  { %s8326_s3 = scalar_lea.vmem %s6573_s6, 256  ;;  %p8331_p9 = scmp.lt.s32.totalorder %s6573_s6, %s6573_s6 }
0x2c37   :  { %p8327_p8 = scmp.ne.s32.totalorder %s6573_s6, %s8326_s3  ;;  %p8332_p10 = scmp.lt.s32.totalorder %s8326_s3, %s8326_s3 }
0x2c39   :  { %p8333_p11 = por %p8332_p10, %p8331_p9 }
0x2c3b   :  { %p8334_p12 = pnand %p8333_p11, %p8327_p8 }
0x2ca5   :  { %v6386_v32 = vpop.permute.xlu1 %6385 }
0x2ca6   :  { %v6388_v33 = vmul.f32 %v8143_v19, %v6386_v32 }
0x2ca7   :  { %v6284_v46 = vpop.permute.xlu0 %6283 }
0x2ca8   :  { %v6490_v13 = vrot.slane %v6388_v33, %v8643_v16  ;;  %v6286_v55 = vmul.f32 %v8145_v18, %v6284_v46 }
0x2caa   :  { %6491 = vrot.lane.b32.xlu1 %v6490_v13, %s8377_s8  ;;  %v6401_v52 = vrot.slane %v6286_v55, %v8643_v16 }
0x2cac   :  { %6402 = vrot.lane.b32.xlu0 %v6401_v52, %s8377_s8 }
0x2d1c   :  { %v6492_v53 = vpop.permute.xlu1 %6491 }
0x2d1d   :  { %7455 = vmatmul.mubr.msk.f32.vlgmr.msra.gmra.mrb[62].mxu1 %vm197_vm1, %v6492_v53 }
0x2d1e   :  { %v6403_v54 = vpop.permute.xlu0 %6402 }
0x2d1f   :  { %7444 = vmatmul.mubr.msk.f32.vlgmr.msra.gmra.mrb[62].mxu0 %vm197_vm1, %v6403_v54 }
0x2df0   :  { %v6561_v58 = vpop.f32.mrb[62].mxu1 }
0x2df1   :  { %v6565_v63 = vadd.f32 %v6561_v58, %v6478_v56  ;;  %v7456_v57 = vpop.f32.mrb[63].mxu1 }
0x2df2   :  { %v6472_v6 = vpop.f32.mrb[62].mxu0 }
0x2df3   :  { %6566 = vst [vmem:[#allocation17] sm:$0x3] %v6565_v63  ;;  %v6476_v62 = vadd.f32 %v6472_v6, %v6389_v3  ;;  %v7445_v8 = vpop.f32.mrb[63].mxu0 }
0x2df5   :  { %6477 = vst [vmem:[#allocation17 + $0xe] sm:$0x3] %v6476_v62 }
0x2df6   :  { %8337 = shalt.err (!%p8334_p12)
}
0x2df7   :  { %s8338_s2 = scalar_lea.hbm %s9438_s11, 256 }
0x2df8   :  { %p8339_p13 = scmp.ne.s32.totalorder %s9438_s11, %s8338_s2  ;;  %p8342_p0 = scmp.lt.u32.totalorder %s8338_s2, %s9438_s11 }
0x2dfa   :  { %p8344_p1 = pnand %p8342_p0, %p8339_p13 }
0x2dfc   :  { %8347 = shalt.err (!%p8344_p1)
}
0x2dfd   :  { %s8380_s28 = smov 2  }
0x2dfe   :  { %6578 = dma.vmem_to_hbm [thread:$0]  %s6573_s6, 256, %s9438_s11, [#allocation5], %s8377_s8, %s8377_s8, %s8380_s28  }
0x2dff   :  { %8358 = dma.done.wait [#allocation5], 256  }
0x2e00   :  { %8359 = vsyncadd [#allocation5], 4294967040 }
0x2e01   :  { %6582 = vsyncpa [#allocation4], 1 }
0x2e02   :  { %6583 = vsyncpa [#allocation7], 1 }
0x2e03   :  { %6584 = vsyncpa [#allocation10], 1 }
0x2e04   :  { %6585 = vsyncpa [#allocation13], 1 }
0x2e05   :  { %6586 = vsyncpa [#allocation16], 1 }
0x2e06   :  { %6587 = vsyncpa [#allocation5], 1 }

</bundles_post_ra>
